<compile_context>
chip_gen: v6e
topology: v6e:2x2x1
jax: 0.10.0
libtpu: 0.0.40
codegen_flags: <defaults>
</compile_context>

<pallas_src>
import jax
import jax.numpy as jnp
from jax import lax
from jax.experimental import pallas as pl
from jax.experimental.pallas import tpu as pltpu

K1, C1 = 5, 5        # conv1: 5x5 kernel, 1 -> 5 channels
K2, C2 = 3, 10       # conv2: 3x3 kernel, 5 -> 10 channels
H_IN = W_IN = 28     # 28 -> 24 -> 22
H1 = H_IN - K1 + 1   # 24
H2 = H1 - K2 + 1     # 22
N_CLASSES = 10
FLAT = C2 * H2 * H2  # 4840

# Flat-raster layout constants: every stage keeps a 28-wide row raster with a
# lane-aligned per-sample / per-channel stride of SC lanes; out-of-range positions are
# "don't care" (finite) and get zero weight in the dense layer.
W0 = W_IN                              # raster row width (28)
S = H_IN * W_IN                        # 784: valid per-sample raster length
SC = 7 * 128                           # 896: lane-aligned per-sample/channel stride
_MAX_OFF1 = (K1 - 1) * W0 + (K1 - 1)   # 116: largest conv1 tap offset on the raster
_MAX_OFF2 = (K2 - 1) * W0 + (K2 - 1)   # 58:  largest conv2 tap offset on the raster


def _convnet_fused_kernel(x_ref, w1_ref, b1_ref, w2_ref, b2_ref, bd_ref, wd_hbm,
                          out_ref,
                          wd_vmem, p1_ref, h1_ref, p2_ref, h2_ref, flat_ref, wd_sem):
    """Fused conv1+ReLU+conv2+ReLU+flatten+dense+log_softmax.

    x_ref   : (1, L0)         zero-padded flat raster of the batch (stride SC/sample)
    w1_ref  : (5, 25)         conv1 taps, column ki*5+kj
    b1_ref  : (5, 1)
    w2_ref  : (10, 45)        conv2 weight, column (ki*3+kj)*5 + c_in
    b2_ref  : (10, 1)
    bd_ref  : (1, 10)
    wd_hbm  : (10, C2*SC)     dense weight in HBM, remapped onto the raster layout
    out_ref : (N, 10)
    scratch : wd_vmem (10,C2*SC), p1 (25,L1), h1 (5,L1), p2 (45,L2), h2 (10,L2),
              flat (N, C2*SC), wd_sem (DMA semaphore)
    """
    n = out_ref.shape[0]
    L1 = h1_ref.shape[1]
    L2 = h2_ref.shape[1]

    # ---- dense weight: largest HBM transfer -> start its DMA first so it overlaps
    # with both convolutions; wait only right before the dense matmul.
    wd_cp = pltpu.make_async_copy(wd_hbm, wd_vmem, wd_sem)
    wd_cp.start()

    # ---- conv1 (1 -> 5, k=5) + ReLU as ONE MXU matmul: build a (25, L1) im2col
    # patch from the 25 lane-shifted windows, then contract the taps.
    for ki in range(K1):
        for kj in range(K1):
            t = ki * K1 + kj
            off = ki * W0 + kj
            p1_ref[t:t + 1, :] = x_ref[:, off:off + L1]
    h1_ref[...] = jnp.maximum(
        jnp.dot(w1_ref[...], p1_ref[...], preferred_element_type=jnp.float32)
        + b1_ref[...], 0.0)

    # ---- conv2 (5 -> 10, k=3) + ReLU as ONE MXU matmul with K = 9 taps * 5 ch = 45.
    for ki in range(K2):
        for kj in range(K2):
            t = ki * K2 + kj
            off = ki * W0 + kj
            p2_ref[t * C1:(t + 1) * C1, :] = h1_ref[:, off:off + L2]
    h2_ref[...] = jnp.maximum(
        jnp.dot(w2_ref[...], p2_ref[...], preferred_element_type=jnp.float32)
        + b2_ref[...], 0.0)

    # ---- flatten: per-sample and per-channel strides are both SC (multiple of 128),
    # so every copy is a full lane-aligned 896-lane block; all lanes of flat_ref are
    # written, hence no zero-fill is needed (wd zero-weights padded/invalid positions,
    # and every such position holds a finite value — no stale-VMEM reads anywhere).
    for nn in range(n):
        for c in range(C2):
            flat_ref[nn:nn + 1, c * SC:(c + 1) * SC] = \
                h2_ref[c:c + 1, nn * SC:(nn + 1) * SC]

    # ---- dense (4840 -> 10) as ONE NT matmul (weight kept with the long dim on
    # lanes; lanes-with-lanes contraction, same pattern as q@k^T — no in-kernel weight
    # transpose), then log_softmax over dim 0 (the batch), as the PyTorch module does.
    wd_cp.wait()
    logits = lax.dot_general(flat_ref[...], wd_vmem[...],
                             (((1,), (1,)), ((), ())),
                             preferred_element_type=jnp.float32) + bd_ref[...]
    m = jnp.max(logits, axis=0, keepdims=True)
    z = logits - m
    lse = jnp.log(jnp.sum(jnp.exp(z), axis=0, keepdims=True))
    out_ref[...] = z - lse


def convnet_forward(x_nchw, params):
    w1, b1, w2, b2, wd, bd = params
    n = x_nchw.shape[0]
    # TODO(synk): the PyTorch forward does `print(x.size(0))`; omitted so that stdout
    # stays exactly "KERNEL_OK".

    L2 = n * SC              # h2 raster length (whole batch, stride SC per sample)
    L1 = L2 + 128            # >= L2 + _MAX_OFF2 (58), keeps 128-lane multiples
    L0 = L2 + 256            # >= L1 + _MAX_OFF1 (116)

    # ---- glue (plain JAX, input/weight prep only; no per-call activation relayout) --
    x_r = jnp.pad(x_nchw[:, 0, :, :].reshape(n, S), ((0, 0), (0, SC - S)))  # (n, 896)
    x_flat = jnp.pad(x_r.reshape(1, n * SC), ((0, 0), (0, L0 - n * SC)))    # (1, L0)

    w1f = w1.reshape(C1, K1 * K1)                                      # (5, 25)
    # w2f[o, (ki*3+kj)*5 + c] = w2[o, c, ki, kj]  (matches p2 row layout)
    w2f = jnp.transpose(w2, (0, 2, 3, 1)).reshape(C2, K2 * K2 * C1)    # (10, 45)
    b1c = b1.reshape(C1, 1)
    b2c = b2.reshape(C2, 1)
    # Dense weight: remap PyTorch's NCHW flatten order (c*484 + h*22 + w) onto the
    # 28-wide raster with lane-aligned per-channel stride SC; padded raster positions
    # get zero weight so the kernel's "don't care" lanes contribute nothing.
    wdb = wd.reshape(N_CLASSES, C2, H2, H2)
    wdb = jnp.pad(wdb, ((0, 0), (0, 0), (0, W0 - H2), (0, W0 - H2)))   # (10,10,28,28)
    wdb = jnp.pad(wdb.reshape(N_CLASSES, C2, S), ((0, 0), (0, 0), (0, SC - S)))
    wdb = wdb.reshape(N_CLASSES, C2 * SC)                              # (10, 8960)
    bdr = bd.reshape(1, N_CLASSES)

    vmem = pl.BlockSpec(memory_space=pltpu.MemorySpace.VMEM)
    out = pl.pallas_call(
        _convnet_fused_kernel,
        out_shape=jax.ShapeDtypeStruct((n, N_CLASSES), jnp.float32),
        in_specs=[vmem] * 6 + [pl.BlockSpec(memory_space=pl.ANY)],   # wdb stays in HBM
        out_specs=vmem,
        scratch_shapes=[
            pltpu.VMEM((N_CLASSES, C2 * SC), jnp.float32),   # dense weight (DMA dest)
            pltpu.VMEM((K1 * K1, L1), jnp.float32),          # conv1 im2col patch
            pltpu.VMEM((C1, L1), jnp.float32),               # h1 raster
            pltpu.VMEM((K2 * K2 * C1, L2), jnp.float32),     # conv2 im2col patch
            pltpu.VMEM((C2, L2), jnp.float32),               # h2 raster
            pltpu.VMEM((n, C2 * SC), jnp.float32),           # flattened dense input
            pltpu.SemaphoreType.DMA,                         # dense-weight DMA sem
        ],
    )(x_flat, w1f, b1c, w2f, b2c, bdr, wdb)
    return out


def init_params(key):
    """Deterministic PyTorch-default-style init (uniform +/- 1/sqrt(fan_in))."""
    ks = jax.random.split(key, 6)

    def u(k, shape, fan_in):
        bound = 1.0 / (fan_in ** 0.5)
        return jax.random.uniform(k, shape, jnp.float32, -bound, bound)

    w1 = u(ks[0], (C1, 1, K1, K1), 1 * K1 * K1)
    b1 = u(ks[1], (C1,), 1 * K1 * K1)
    w2 = u(ks[2], (C2, C1, K2, K2), C1 * K2 * K2)
    b2 = u(ks[3], (C2,), C1 * K2 * K2)
    wd = u(ks[4], (N_CLASSES, FLAT), FLAT)
    bd = u(ks[5], (N_CLASSES,), FLAT)
    return w1, b1, w2, b2, wd, bd


def ref_forward(x_nchw, params):
    """Pure-JAX reference mirroring the PyTorch forward."""
    w1, b1, w2, b2, wd, bd = params
    dn = ('NCHW', 'OIHW', 'NCHW')
    o1 = lax.conv_general_dilated(x_nchw, w1, (1, 1), 'VALID', dimension_numbers=dn)
    o1 = jnp.maximum(o1 + b1[None, :, None, None], 0.0)
    o2 = lax.conv_general_dilated(o1, w2, (1, 1), 'VALID', dimension_numbers=dn)
    o2 = jnp.maximum(o2 + b2[None, :, None, None], 0.0)
    flat = o2.reshape(x_nchw.shape[0], -1)
    logits = flat @ wd.T + bd
    return jax.nn.log_softmax(logits, axis=0)


if __name__ == "__main__":
    key = jax.random.PRNGKey(0)
    pkey, xkey = jax.random.split(key)
    params = init_params(pkey)

    # batch=2, 1 channel, 28x28 (forced by Linear(4840, 10))
    x = jax.random.normal(xkey, (2, 1, H_IN, W_IN), jnp.float32)

    out = jax.block_until_ready(jax.jit(convnet_forward)(x, params))
    ref = jax.block_until_ready(ref_forward(x, params))

    assert out.shape == (2, N_CLASSES)
    assert jnp.allclose(out, ref, atol=2e-4, rtol=2e-4), float(jnp.max(jnp.abs(out - ref)))
    print("KERNEL_OK")
</pallas_src>

<mosaic_0001>
module attributes {stable_mosaic.version = 11 : i64} {
  func.func @_convnet_fused_kernel(%arg0: memref<1x2048xf32, #tpu.memory_space<vmem>>, %arg1: memref<5x25xf32, #tpu.memory_space<vmem>>, %arg2: memref<5x1xf32, #tpu.memory_space<vmem>>, %arg3: memref<10x45xf32, #tpu.memory_space<vmem>>, %arg4: memref<10x1xf32, #tpu.memory_space<vmem>>, %arg5: memref<1x10xf32, #tpu.memory_space<vmem>>, %arg6: memref<10x8960xf32, #tpu.memory_space<any>>, %arg7: memref<2x10xf32, #tpu.memory_space<vmem>>, %arg8: memref<10x8960xf32, #tpu.memory_space<vmem>>, %arg9: memref<25x1920xf32, #tpu.memory_space<vmem>>, %arg10: memref<5x1920xf32, #tpu.memory_space<vmem>>, %arg11: memref<45x1792xf32, #tpu.memory_space<vmem>>, %arg12: memref<10x1792xf32, #tpu.memory_space<vmem>>, %arg13: memref<2x8960xf32, #tpu.memory_space<vmem>>, %arg14: memref<!tpu.dma_semaphore, #tpu.memory_space<semaphore_mem>>) attributes {dimension_semantics = [], scalar_prefetch = 0 : i64, scratch_operands = 7 : i64, tpu.core_type = #tpu.core_type<tc>} {
    tpu.enqueue_dma source(%arg6 : memref<10x8960xf32, #tpu.memory_space<any>>) target(%arg8 : memref<10x8960xf32, #tpu.memory_space<vmem>>) target_semaphore(%arg14 : memref<!tpu.dma_semaphore, #tpu.memory_space<semaphore_mem>>)
    %c0 = arith.constant 0 : index
    %c0_0 = arith.constant 0 : index
    %0 = vector.load %arg0[%c0, %c0_0] : memref<1x2048xf32, #tpu.memory_space<vmem>>, vector<1x1920xf32>
    %c0_1 = arith.constant 0 : index
    %c0_2 = arith.constant 0 : index
    %1 = vector.load %arg9[%c0_1, %c0_2] : memref<25x1920xf32, #tpu.memory_space<vmem>>, vector<1x1920xf32>
    tpu.vector_store %arg9[%c0_1, %c0_2], %0 {strides = array<i32>} : memref<25x1920xf32, #tpu.memory_space<vmem>>, vector<1x1920xf32>,
    %c0_3 = arith.constant 0 : index
    %c1 = arith.constant 1 : index
    %2 = vector.load %arg0[%c0_3, %c1] : memref<1x2048xf32, #tpu.memory_space<vmem>>, vector<1x1920xf32>
    %c1_4 = arith.constant 1 : index
    %c0_5 = arith.constant 0 : index
    %3 = vector.load %arg9[%c1_4, %c0_5] : memref<25x1920xf32, #tpu.memory_space<vmem>>, vector<1x1920xf32>
    tpu.vector_store %arg9[%c1_4, %c0_5], %2 {strides = array<i32>} : memref<25x1920xf32, #tpu.memory_space<vmem>>, vector<1x1920xf32>,
    %c0_6 = arith.constant 0 : index
    %c2 = arith.constant 2 : index
    %4 = vector.load %arg0[%c0_6, %c2] : memref<1x2048xf32, #tpu.memory_space<vmem>>, vector<1x1920xf32>
    %c2_7 = arith.constant 2 : index
    %c0_8 = arith.constant 0 : index
    %5 = vector.load %arg9[%c2_7, %c0_8] : memref<25x1920xf32, #tpu.memory_space<vmem>>, vector<1x1920xf32>
    tpu.vector_store %arg9[%c2_7, %c0_8], %4 {strides = array<i32>} : memref<25x1920xf32, #tpu.memory_space<vmem>>, vector<1x1920xf32>,
    %c0_9 = arith.constant 0 : index
    %c3 = arith.constant 3 : index
    %6 = vector.load %arg0[%c0_9, %c3] : memref<1x2048xf32, #tpu.memory_space<vmem>>, vector<1x1920xf32>
    %c3_10 = arith.constant 3 : index
    %c0_11 = arith.constant 0 : index
    %7 = vector.load %arg9[%c3_10, %c0_11] : memref<25x1920xf32, #tpu.memory_space<vmem>>, vector<1x1920xf32>
    tpu.vector_store %arg9[%c3_10, %c0_11], %6 {strides = array<i32>} : memref<25x1920xf32, #tpu.memory_space<vmem>>, vector<1x1920xf32>,
    %c0_12 = arith.constant 0 : index
    %c4 = arith.constant 4 : index
    %8 = vector.load %arg0[%c0_12, %c4] : memref<1x2048xf32, #tpu.memory_space<vmem>>, vector<1x1920xf32>
    %c4_13 = arith.constant 4 : index
    %c0_14 = arith.constant 0 : index
    %9 = vector.load %arg9[%c4_13, %c0_14] : memref<25x1920xf32, #tpu.memory_space<vmem>>, vector<1x1920xf32>
    tpu.vector_store %arg9[%c4_13, %c0_14], %8 {strides = array<i32>} : memref<25x1920xf32, #tpu.memory_space<vmem>>, vector<1x1920xf32>,
    %c0_15 = arith.constant 0 : index
    %c28 = arith.constant 28 : index
    %10 = vector.load %arg0[%c0_15, %c28] : memref<1x2048xf32, #tpu.memory_space<vmem>>, vector<1x1920xf32>
    %c5 = arith.constant 5 : index
    %c0_16 = arith.constant 0 : index
    %11 = vector.load %arg9[%c5, %c0_16] : memref<25x1920xf32, #tpu.memory_space<vmem>>, vector<1x1920xf32>
    tpu.vector_store %arg9[%c5, %c0_16], %10 {strides = array<i32>} : memref<25x1920xf32, #tpu.memory_space<vmem>>, vector<1x1920xf32>,
    %c0_17 = arith.constant 0 : index
    %c29 = arith.constant 29 : index
    %12 = vector.load %arg0[%c0_17, %c29] : memref<1x2048xf32, #tpu.memory_space<vmem>>, vector<1x1920xf32>
    %c6 = arith.constant 6 : index
    %c0_18 = arith.constant 0 : index
    %13 = vector.load %arg9[%c6, %c0_18] : memref<25x1920xf32, #tpu.memory_space<vmem>>, vector<1x1920xf32>
    tpu.vector_store %arg9[%c6, %c0_18], %12 {strides = array<i32>} : memref<25x1920xf32, #tpu.memory_space<vmem>>, vector<1x1920xf32>,
    %c0_19 = arith.constant 0 : index
    %c30 = arith.constant 30 : index
    %14 = vector.load %arg0[%c0_19, %c30] : memref<1x2048xf32, #tpu.memory_space<vmem>>, vector<1x1920xf32>
    %c7 = arith.constant 7 : index
    %c0_20 = arith.constant 0 : index
    %15 = vector.load %arg9[%c7, %c0_20] : memref<25x1920xf32, #tpu.memory_space<vmem>>, vector<1x1920xf32>
    tpu.vector_store %arg9[%c7, %c0_20], %14 {strides = array<i32>} : memref<25x1920xf32, #tpu.memory_space<vmem>>, vector<1x1920xf32>,
    %c0_21 = arith.constant 0 : index
    %c31 = arith.constant 31 : index
    %16 = vector.load %arg0[%c0_21, %c31] : memref<1x2048xf32, #tpu.memory_space<vmem>>, vector<1x1920xf32>
    %c8 = arith.constant 8 : index
    %c0_22 = arith.constant 0 : index
    %17 = vector.load %arg9[%c8, %c0_22] : memref<25x1920xf32, #tpu.memory_space<vmem>>, vector<1x1920xf32>
    tpu.vector_store %arg9[%c8, %c0_22], %16 {strides = array<i32>} : memref<25x1920xf32, #tpu.memory_space<vmem>>, vector<1x1920xf32>,
    %c0_23 = arith.constant 0 : index
    %c32 = arith.constant 32 : index
    %18 = vector.load %arg0[%c0_23, %c32] : memref<1x2048xf32, #tpu.memory_space<vmem>>, vector<1x1920xf32>
    %c9 = arith.constant 9 : index
    %c0_24 = arith.constant 0 : index
    %19 = vector.load %arg9[%c9, %c0_24] : memref<25x1920xf32, #tpu.memory_space<vmem>>, vector<1x1920xf32>
    tpu.vector_store %arg9[%c9, %c0_24], %18 {strides = array<i32>} : memref<25x1920xf32, #tpu.memory_space<vmem>>, vector<1x1920xf32>,
    %c0_25 = arith.constant 0 : index
    %c56 = arith.constant 56 : index
    %20 = vector.load %arg0[%c0_25, %c56] : memref<1x2048xf32, #tpu.memory_space<vmem>>, vector<1x1920xf32>
    %c10 = arith.constant 10 : index
    %c0_26 = arith.constant 0 : index
    %21 = vector.load %arg9[%c10, %c0_26] : memref<25x1920xf32, #tpu.memory_space<vmem>>, vector<1x1920xf32>
    tpu.vector_store %arg9[%c10, %c0_26], %20 {strides = array<i32>} : memref<25x1920xf32, #tpu.memory_space<vmem>>, vector<1x1920xf32>,
    %c0_27 = arith.constant 0 : index
    %c57 = arith.constant 57 : index
    %22 = vector.load %arg0[%c0_27, %c57] : memref<1x2048xf32, #tpu.memory_space<vmem>>, vector<1x1920xf32>
    %c11 = arith.constant 11 : index
    %c0_28 = arith.constant 0 : index
    %23 = vector.load %arg9[%c11, %c0_28] : memref<25x1920xf32, #tpu.memory_space<vmem>>, vector<1x1920xf32>
    tpu.vector_store %arg9[%c11, %c0_28], %22 {strides = array<i32>} : memref<25x1920xf32, #tpu.memory_space<vmem>>, vector<1x1920xf32>,
    %c0_29 = arith.constant 0 : index
    %c58 = arith.constant 58 : index
    %24 = vector.load %arg0[%c0_29, %c58] : memref<1x2048xf32, #tpu.memory_space<vmem>>, vector<1x1920xf32>
    %c12 = arith.constant 12 : index
    %c0_30 = arith.constant 0 : index
    %25 = vector.load %arg9[%c12, %c0_30] : memref<25x1920xf32, #tpu.memory_space<vmem>>, vector<1x1920xf32>
    tpu.vector_store %arg9[%c12, %c0_30], %24 {strides = array<i32>} : memref<25x1920xf32, #tpu.memory_space<vmem>>, vector<1x1920xf32>,
    %c0_31 = arith.constant 0 : index
    %c59 = arith.constant 59 : index
    %26 = vector.load %arg0[%c0_31, %c59] : memref<1x2048xf32, #tpu.memory_space<vmem>>, vector<1x1920xf32>
    %c13 = arith.constant 13 : index
    %c0_32 = arith.constant 0 : index
    %27 = vector.load %arg9[%c13, %c0_32] : memref<25x1920xf32, #tpu.memory_space<vmem>>, vector<1x1920xf32>
    tpu.vector_store %arg9[%c13, %c0_32], %26 {strides = array<i32>} : memref<25x1920xf32, #tpu.memory_space<vmem>>, vector<1x1920xf32>,
    %c0_33 = arith.constant 0 : index
    %c60 = arith.constant 60 : index
    %28 = vector.load %arg0[%c0_33, %c60] : memref<1x2048xf32, #tpu.memory_space<vmem>>, vector<1x1920xf32>
    %c14 = arith.constant 14 : index
    %c0_34 = arith.constant 0 : index
    %29 = vector.load %arg9[%c14, %c0_34] : memref<25x1920xf32, #tpu.memory_space<vmem>>, vector<1x1920xf32>
    tpu.vector_store %arg9[%c14, %c0_34], %28 {strides = array<i32>} : memref<25x1920xf32, #tpu.memory_space<vmem>>, vector<1x1920xf32>,
    %c0_35 = arith.constant 0 : index
    %c84 = arith.constant 84 : index
    %30 = vector.load %arg0[%c0_35, %c84] : memref<1x2048xf32, #tpu.memory_space<vmem>>, vector<1x1920xf32>
    %c15 = arith.constant 15 : index
    %c0_36 = arith.constant 0 : index
    %31 = vector.load %arg9[%c15, %c0_36] : memref<25x1920xf32, #tpu.memory_space<vmem>>, vector<1x1920xf32>
    tpu.vector_store %arg9[%c15, %c0_36], %30 {strides = array<i32>} : memref<25x1920xf32, #tpu.memory_space<vmem>>, vector<1x1920xf32>,
    %c0_37 = arith.constant 0 : index
    %c85 = arith.constant 85 : index
    %32 = vector.load %arg0[%c0_37, %c85] : memref<1x2048xf32, #tpu.memory_space<vmem>>, vector<1x1920xf32>
    %c16 = arith.constant 16 : index
    %c0_38 = arith.constant 0 : index
    %33 = vector.load %arg9[%c16, %c0_38] : memref<25x1920xf32, #tpu.memory_space<vmem>>, vector<1x1920xf32>
    tpu.vector_store %arg9[%c16, %c0_38], %32 {strides = array<i32>} : memref<25x1920xf32, #tpu.memory_space<vmem>>, vector<1x1920xf32>,
    %c0_39 = arith.constant 0 : index
    %c86 = arith.constant 86 : index
    %34 = vector.load %arg0[%c0_39, %c86] : memref<1x2048xf32, #tpu.memory_space<vmem>>, vector<1x1920xf32>
    %c17 = arith.constant 17 : index
    %c0_40 = arith.constant 0 : index
    %35 = vector.load %arg9[%c17, %c0_40] : memref<25x1920xf32, #tpu.memory_space<vmem>>, vector<1x1920xf32>
    tpu.vector_store %arg9[%c17, %c0_40], %34 {strides = array<i32>} : memref<25x1920xf32, #tpu.memory_space<vmem>>, vector<1x1920xf32>,
    %c0_41 = arith.constant 0 : index
    %c87 = arith.constant 87 : index
    %36 = vector.load %arg0[%c0_41, %c87] : memref<1x2048xf32, #tpu.memory_space<vmem>>, vector<1x1920xf32>
    %c18 = arith.constant 18 : index
    %c0_42 = arith.constant 0 : index
    %37 = vector.load %arg9[%c18, %c0_42] : memref<25x1920xf32, #tpu.memory_space<vmem>>, vector<1x1920xf32>
    tpu.vector_store %arg9[%c18, %c0_42], %36 {strides = array<i32>} : memref<25x1920xf32, #tpu.memory_space<vmem>>, vector<1x1920xf32>,
    %c0_43 = arith.constant 0 : index
    %c88 = arith.constant 88 : index
    %38 = vector.load %arg0[%c0_43, %c88] : memref<1x2048xf32, #tpu.memory_space<vmem>>, vector<1x1920xf32>
    %c19 = arith.constant 19 : index
    %c0_44 = arith.constant 0 : index
    %39 = vector.load %arg9[%c19, %c0_44] : memref<25x1920xf32, #tpu.memory_space<vmem>>, vector<1x1920xf32>
    tpu.vector_store %arg9[%c19, %c0_44], %38 {strides = array<i32>} : memref<25x1920xf32, #tpu.memory_space<vmem>>, vector<1x1920xf32>,
    %c0_45 = arith.constant 0 : index
    %c112 = arith.constant 112 : index
    %40 = vector.load %arg0[%c0_45, %c112] : memref<1x2048xf32, #tpu.memory_space<vmem>>, vector<1x1920xf32>
    %c20 = arith.constant 20 : index
    %c0_46 = arith.constant 0 : index
    %41 = vector.load %arg9[%c20, %c0_46] : memref<25x1920xf32, #tpu.memory_space<vmem>>, vector<1x1920xf32>
    tpu.vector_store %arg9[%c20, %c0_46], %40 {strides = array<i32>} : memref<25x1920xf32, #tpu.memory_space<vmem>>, vector<1x1920xf32>,
    %c0_47 = arith.constant 0 : index
    %c113 = arith.constant 113 : index
    %42 = vector.load %arg0[%c0_47, %c113] : memref<1x2048xf32, #tpu.memory_space<vmem>>, vector<1x1920xf32>
    %c21 = arith.constant 21 : index
    %c0_48 = arith.constant 0 : index
    %43 = vector.load %arg9[%c21, %c0_48] : memref<25x1920xf32, #tpu.memory_space<vmem>>, vector<1x1920xf32>
    tpu.vector_store %arg9[%c21, %c0_48], %42 {strides = array<i32>} : memref<25x1920xf32, #tpu.memory_space<vmem>>, vector<1x1920xf32>,
    %c0_49 = arith.constant 0 : index
    %c114 = arith.constant 114 : index
    %44 = vector.load %arg0[%c0_49, %c114] : memref<1x2048xf32, #tpu.memory_space<vmem>>, vector<1x1920xf32>
    %c22 = arith.constant 22 : index
    %c0_50 = arith.constant 0 : index
    %45 = vector.load %arg9[%c22, %c0_50] : memref<25x1920xf32, #tpu.memory_space<vmem>>, vector<1x1920xf32>
    tpu.vector_store %arg9[%c22, %c0_50], %44 {strides = array<i32>} : memref<25x1920xf32, #tpu.memory_space<vmem>>, vector<1x1920xf32>,
    %c0_51 = arith.constant 0 : index
    %c115 = arith.constant 115 : index
    %46 = vector.load %arg0[%c0_51, %c115] : memref<1x2048xf32, #tpu.memory_space<vmem>>, vector<1x1920xf32>
    %c23 = arith.constant 23 : index
    %c0_52 = arith.constant 0 : index
    %47 = vector.load %arg9[%c23, %c0_52] : memref<25x1920xf32, #tpu.memory_space<vmem>>, vector<1x1920xf32>
    tpu.vector_store %arg9[%c23, %c0_52], %46 {strides = array<i32>} : memref<25x1920xf32, #tpu.memory_space<vmem>>, vector<1x1920xf32>,
    %c0_53 = arith.constant 0 : index
    %c116 = arith.constant 116 : index
    %48 = vector.load %arg0[%c0_53, %c116] : memref<1x2048xf32, #tpu.memory_space<vmem>>, vector<1x1920xf32>
    %c24 = arith.constant 24 : index
    %c0_54 = arith.constant 0 : index
    %49 = vector.load %arg9[%c24, %c0_54] : memref<25x1920xf32, #tpu.memory_space<vmem>>, vector<1x1920xf32>
    tpu.vector_store %arg9[%c24, %c0_54], %48 {strides = array<i32>} : memref<25x1920xf32, #tpu.memory_space<vmem>>, vector<1x1920xf32>,
    %c0_55 = arith.constant 0 : index
    %c0_56 = arith.constant 0 : index
    %50 = vector.load %arg1[%c0_55, %c0_56] : memref<5x25xf32, #tpu.memory_space<vmem>>, vector<5x25xf32>
    %c0_57 = arith.constant 0 : index
    %c0_58 = arith.constant 0 : index
    %51 = vector.load %arg9[%c0_57, %c0_58] : memref<25x1920xf32, #tpu.memory_space<vmem>>, vector<25x1920xf32>
    %cst = arith.constant dense<0.000000e+00> : vector<5x1920xf32>
    %52 = tpu.matmul %50, %51, %cst {dimension_numbers = #tpu.dot_dimension_numbers<[1], [0], [0], [1], [0, 0, 1, 1], [], []>} : vector<5x25xf32>, vector<25x1920xf32>, vector<5x1920xf32> -> vector<5x1920xf32>
    %c0_59 = arith.constant 0 : index
    %c0_60 = arith.constant 0 : index
    %53 = vector.load %arg2[%c0_59, %c0_60] : memref<5x1xf32, #tpu.memory_space<vmem>>, vector<5x1xf32>
    %54 = vector.broadcast %53 : vector<5x1xf32> to vector<5x1920xf32>
    %55 = arith.addf %52, %54 : vector<5x1920xf32>
    %cst_61 = arith.constant 0.000000e+00 : f32
    %56 = vector.broadcast %cst_61 : f32 to vector<5x1920xf32>
    %57 = arith.maximumf %55, %56 : vector<5x1920xf32>
    %c0_62 = arith.constant 0 : index
    %c0_63 = arith.constant 0 : index
    %58 = vector.load %arg10[%c0_62, %c0_63] : memref<5x1920xf32, #tpu.memory_space<vmem>>, vector<5x1920xf32>
    tpu.vector_store %arg10[%c0_62, %c0_63], %57 {strides = array<i32>} : memref<5x1920xf32, #tpu.memory_space<vmem>>, vector<5x1920xf32>,
    %c0_64 = arith.constant 0 : index
    %c0_65 = arith.constant 0 : index
    %59 = vector.load %arg10[%c0_64, %c0_65] : memref<5x1920xf32, #tpu.memory_space<vmem>>, vector<5x1792xf32>
    %c0_66 = arith.constant 0 : index
    %c0_67 = arith.constant 0 : index
    %60 = vector.load %arg11[%c0_66, %c0_67] : memref<45x1792xf32, #tpu.memory_space<vmem>>, vector<5x1792xf32>
    tpu.vector_store %arg11[%c0_66, %c0_67], %59 {strides = array<i32>} : memref<45x1792xf32, #tpu.memory_space<vmem>>, vector<5x1792xf32>,
    %c0_68 = arith.constant 0 : index
    %c1_69 = arith.constant 1 : index
    %61 = vector.load %arg10[%c0_68, %c1_69] : memref<5x1920xf32, #tpu.memory_space<vmem>>, vector<5x1792xf32>
    %c5_70 = arith.constant 5 : index
    %c0_71 = arith.constant 0 : index
    %62 = vector.load %arg11[%c5_70, %c0_71] : memref<45x1792xf32, #tpu.memory_space<vmem>>, vector<5x1792xf32>
    tpu.vector_store %arg11[%c5_70, %c0_71], %61 {strides = array<i32>} : memref<45x1792xf32, #tpu.memory_space<vmem>>, vector<5x1792xf32>,
    %c0_72 = arith.constant 0 : index
    %c2_73 = arith.constant 2 : index
    %63 = vector.load %arg10[%c0_72, %c2_73] : memref<5x1920xf32, #tpu.memory_space<vmem>>, vector<5x1792xf32>
    %c10_74 = arith.constant 10 : index
    %c0_75 = arith.constant 0 : index
    %64 = vector.load %arg11[%c10_74, %c0_75] : memref<45x1792xf32, #tpu.memory_space<vmem>>, vector<5x1792xf32>
    tpu.vector_store %arg11[%c10_74, %c0_75], %63 {strides = array<i32>} : memref<45x1792xf32, #tpu.memory_space<vmem>>, vector<5x1792xf32>,
    %c0_76 = arith.constant 0 : index
    %c28_77 = arith.constant 28 : index
    %65 = vector.load %arg10[%c0_76, %c28_77] : memref<5x1920xf32, #tpu.memory_space<vmem>>, vector<5x1792xf32>
    %c15_78 = arith.constant 15 : index
    %c0_79 = arith.constant 0 : index
    %66 = vector.load %arg11[%c15_78, %c0_79] : memref<45x1792xf32, #tpu.memory_space<vmem>>, vector<5x1792xf32>
    tpu.vector_store %arg11[%c15_78, %c0_79], %65 {strides = array<i32>} : memref<45x1792xf32, #tpu.memory_space<vmem>>, vector<5x1792xf32>,
    %c0_80 = arith.constant 0 : index
    %c29_81 = arith.constant 29 : index
    %67 = vector.load %arg10[%c0_80, %c29_81] : memref<5x1920xf32, #tpu.memory_space<vmem>>, vector<5x1792xf32>
    %c20_82 = arith.constant 20 : index
    %c0_83 = arith.constant 0 : index
    %68 = vector.load %arg11[%c20_82, %c0_83] : memref<45x1792xf32, #tpu.memory_space<vmem>>, vector<5x1792xf32>
    tpu.vector_store %arg11[%c20_82, %c0_83], %67 {strides = array<i32>} : memref<45x1792xf32, #tpu.memory_space<vmem>>, vector<5x1792xf32>,
    %c0_84 = arith.constant 0 : index
    %c30_85 = arith.constant 30 : index
    %69 = vector.load %arg10[%c0_84, %c30_85] : memref<5x1920xf32, #tpu.memory_space<vmem>>, vector<5x1792xf32>
    %c25 = arith.constant 25 : index
    %c0_86 = arith.constant 0 : index
    %70 = vector.load %arg11[%c25, %c0_86] : memref<45x1792xf32, #tpu.memory_space<vmem>>, vector<5x1792xf32>
    tpu.vector_store %arg11[%c25, %c0_86], %69 {strides = array<i32>} : memref<45x1792xf32, #tpu.memory_space<vmem>>, vector<5x1792xf32>,
    %c0_87 = arith.constant 0 : index
    %c56_88 = arith.constant 56 : index
    %71 = vector.load %arg10[%c0_87, %c56_88] : memref<5x1920xf32, #tpu.memory_space<vmem>>, vector<5x1792xf32>
    %c30_89 = arith.constant 30 : index
    %c0_90 = arith.constant 0 : index
    %72 = vector.load %arg11[%c30_89, %c0_90] : memref<45x1792xf32, #tpu.memory_space<vmem>>, vector<5x1792xf32>
    tpu.vector_store %arg11[%c30_89, %c0_90], %71 {strides = array<i32>} : memref<45x1792xf32, #tpu.memory_space<vmem>>, vector<5x1792xf32>,
    %c0_91 = arith.constant 0 : index
    %c57_92 = arith.constant 57 : index
    %73 = vector.load %arg10[%c0_91, %c57_92] : memref<5x1920xf32, #tpu.memory_space<vmem>>, vector<5x1792xf32>
    %c35 = arith.constant 35 : index
    %c0_93 = arith.constant 0 : index
    %74 = vector.load %arg11[%c35, %c0_93] : memref<45x1792xf32, #tpu.memory_space<vmem>>, vector<5x1792xf32>
    tpu.vector_store %arg11[%c35, %c0_93], %73 {strides = array<i32>} : memref<45x1792xf32, #tpu.memory_space<vmem>>, vector<5x1792xf32>,
    %c0_94 = arith.constant 0 : index
    %c58_95 = arith.constant 58 : index
    %75 = vector.load %arg10[%c0_94, %c58_95] : memref<5x1920xf32, #tpu.memory_space<vmem>>, vector<5x1792xf32>
    %c40 = arith.constant 40 : index
    %c0_96 = arith.constant 0 : index
    %76 = vector.load %arg11[%c40, %c0_96] : memref<45x1792xf32, #tpu.memory_space<vmem>>, vector<5x1792xf32>
    tpu.vector_store %arg11[%c40, %c0_96], %75 {strides = array<i32>} : memref<45x1792xf32, #tpu.memory_space<vmem>>, vector<5x1792xf32>,
    %c0_97 = arith.constant 0 : index
    %c0_98 = arith.constant 0 : index
    %77 = vector.load %arg3[%c0_97, %c0_98] : memref<10x45xf32, #tpu.memory_space<vmem>>, vector<10x45xf32>
    %c0_99 = arith.constant 0 : index
    %c0_100 = arith.constant 0 : index
    %78 = vector.load %arg11[%c0_99, %c0_100] : memref<45x1792xf32, #tpu.memory_space<vmem>>, vector<45x1792xf32>
    %cst_101 = arith.constant dense<0.000000e+00> : vector<10x1792xf32>
    %79 = tpu.matmul %77, %78, %cst_101 {dimension_numbers = #tpu.dot_dimension_numbers<[1], [0], [0], [1], [0, 0, 1, 1], [], []>} : vector<10x45xf32>, vector<45x1792xf32>, vector<10x1792xf32> -> vector<10x1792xf32>
    %c0_102 = arith.constant 0 : index
    %c0_103 = arith.constant 0 : index
    %80 = vector.load %arg4[%c0_102, %c0_103] : memref<10x1xf32, #tpu.memory_space<vmem>>, vector<10x1xf32>
    %81 = vector.broadcast %80 : vector<10x1xf32> to vector<10x1792xf32>
    %82 = arith.addf %79, %81 : vector<10x1792xf32>
    %cst_104 = arith.constant 0.000000e+00 : f32
    %83 = vector.broadcast %cst_104 : f32 to vector<10x1792xf32>
    %84 = arith.maximumf %82, %83 : vector<10x1792xf32>
    %c0_105 = arith.constant 0 : index
    %c0_106 = arith.constant 0 : index
    %85 = vector.load %arg12[%c0_105, %c0_106] : memref<10x1792xf32, #tpu.memory_space<vmem>>, vector<10x1792xf32>
    tpu.vector_store %arg12[%c0_105, %c0_106], %84 {strides = array<i32>} : memref<10x1792xf32, #tpu.memory_space<vmem>>, vector<10x1792xf32>,
    %c0_107 = arith.constant 0 : index
    %c0_108 = arith.constant 0 : index
    %86 = vector.load %arg12[%c0_107, %c0_108] : memref<10x1792xf32, #tpu.memory_space<vmem>>, vector<1x896xf32>
    %c0_109 = arith.constant 0 : index
    %c0_110 = arith.constant 0 : index
    %87 = vector.load %arg13[%c0_109, %c0_110] : memref<2x8960xf32, #tpu.memory_space<vmem>>, vector<1x896xf32>
    tpu.vector_store %arg13[%c0_109, %c0_110], %86 {strides = array<i32>} : memref<2x8960xf32, #tpu.memory_space<vmem>>, vector<1x896xf32>,
    %c1_111 = arith.constant 1 : index
    %c0_112 = arith.constant 0 : index
    %88 = vector.load %arg12[%c1_111, %c0_112] : memref<10x1792xf32, #tpu.memory_space<vmem>>, vector<1x896xf32>
    %c0_113 = arith.constant 0 : index
    %c896 = arith.constant 896 : index
    %89 = vector.load %arg13[%c0_113, %c896] : memref<2x8960xf32, #tpu.memory_space<vmem>>, vector<1x896xf32>
    tpu.vector_store %arg13[%c0_113, %c896], %88 {strides = array<i32>} : memref<2x8960xf32, #tpu.memory_space<vmem>>, vector<1x896xf32>,
    %c2_114 = arith.constant 2 : index
    %c0_115 = arith.constant 0 : index
    %90 = vector.load %arg12[%c2_114, %c0_115] : memref<10x1792xf32, #tpu.memory_space<vmem>>, vector<1x896xf32>
    %c0_116 = arith.constant 0 : index
    %c1792 = arith.constant 1792 : index
    %91 = vector.load %arg13[%c0_116, %c1792] : memref<2x8960xf32, #tpu.memory_space<vmem>>, vector<1x896xf32>
    tpu.vector_store %arg13[%c0_116, %c1792], %90 {strides = array<i32>} : memref<2x8960xf32, #tpu.memory_space<vmem>>, vector<1x896xf32>,
    %c3_117 = arith.constant 3 : index
    %c0_118 = arith.constant 0 : index
    %92 = vector.load %arg12[%c3_117, %c0_118] : memref<10x1792xf32, #tpu.memory_space<vmem>>, vector<1x896xf32>
    %c0_119 = arith.constant 0 : index
    %c2688 = arith.constant 2688 : index
    %93 = vector.load %arg13[%c0_119, %c2688] : memref<2x8960xf32, #tpu.memory_space<vmem>>, vector<1x896xf32>
    tpu.vector_store %arg13[%c0_119, %c2688], %92 {strides = array<i32>} : memref<2x8960xf32, #tpu.memory_space<vmem>>, vector<1x896xf32>,
    %c4_120 = arith.constant 4 : index
    %c0_121 = arith.constant 0 : index
    %94 = vector.load %arg12[%c4_120, %c0_121] : memref<10x1792xf32, #tpu.memory_space<vmem>>, vector<1x896xf32>
    %c0_122 = arith.constant 0 : index
    %c3584 = arith.constant 3584 : index
    %95 = vector.load %arg13[%c0_122, %c3584] : memref<2x8960xf32, #tpu.memory_space<vmem>>, vector<1x896xf32>
    tpu.vector_store %arg13[%c0_122, %c3584], %94 {strides = array<i32>} : memref<2x8960xf32, #tpu.memory_space<vmem>>, vector<1x896xf32>,
    %c5_123 = arith.constant 5 : index
    %c0_124 = arith.constant 0 : index
    %96 = vector.load %arg12[%c5_123, %c0_124] : memref<10x1792xf32, #tpu.memory_space<vmem>>, vector<1x896xf32>
    %c0_125 = arith.constant 0 : index
    %c4480 = arith.constant 4480 : index
    %97 = vector.load %arg13[%c0_125, %c4480] : memref<2x8960xf32, #tpu.memory_space<vmem>>, vector<1x896xf32>
    tpu.vector_store %arg13[%c0_125, %c4480], %96 {strides = array<i32>} : memref<2x8960xf32, #tpu.memory_space<vmem>>, vector<1x896xf32>,
    %c6_126 = arith.constant 6 : index
    %c0_127 = arith.constant 0 : index
    %98 = vector.load %arg12[%c6_126, %c0_127] : memref<10x1792xf32, #tpu.memory_space<vmem>>, vector<1x896xf32>
    %c0_128 = arith.constant 0 : index
    %c5376 = arith.constant 5376 : index
    %99 = vector.load %arg13[%c0_128, %c5376] : memref<2x8960xf32, #tpu.memory_space<vmem>>, vector<1x896xf32>
    tpu.vector_store %arg13[%c0_128, %c5376], %98 {strides = array<i32>} : memref<2x8960xf32, #tpu.memory_space<vmem>>, vector<1x896xf32>,
    %c7_129 = arith.constant 7 : index
    %c0_130 = arith.constant 0 : index
    %100 = vector.load %arg12[%c7_129, %c0_130] : memref<10x1792xf32, #tpu.memory_space<vmem>>, vector<1x896xf32>
    %c0_131 = arith.constant 0 : index
    %c6272 = arith.constant 6272 : index
    %101 = vector.load %arg13[%c0_131, %c6272] : memref<2x8960xf32, #tpu.memory_space<vmem>>, vector<1x896xf32>
    tpu.vector_store %arg13[%c0_131, %c6272], %100 {strides = array<i32>} : memref<2x8960xf32, #tpu.memory_space<vmem>>, vector<1x896xf32>,
    %c8_132 = arith.constant 8 : index
    %c0_133 = arith.constant 0 : index
    %102 = vector.load %arg12[%c8_132, %c0_133] : memref<10x1792xf32, #tpu.memory_space<vmem>>, vector<1x896xf32>
    %c0_134 = arith.constant 0 : index
    %c7168 = arith.constant 7168 : index
    %103 = vector.load %arg13[%c0_134, %c7168] : memref<2x8960xf32, #tpu.memory_space<vmem>>, vector<1x896xf32>
    tpu.vector_store %arg13[%c0_134, %c7168], %102 {strides = array<i32>} : memref<2x8960xf32, #tpu.memory_space<vmem>>, vector<1x896xf32>,
    %c9_135 = arith.constant 9 : index
    %c0_136 = arith.constant 0 : index
    %104 = vector.load %arg12[%c9_135, %c0_136] : memref<10x1792xf32, #tpu.memory_space<vmem>>, vector<1x896xf32>
    %c0_137 = arith.constant 0 : index
    %c8064 = arith.constant 8064 : index
    %105 = vector.load %arg13[%c0_137, %c8064] : memref<2x8960xf32, #tpu.memory_space<vmem>>, vector<1x896xf32>
    tpu.vector_store %arg13[%c0_137, %c8064], %104 {strides = array<i32>} : memref<2x8960xf32, #tpu.memory_space<vmem>>, vector<1x896xf32>,
    %c0_138 = arith.constant 0 : index
    %c896_139 = arith.constant 896 : index
    %106 = vector.load %arg12[%c0_138, %c896_139] : memref<10x1792xf32, #tpu.memory_space<vmem>>, vector<1x896xf32>
    %c1_140 = arith.constant 1 : index
    %c0_141 = arith.constant 0 : index
    %107 = vector.load %arg13[%c1_140, %c0_141] : memref<2x8960xf32, #tpu.memory_space<vmem>>, vector<1x896xf32>
    tpu.vector_store %arg13[%c1_140, %c0_141], %106 {strides = array<i32>} : memref<2x8960xf32, #tpu.memory_space<vmem>>, vector<1x896xf32>,
    %c1_142 = arith.constant 1 : index
    %c896_143 = arith.constant 896 : index
    %108 = vector.load %arg12[%c1_142, %c896_143] : memref<10x1792xf32, #tpu.memory_space<vmem>>, vector<1x896xf32>
    %c1_144 = arith.constant 1 : index
    %c896_145 = arith.constant 896 : index
    %109 = vector.load %arg13[%c1_144, %c896_145] : memref<2x8960xf32, #tpu.memory_space<vmem>>, vector<1x896xf32>
    tpu.vector_store %arg13[%c1_144, %c896_145], %108 {strides = array<i32>} : memref<2x8960xf32, #tpu.memory_space<vmem>>, vector<1x896xf32>,
    %c2_146 = arith.constant 2 : index
    %c896_147 = arith.constant 896 : index
    %110 = vector.load %arg12[%c2_146, %c896_147] : memref<10x1792xf32, #tpu.memory_space<vmem>>, vector<1x896xf32>
    %c1_148 = arith.constant 1 : index
    %c1792_149 = arith.constant 1792 : index
    %111 = vector.load %arg13[%c1_148, %c1792_149] : memref<2x8960xf32, #tpu.memory_space<vmem>>, vector<1x896xf32>
    tpu.vector_store %arg13[%c1_148, %c1792_149], %110 {strides = array<i32>} : memref<2x8960xf32, #tpu.memory_space<vmem>>, vector<1x896xf32>,
    %c3_150 = arith.constant 3 : index
    %c896_151 = arith.constant 896 : index
    %112 = vector.load %arg12[%c3_150, %c896_151] : memref<10x1792xf32, #tpu.memory_space<vmem>>, vector<1x896xf32>
    %c1_152 = arith.constant 1 : index
    %c2688_153 = arith.constant 2688 : index
    %113 = vector.load %arg13[%c1_152, %c2688_153] : memref<2x8960xf32, #tpu.memory_space<vmem>>, vector<1x896xf32>
    tpu.vector_store %arg13[%c1_152, %c2688_153], %112 {strides = array<i32>} : memref<2x8960xf32, #tpu.memory_space<vmem>>, vector<1x896xf32>,
    %c4_154 = arith.constant 4 : index
    %c896_155 = arith.constant 896 : index
    %114 = vector.load %arg12[%c4_154, %c896_155] : memref<10x1792xf32, #tpu.memory_space<vmem>>, vector<1x896xf32>
    %c1_156 = arith.constant 1 : index
    %c3584_157 = arith.constant 3584 : index
    %115 = vector.load %arg13[%c1_156, %c3584_157] : memref<2x8960xf32, #tpu.memory_space<vmem>>, vector<1x896xf32>
    tpu.vector_store %arg13[%c1_156, %c3584_157], %114 {strides = array<i32>} : memref<2x8960xf32, #tpu.memory_space<vmem>>, vector<1x896xf32>,
    %c5_158 = arith.constant 5 : index
    %c896_159 = arith.constant 896 : index
    %116 = vector.load %arg12[%c5_158, %c896_159] : memref<10x1792xf32, #tpu.memory_space<vmem>>, vector<1x896xf32>
    %c1_160 = arith.constant 1 : index
    %c4480_161 = arith.constant 4480 : index
    %117 = vector.load %arg13[%c1_160, %c4480_161] : memref<2x8960xf32, #tpu.memory_space<vmem>>, vector<1x896xf32>
    tpu.vector_store %arg13[%c1_160, %c4480_161], %116 {strides = array<i32>} : memref<2x8960xf32, #tpu.memory_space<vmem>>, vector<1x896xf32>,
    %c6_162 = arith.constant 6 : index
    %c896_163 = arith.constant 896 : index
    %118 = vector.load %arg12[%c6_162, %c896_163] : memref<10x1792xf32, #tpu.memory_space<vmem>>, vector<1x896xf32>
    %c1_164 = arith.constant 1 : index
    %c5376_165 = arith.constant 5376 : index
    %119 = vector.load %arg13[%c1_164, %c5376_165] : memref<2x8960xf32, #tpu.memory_space<vmem>>, vector<1x896xf32>
    tpu.vector_store %arg13[%c1_164, %c5376_165], %118 {strides = array<i32>} : memref<2x8960xf32, #tpu.memory_space<vmem>>, vector<1x896xf32>,
    %c7_166 = arith.constant 7 : index
    %c896_167 = arith.constant 896 : index
    %120 = vector.load %arg12[%c7_166, %c896_167] : memref<10x1792xf32, #tpu.memory_space<vmem>>, vector<1x896xf32>
    %c1_168 = arith.constant 1 : index
    %c6272_169 = arith.constant 6272 : index
    %121 = vector.load %arg13[%c1_168, %c6272_169] : memref<2x8960xf32, #tpu.memory_space<vmem>>, vector<1x896xf32>
    tpu.vector_store %arg13[%c1_168, %c6272_169], %120 {strides = array<i32>} : memref<2x8960xf32, #tpu.memory_space<vmem>>, vector<1x896xf32>,
    %c8_170 = arith.constant 8 : index
    %c896_171 = arith.constant 896 : index
    %122 = vector.load %arg12[%c8_170, %c896_171] : memref<10x1792xf32, #tpu.memory_space<vmem>>, vector<1x896xf32>
    %c1_172 = arith.constant 1 : index
    %c7168_173 = arith.constant 7168 : index
    %123 = vector.load %arg13[%c1_172, %c7168_173] : memref<2x8960xf32, #tpu.memory_space<vmem>>, vector<1x896xf32>
    tpu.vector_store %arg13[%c1_172, %c7168_173], %122 {strides = array<i32>} : memref<2x8960xf32, #tpu.memory_space<vmem>>, vector<1x896xf32>,
    %c9_174 = arith.constant 9 : index
    %c896_175 = arith.constant 896 : index
    %124 = vector.load %arg12[%c9_174, %c896_175] : memref<10x1792xf32, #tpu.memory_space<vmem>>, vector<1x896xf32>
    %c1_176 = arith.constant 1 : index
    %c8064_177 = arith.constant 8064 : index
    %125 = vector.load %arg13[%c1_176, %c8064_177] : memref<2x8960xf32, #tpu.memory_space<vmem>>, vector<1x896xf32>
    tpu.vector_store %arg13[%c1_176, %c8064_177], %124 {strides = array<i32>} : memref<2x8960xf32, #tpu.memory_space<vmem>>, vector<1x896xf32>,
    tpu.wait_dma2 semaphore(%arg14 : memref<!tpu.dma_semaphore, #tpu.memory_space<semaphore_mem>>) src(%arg6 : memref<10x8960xf32, #tpu.memory_space<any>>) dst(%arg8 : memref<10x8960xf32, #tpu.memory_space<vmem>>)
    %c0_178 = arith.constant 0 : index
    %c0_179 = arith.constant 0 : index
    %126 = vector.load %arg13[%c0_178, %c0_179] : memref<2x8960xf32, #tpu.memory_space<vmem>>, vector<2x8960xf32>
    %c0_180 = arith.constant 0 : index
    %c0_181 = arith.constant 0 : index
    %127 = vector.load %arg8[%c0_180, %c0_181] : memref<10x8960xf32, #tpu.memory_space<vmem>>, vector<10x8960xf32>
    %cst_182 = arith.constant dense<0.000000e+00> : vector<2x10xf32>
    %128 = tpu.matmul %126, %127, %cst_182 {dimension_numbers = #tpu.dot_dimension_numbers<[1], [1], [0], [0], [0, 0, 1, 0], [], []>} : vector<2x8960xf32>, vector<10x8960xf32>, vector<2x10xf32> -> vector<2x10xf32>
    %c0_183 = arith.constant 0 : index
    %c0_184 = arith.constant 0 : index
    %129 = vector.load %arg5[%c0_183, %c0_184] : memref<1x10xf32, #tpu.memory_space<vmem>>, vector<1x10xf32>
    %130 = vector.broadcast %129 : vector<1x10xf32> to vector<2x10xf32>
    %131 = arith.addf %128, %130 : vector<2x10xf32>
    %cst_185 = arith.constant dense<0xFF800000> : vector<10xf32>
    %132 = vector.multi_reduction <maximumf>, %131, %cst_185 [0] : vector<2x10xf32> to vector<10xf32>
    %133 = vector.shape_cast %132 : vector<10xf32> to vector<1x10xf32>
    %134 = vector.broadcast %133 : vector<1x10xf32> to vector<2x10xf32>
    %135 = arith.subf %131, %134 : vector<2x10xf32>
    %136 = math.exp %135 : vector<2x10xf32>
    %cst_186 = arith.constant dense<0.000000e+00> : vector<10xf32>
    %137 = vector.multi_reduction <add>, %136, %cst_186 [0] : vector<2x10xf32> to vector<10xf32>
    %138 = vector.shape_cast %137 : vector<10xf32> to vector<1x10xf32>
    %139 = math.log %138 : vector<1x10xf32>
    %140 = vector.broadcast %139 : vector<1x10xf32> to vector<2x10xf32>
    %141 = arith.subf %135, %140 : vector<2x10xf32>
    %c0_187 = arith.constant 0 : index
    %c0_188 = arith.constant 0 : index
    %142 = vector.load %arg7[%c0_187, %c0_188] : memref<2x10xf32, #tpu.memory_space<vmem>>, vector<2x10xf32>
    tpu.vector_store %arg7[%c0_187, %c0_188], %141 {strides = array<i32>} : memref<2x10xf32, #tpu.memory_space<vmem>>, vector<2x10xf32>,
    return
  }
}

</mosaic_0001>

<bundles_post_ra>
// kernel: squeeze.1
= control target key start
LH: loop header
LB: loop body
LE: loop exit
PB: predicated region body
PF: predicated region fallthrough
CT: control target
= control target key end

     0   :  { %vm5_vm0 = vcmask 1041409   ;;  %vm21_vm1 = vcmask 31744   ;;  %vm65_vm2 = vcmask 97280   ;;  %vm43_vm3 = vcmask 64512   ;;  %s522_s24 = smov 124   ;;  %s523_s6 = smov 116   ;;  %s830_s0 = inlined_call_operand.vmem [shape: f32[2,28,28], index: 0, kind: input, shape index: {}]   ;;  %s831_s1 = inlined_call_operand.vmem [shape: f32[2,784], index: 1, kind: output, shape index: {}]  }
   0x1   :  { %v423_v0 = vld [vmem:[%s830_s0 + $0x9] sm:$0x1]   ;;  %v431_v6 = vld [vmem:[%s830_s0 + $0x1b] sm:$0x1]   ;;  %v427_v12 = vld [vmem:[%s830_s0 + $0x12] sm:$0x1]  }
   0x2   :  { %v424_v1 = vld [vmem:[%s830_s0 + $0x28] sm:$0x2]   ;;  %v432_v7 = vld [vmem:[%s830_s0 + $0x3a] sm:$0x2]   ;;  %v428_v14 = vld [vmem:[%s830_s0 + $0x31] sm:$0x2]  }
   0x3   :  { %v14_v2 = vsel %vm5_vm0, %v424_v1, %v423_v0  ;;  %v425_v3 = vld [vmem:[%s830_s0 + $0x9] sm:$0x1]   ;;  %v433_v8 = vld [vmem:[%s830_s0 + $0x1b] sm:$0x1]   ;;  %v58_v10 = vsel %vm5_vm0, %v432_v7, %v431_v6  ;;  %v429_v15 = vld [vmem:[%s830_s0 + $0x12] sm:$0x1]   ;;  %v36_v18 = vsel %vm5_vm0, %v428_v14, %v427_v12 }
   0x4   :  { %v426_v4 = vld [vmem:[%s830_s0 + $0x28] sm:$0x2]   ;;  %v434_v11 = vld [vmem:[%s830_s0 + $0x3a] sm:$0x2]   ;;  %v430_v16 = vld [vmem:[%s830_s0 + $0x31] sm:$0x2]  }
   0x5   :  { %v20_v5 = vsel %vm5_vm0, %v426_v4, %v425_v3  ;;  %v64_v13 = vsel %vm5_vm0, %v434_v11, %v433_v8  ;;  %v42_v19 = vsel %vm5_vm0, %v430_v16, %v429_v15  ;;  %vm69_vm4 = vcmask 130048   ;;  %v435_v20 = vld [vmem:[%s830_s0 + $0x4] sm:$0x1]   ;;  %v439_v27 = vld [vmem:[%s830_s0 + $0xd] sm:$0x1]   ;;  %s524_s17 = smov 120  }
   0x6   :  { %v22_v9 = vsel %vm21_vm1, %v20_v5, %v14_v2  ;;  %v66_v17 = vsel %vm65_vm2, %v64_v13, %v58_v10  ;;  %v436_v21 = vld [vmem:[%s830_s0 + $0x23] sm:$0x2]   ;;  %v44_v22 = vsel %vm43_vm3, %v42_v19, %v36_v18  ;;  %vm47_vm5 = vcmask 162816   ;;  %v440_v28 = vld [vmem:[%s830_s0 + $0x2c] sm:$0x2]   ;;  %s525_s28 = smov 112  }
   0x7   :  { %23 = vrot.lane.b32.xlu0 %v22_v9, %s522_s24  ;;  %67 = vrot.lane.b32.xlu1 %v66_v17, %s523_s6  ;;  %v80_v23 = vsel %vm5_vm0, %v436_v21, %v435_v20  ;;  %v437_v24 = vld [vmem:[%s830_s0 + $0x4] sm:$0x1]   ;;  %v441_v29 = vld [vmem:[%s830_s0 + $0xd] sm:$0x1]   ;;  %v101_v31 = vsel %vm5_vm0, %v440_v28, %v439_v27  ;;  %vm25_vm6 = vcmask 195584   ;;  %s526_s4 = smov 108  }
   0x8   :  { %v438_v25 = vld [vmem:[%s830_s0 + $0x23] sm:$0x2]   ;;  %v442_v32 = vld [vmem:[%s830_s0 + $0x2c] sm:$0x2]   ;;  %v443_v33 = vld [vmem:[%s830_s0 + $0x16] sm:$0x1]  }
   0x9   :  { %v86_v26 = vsel %vm5_vm0, %v438_v25, %v437_v24  ;;  %v107_v34 = vsel %vm5_vm0, %v442_v32, %v441_v29  ;;  %v444_v35 = vld [vmem:[%s830_s0 + $0x35] sm:$0x2]   ;;  %v447_v41 = vld [vmem:[%s830_s0 + $0x8] sm:$0x1]   ;;  %v449_v44 = vld [vmem:[%s830_s0 + $0x11] sm:$0x1]  }
   0xa   :  { %v88_v30 = vsel %vm69_vm4, %v86_v26, %v80_v23  ;;  %v445_v36 = vld [vmem:[%s830_s0 + $0x16] sm:$0x1]   ;;  %v109_v38 = vsel %vm47_vm5, %v107_v34, %v101_v31  ;;  %v123_v39 = vsel %vm5_vm0, %v444_v35, %v443_v33  ;;  %v448_v42 = vld [vmem:[%s830_s0 + $0x27] sm:$0x2]   ;;  %v450_v45 = vld [vmem:[%s830_s0 + $0x30] sm:$0x2]  }
   0xb   :  { %45 = vrot.lane.b32.xlu0 %v44_v22, %s524_s17  ;;  %v446_v37 = vld [vmem:[%s830_s0 + $0x35] sm:$0x2]   ;;  %89 = vrot.lane.b32.xlu1 %v88_v30, %s525_s28  ;;  %v145_v46 = vsel %vm5_vm0, %v448_v42, %v447_v41  ;;  %s527_s9 = smov 104   ;;  %v451_v47 = vld [vmem:[%s830_s0 + $0x1a] sm:$0x1]   ;;  %v156_v49 = vsel %vm5_vm0, %v450_v45, %v449_v44  ;;  %s528_s14 = smov 96  }
   0xc   :  { %v129_v40 = vsel %vm5_vm0, %v446_v37, %v445_v36  ;;  %v452_v48 = vld [vmem:[%s830_s0 + $0x39] sm:$0x2]   ;;  %v453_v50 = vld [vmem:[%s830_s0 + $0x3] sm:$0x1]   ;;  %s529_s19 = smov 92   ;;  %s530_s24 = smov 88  }
   0xd   :  { %v131_v43 = vsel %vm25_vm6, %v129_v40, %v123_v39  ;;  %v454_v51 = vld [vmem:[%s830_s0 + $0x22] sm:$0x2]   ;;  %v167_v52 = vsel %vm5_vm0, %v452_v48, %v451_v47  ;;  %v455_v53 = vld [vmem:[%s830_s0 + $0xc] sm:$0x1]   ;;  %v457_v56 = vld [vmem:[%s830_s0 + $0x15] sm:$0x1]  }
   0xe   :  { %v456_v54 = vld [vmem:[%s830_s0 + $0x2b] sm:$0x2]   ;;  %v178_v55 = vsel %vm5_vm0, %v454_v51, %v453_v50  ;;  %v458_v57 = vld [vmem:[%s830_s0 + $0x34] sm:$0x2]   ;;  %s531_s29 = smov 84   ;;  %s532_s5 = smov 80  }
   0xf   :  { %110 = vrot.lane.b32.xlu0 %v109_v38, %s526_s4  ;;  %132 = vrot.lane.b32.xlu1 %v131_v43, %s527_s9  ;;  %v188_v58 = vsel %vm5_vm0, %v456_v54, %v455_v53  ;;  %v459_v59 = vld [vmem:[%s830_s0 + $0x7] sm:$0x1]   ;;  %v199_v61 = vsel %vm5_vm0, %v458_v57, %v457_v56  ;;  %v461_v62 = vld [vmem:[%s830_s0 + $0x10] sm:$0x1]   ;;  %s533_s10 = smov 76   ;;  %s534_s17 = smov 68  }
  0x10   :  { %v460_v60 = vld [vmem:[%s830_s0 + $0x26] sm:$0x2]   ;;  %v462_v63 = vld [vmem:[%s830_s0 + $0x2f] sm:$0x2]   ;;  %v463_v1 = vld [vmem:[%s830_s0 + $0x19] sm:$0x1]  }
  0x11   :  { %v210_v0 = vsel %vm5_vm0, %v460_v60, %v459_v59  ;;  %v464_v2 = vld [vmem:[%s830_s0 + $0x38] sm:$0x2]   ;;  %v221_v3 = vsel %vm5_vm0, %v462_v63, %v461_v62  ;;  %v465_v4 = vld [vmem:[%s830_s0 + $0x2] sm:$0x1]   ;;  %vm7_vm7 = vcmask 228352   ;;  %s539_s15 = smov 48  }
  0x12   :  { %v466_v5 = vld [vmem:[%s830_s0 + $0x21] sm:$0x2]   ;;  %v2_v6 = vld [vmem:[%s830_s0] sm:$0x1]   ;;  %v232_v7 = vsel %vm5_vm0, %v464_v2, %v463_v1  ;;  %v467_v9 = vld [vmem:[%s830_s0 + $0xb] sm:$0x1]  }
  0x13   :  { %146 = vrot.lane.b32.xlu0 %v145_v46, %s528_s14  ;;  %157 = vrot.lane.b32.xlu1 %v156_v49, %s529_s19  ;;  %v422_v8 = vld [vmem:[%s830_s0 + $0x1f] sm:$0x2]   ;;  %v468_v10 = vld [vmem:[%s830_s0 + $0x2a] sm:$0x2]   ;;  %v243_v12 = vsel %vm5_vm0, %v466_v5, %v465_v4  ;;  %s540_s20 = smov 40   ;;  %s541_s25 = smov 36  }
  0x14   :  { %v6_v11 = vsel %vm5_vm0, %v422_v8, %v2_v6  ;;  %v469_v13 = vld [vmem:[%s830_s0 + $0x14] sm:$0x1]   ;;  %v253_v15 = vsel %vm5_vm0, %v468_v10, %v467_v9  ;;  %v471_v16 = vld [vmem:[%s830_s0 + $0x6] sm:$0x1]   ;;  %v473_v19 = vld [vmem:[%s830_s0 + $0xf] sm:$0x1]  }
  0x15   :  { %8 = vst.msk [vmem:[#allocation0] sm:$0x3] %vm7_vm7, %v6_v11   ;;  %v470_v14 = vld [vmem:[%s830_s0 + $0x33] sm:$0x2]   ;;  %v472_v17 = vld [vmem:[%s830_s0 + $0x25] sm:$0x2]  }
  0x16   :  { %v264_v18 = vsel %vm5_vm0, %v470_v14, %v469_v13  ;;  %v474_v20 = vld [vmem:[%s830_s0 + $0x2e] sm:$0x2]   ;;  %v275_v21 = vsel %vm5_vm0, %v472_v17, %v471_v16  ;;  %v475_v22 = vld [vmem:[%s830_s0 + $0x18] sm:$0x1]   ;;  %v477_v25 = vld [vmem:[%s830_s0 + $0x1] sm:$0x1]  }
  0x17   :  { %168 = vrot.lane.b32.xlu0 %v167_v52, %s530_s24  ;;  %179 = vrot.lane.b32.xlu1 %v178_v55, %s531_s29  ;;  %s535_s24 = smov 64   ;;  %s536_s29 = smov 60   ;;  %v476_v23 = vld [vmem:[%s830_s0 + $0x37] sm:$0x2]   ;;  %v286_v24 = vsel %vm5_vm0, %v474_v20, %v473_v19  ;;  %v478_v26 = vld [vmem:[%s830_s0 + $0x20] sm:$0x2]  }
  0x18   :  { %v297_v27 = vsel %vm5_vm0, %v476_v23, %v475_v22  ;;  %v479_v28 = vld [vmem:[%s830_s0 + $0xa] sm:$0x1]   ;;  %v308_v30 = vsel %vm5_vm0, %v478_v26, %v477_v25  ;;  %s542_s30 = smov 32   ;;  %v481_v31 = vld [vmem:[%s830_s0 + $0x13] sm:$0x1]   ;;  %s543_s6 = smov 28  }
  0x19   :  { %v480_v29 = vld [vmem:[%s830_s0 + $0x29] sm:$0x2]   ;;  %v482_v32 = vld [vmem:[%s830_s0 + $0x32] sm:$0x2]   ;;  %v483_v34 = vld [vmem:[%s830_s0 + $0x5] sm:$0x1]  }
  0x1a   :  { %v318_v33 = vsel %vm5_vm0, %v480_v29, %v479_v28  ;;  %v484_v35 = vld [vmem:[%s830_s0 + $0x24] sm:$0x2]   ;;  %v329_v36 = vsel %vm5_vm0, %v482_v32, %v481_v31  ;;  %s544_s11 = smov 24   ;;  %v485_v37 = vld [vmem:[%s830_s0 + $0xe] sm:$0x1]   ;;  %s545_s16 = smov 20  }
  0x1b   :  { %189 = vrot.lane.b32.xlu0 %v188_v58, %s532_s5  ;;  %200 = vrot.lane.b32.xlu1 %v199_v61, %s533_s10  ;;  %s537_s5 = smov 56   ;;  %s538_s10 = smov 52   ;;  %v486_v38 = vld [vmem:[%s830_s0 + $0x2d] sm:$0x2]   ;;  %v340_v39 = vsel %vm5_vm0, %v484_v35, %v483_v34  ;;  %v487_v40 = vld [vmem:[%s830_s0 + $0x17] sm:$0x1]  }
  0x1c   :  { %v488_v41 = vld [vmem:[%s830_s0 + $0x36] sm:$0x2]   ;;  %v351_v42 = vsel %vm5_vm0, %v486_v38, %v485_v37  ;;  %s546_s0 = smov 12   ;;  %s547_s21 = smov 8   ;;  %vm28_vm8 = vcmask 1048544   ;;  %vm72_vm9 = vcmask 1048480  }
  0x1d   :  { %v362_v43 = vsel %vm5_vm0, %v488_v41, %v487_v40  ;;  %s548_s22 = smov 4   ;;  %vm50_vm10 = vcmask 1048512   ;;  %vm94_vm11 = vcmask 1048448   ;;  %vm115_vm12 = vcmask 1048416  }
  0x1e   :  { %vm137_vm13 = vcmask 1048384   ;;  %vm148_vm14 = vcmask 1015552   ;;  %vm159_vm15 = vcmask 982752   ;;  %vm170_vm0 = vcmask 949952  }
  0x1f   :  { %211 = vrot.lane.b32.xlu0 %v210_v0, %s534_s17  ;;  %222 = vrot.lane.b32.xlu1 %v221_v3, %s535_s24  ;;  %vm246_vm7 = vcmask 687552  }
  0x23   :  { %233 = vrot.lane.b32.xlu0 %v232_v7, %s536_s29  ;;  %244 = vrot.lane.b32.xlu1 %v243_v12, %s537_s5 }
  0x27   :  { %254 = vrot.lane.b32.xlu0 %v253_v15, %s538_s10  ;;  %265 = vrot.lane.b32.xlu1 %v264_v18, %s539_s15 }
  0x2b   :  { %276 = vrot.lane.b32.xlu0 %v275_v21, %s540_s20  ;;  %287 = vrot.lane.b32.xlu1 %v286_v24, %s541_s25 }
  0x2f   :  { %298 = vrot.lane.b32.xlu0 %v297_v27, %s542_s30  ;;  %309 = vrot.lane.b32.xlu1 %v308_v30, %s543_s6 }
  0x33   :  { %319 = vrot.lane.b32.xlu0 %v318_v33, %s544_s11  ;;  %330 = vrot.lane.b32.xlu1 %v329_v36, %s545_s16 }
  0x37   :  { %341 = vrot.lane.b32.xlu0 %v340_v39, %s546_s0  ;;  %352 = vrot.lane.b32.xlu1 %v351_v42, %s547_s21 }
  0x3b   :  { %363 = vrot.lane.b32.xlu0 %v362_v43, %s548_s22 }
  0x79   :  { %v24_v44 = vpop.permute.xlu0 %23   ;;  %v68_v45 = vpop.permute.xlu1 %67  }
  0x7a   :  { %27 = vst.msk [vmem:[#allocation0 + $0x10] sm:$0x3] %vm25_vm6, %v24_v44   ;;  %vm235_vm6 = vcmask 720352  }
  0x7b   :  { %30 = vst.msk [vmem:[#allocation0 + $0x8] sm:$0x3] %vm28_vm8, %v24_v44   ;;  %vm256_vm8 = vcmask 654752  }
  0x7c   :  { %71 = vst.msk [vmem:[#allocation0 + $0x30] sm:$0x3] %vm69_vm4, %v68_v45   ;;  %vm213_vm4 = vcmask 785952  }
  0x7d   :  { %74 = vst.msk [vmem:[#allocation0 + $0x28] sm:$0x3] %vm72_vm9, %v68_v45   ;;  %v46_v46 = vpop.permute.xlu0 %45   ;;  %v90_v47 = vpop.permute.xlu1 %89   ;;  %vm267_vm9 = vcmask 621952  }
  0x7e   :  { %49 = vst.msk [vmem:[#allocation0 + $0x20] sm:$0x3] %vm47_vm5, %v46_v46   ;;  %vm224_vm5 = vcmask 753152  }
  0x7f   :  { %52 = vst.msk [vmem:[#allocation0 + $0x18] sm:$0x3] %vm50_vm10, %v46_v46   ;;  %vm278_vm10 = vcmask 556352  }
  0x80   :  { %93 = vst.msk [vmem:[#allocation0 + $0x8] sm:$0x3] %vm65_vm2, %v90_v47   ;;  %vm191_vm2 = vcmask 884352  }
  0x81   :  { %95 = vst.msk [vmem:[#allocation0] sm:$0x3] %vm94_vm11, %v90_v47   ;;  %v111_v48 = vpop.permute.xlu0 %110   ;;  %v133_v50 = vpop.permute.xlu1 %132   ;;  %vm289_vm11 = vcmask 523552  }
  0x82   :  { %114 = vst.msk [vmem:[#allocation0 + $0x18] sm:$0x3] %vm43_vm3, %v111_v48   ;;  %vm202_vm3 = vcmask 851552  }
  0x83   :  { %117 = vst.msk [vmem:[#allocation0 + $0x10] sm:$0x3] %vm115_vm12, %v111_v48   ;;  %v411_v49 = vld [vmem:[#allocation0 + $0x30] sm:$0x3]  ;;  %vm300_vm12 = vcmask 490752  }
  0x84   :  { %494 = vst [vmem:[%s831_s1 + $0xc] sm:$0x3] %v411_v49  ;;  %136 = vst.msk [vmem:[#allocation0 + $0x28] sm:$0x3] %vm21_vm1, %v133_v50   ;;  %vm181_vm1 = vcmask 917152  }
  0x85   :  { %139 = vst.msk [vmem:[#allocation0 + $0x20] sm:$0x3] %vm137_vm13, %v133_v50   ;;  %v147_v51 = vpop.permute.xlu0 %146   ;;  %v158_v52 = vpop.permute.xlu1 %157   ;;  %vm311_vm13 = vcmask 457952  }
  0x86   :  { %150 = vst.msk [vmem:[#allocation0 + $0x8] sm:$0x3] %vm148_vm14, %v147_v51   ;;  %vm321_vm14 = vcmask 425152  }
  0x87   :  { %161 = vst.msk [vmem:[#allocation0 + $0x18] sm:$0x3] %vm159_vm15, %v158_v52   ;;  %vm332_vm15 = vcmask 392352  }
  0x89   :  { %v169_v53 = vpop.permute.xlu0 %168   ;;  %v180_v54 = vpop.permute.xlu1 %179  }
  0x8a   :  { %172 = vst.msk [vmem:[#allocation0 + $0x28] sm:$0x3] %vm170_vm0, %v169_v53   ;;  %vm343_vm0 = vcmask 326752  }
  0x8b   :  { %182 = vst.msk [vmem:[#allocation0] sm:$0x3] %vm181_vm1, %v180_v54   ;;  %vm354_vm1 = vcmask 293952  }
  0x8d   :  { %v190_v55 = vpop.permute.xlu0 %189   ;;  %v201_v56 = vpop.permute.xlu1 %200  }
  0x8e   :  { %193 = vst.msk [vmem:[#allocation0 + $0x10] sm:$0x3] %vm191_vm2, %v190_v55   ;;  %vm365_vm2 = vcmask 261152  }
  0x8f   :  { %204 = vst.msk [vmem:[#allocation0 + $0x20] sm:$0x3] %vm202_vm3, %v201_v56  }
  0x91   :  { %v212_v57 = vpop.permute.xlu0 %211   ;;  %v223_v58 = vpop.permute.xlu1 %222  }
  0x92   :  { %215 = vst.msk [vmem:[#allocation0 + $0x8] sm:$0x3] %vm213_vm4, %v212_v57  }
  0x93   :  { %226 = vst.msk [vmem:[#allocation0 + $0x18] sm:$0x3] %vm224_vm5, %v223_v58  }
  0x95   :  { %v234_v59 = vpop.permute.xlu0 %233   ;;  %v245_v60 = vpop.permute.xlu1 %244  }
  0x96   :  { %237 = vst.msk [vmem:[#allocation0 + $0x28] sm:$0x3] %vm235_vm6, %v234_v59  }
  0x97   :  { %247 = vst.msk [vmem:[#allocation0] sm:$0x3] %vm246_vm7, %v245_v60  }
  0x99   :  { %v255_v61 = vpop.permute.xlu0 %254   ;;  %v266_v62 = vpop.permute.xlu1 %265  }
  0x9a   :  { %258 = vst.msk [vmem:[#allocation0 + $0x10] sm:$0x3] %vm256_vm8, %v255_v61  }
  0x9b   :  { %269 = vst.msk [vmem:[#allocation0 + $0x20] sm:$0x3] %vm267_vm9, %v266_v62  }
  0x9d   :  { %v277_v63 = vpop.permute.xlu0 %276   ;;  %v288_v0 = vpop.permute.xlu1 %287  }
  0x9e   :  { %280 = vst.msk [vmem:[#allocation0 + $0x8] sm:$0x3] %vm278_vm10, %v277_v63  }
  0x9f   :  { %291 = vst.msk [vmem:[#allocation0 + $0x18] sm:$0x3] %vm289_vm11, %v288_v0  }
  0xa1   :  { %v299_v1 = vpop.permute.xlu0 %298   ;;  %v310_v2 = vpop.permute.xlu1 %309  }
  0xa2   :  { %302 = vst.msk [vmem:[#allocation0 + $0x28] sm:$0x3] %vm300_vm12, %v299_v1  }
  0xa3   :  { %312 = vst.msk [vmem:[#allocation0] sm:$0x3] %vm311_vm13, %v310_v2  }
  0xa5   :  { %v320_v3 = vpop.permute.xlu0 %319   ;;  %v331_v4 = vpop.permute.xlu1 %330  }
  0xa6   :  { %323 = vst.msk [vmem:[#allocation0 + $0x10] sm:$0x3] %vm321_vm14, %v320_v3  }
  0xa7   :  { %334 = vst.msk [vmem:[#allocation0 + $0x20] sm:$0x3] %vm332_vm15, %v331_v4  }
  0xa9   :  { %v342_v5 = vpop.permute.xlu0 %341   ;;  %v353_v7 = vpop.permute.xlu1 %352  }
  0xaa   :  { %345 = vst.msk [vmem:[#allocation0 + $0x8] sm:$0x3] %vm343_vm0, %v342_v5   ;;  %v372_v6 = vld [vmem:[#allocation0] sm:$0x3] }
  0xab   :  { %375 = vst [vmem:[%s831_s1] sm:$0x3] %v372_v6  ;;  %356 = vst.msk [vmem:[#allocation0 + $0x18] sm:$0x3] %vm354_vm1, %v353_v7  }
  0xad   :  { %v383_v8 = vld [vmem:[#allocation0 + $0x10] sm:$0x3]  ;;  %v364_v9 = vpop.permute.xlu0 %363  }
  0xae   :  { %490 = vst [vmem:[%s831_s1 + $0x4] sm:$0x3] %v383_v8  ;;  %367 = vst.msk [vmem:[#allocation0 + $0x28] sm:$0x3] %vm365_vm2, %v364_v9   ;;  %v397_v10 = vld [vmem:[#allocation0 + $0x20] sm:$0x3] }
  0xaf   :  { %492 = vst [vmem:[%s831_s1 + $0x8] sm:$0x3] %v397_v10 }
  0xb1   :  { %v377_v11 = vld [vmem:[#allocation0 + $0x8] sm:$0x3] }
  0xb2   :  { %489 = vst [vmem:[%s831_s1 + $0x2] sm:$0x3] %v377_v11  ;;  %v390_v12 = vld [vmem:[#allocation0 + $0x18] sm:$0x3] }
  0xb3   :  { %491 = vst [vmem:[%s831_s1 + $0x6] sm:$0x3] %v390_v12 }
  0xb5   :  { %v404_v13 = vld [vmem:[#allocation0 + $0x28] sm:$0x3] }
  0xb6   :  { %493 = vst [vmem:[%s831_s1 + $0xa] sm:$0x3] %v404_v13 }

// kernel: convnet_forward.1
= control target key start
LH: loop header
LB: loop body
LE: loop exit
PB: predicated region body
PF: predicated region fallthrough
CT: control target
= control target key end

     0   :  { %12 = vsyncpa [#allocation10], 0  ;;  %s6668_s30 = smov 12   ;;  %s6669_s8 = smov 43   ;;  %s8055_s0 = inlined_call_operand.vmem [shape: f32[1,2048], index: 0, kind: input, shape index: {}]   ;;  %s8056_s1 = inlined_call_operand.vmem [shape: f32[5,25], index: 1, kind: input, shape index: {}]   ;;  %s8057_s2 = inlined_call_operand.vmem [shape: f32[5,1], index: 2, kind: input, shape index: {}]   ;;  %s8058_s3 = inlined_call_operand.vmem [shape: f32[10,45], index: 3, kind: input, shape index: {}]   ;;  %s8059_s4 = inlined_call_operand.vmem [shape: f32[10,1], index: 4, kind: input, shape index: {}]   ;;  %s8060_s5 = inlined_call_operand.vmem [shape: f32[1,10], index: 5, kind: input, shape index: {}]   ;;  %s8061_s6 = inlined_call_operand.vmem [shape: f32[10,8960], index: 6, kind: input, shape index: {}]   ;;  %s8062_s7 = inlined_call_operand.hbm [shape: f32[2,10], index: 7, kind: output, shape index: {}]  }
   0x1   :  { %v58_v0 = vld [vmem:[%s8061_s6] sm:$0xff]  ;;  %v60_v1 = vld [vmem:[%s8061_s6 + $0x8] sm:$0xff]  ;;  %v62_v2 = vld [vmem:[%s8061_s6 + $0x10] sm:$0xff] }
   0x2   :  { %59 = vst [vmem:[#allocation2 + $0x2b0] sm:$0xff] %v58_v0  ;;  %61 = vst [vmem:[#allocation2 + $0x3b0] sm:$0xff] %v60_v1  ;;  %v64_v3 = vld [vmem:[%s8061_s6 + $0x18] sm:$0xff]  ;;  %v66_v4 = vld [vmem:[%s8061_s6 + $0x20] sm:$0xff] }
   0x3   :  { %63 = vst [vmem:[#allocation2 + $0x10] sm:$0xff] %v62_v2  ;;  %65 = vst [vmem:[#allocation2 + $0x448] sm:$0xff] %v64_v3  ;;  %v68_v5 = vld [vmem:[%s8061_s6 + $0x28] sm:$0xff]  ;;  %v70_v6 = vld [vmem:[%s8061_s6 + $0x30] sm:$0xff] }
   0x4   :  { %67 = vst [vmem:[#allocation2 + $0x320] sm:$0xff] %v66_v4  ;;  %v72_v7 = vld [vmem:[%s8061_s6 + $0x38] sm:$0xff]  ;;  %69 = vst [vmem:[#allocation2 + $0x438] sm:$0xff] %v68_v5  ;;  %v74_v8 = vld [vmem:[%s8061_s6 + $0x40] sm:$0xff] }
   0x5   :  { %71 = vst [vmem:[#allocation2 + $0x370] sm:$0xff] %v70_v6  ;;  %73 = vst [vmem:[#allocation2 + $0x100] sm:$0xff] %v72_v7  ;;  %v76_v9 = vld [vmem:[%s8061_s6 + $0x48] sm:$0xff]  ;;  %v78_v10 = vld [vmem:[%s8061_s6 + $0x50] sm:$0xff] }
   0x6   :  { %75 = vst [vmem:[#allocation2 + $0x300] sm:$0xff] %v74_v8  ;;  %77 = vst [vmem:[#allocation2 + $0x2f0] sm:$0xff] %v76_v9  ;;  %v80_v11 = vld [vmem:[%s8061_s6 + $0x58] sm:$0xff]  ;;  %v82_v12 = vld [vmem:[%s8061_s6 + $0x60] sm:$0xff] }
   0x7   :  { %79 = vst [vmem:[#allocation2 + $0x290] sm:$0xff] %v78_v10  ;;  %v84_v13 = vld [vmem:[%s8061_s6 + $0x68] sm:$0xff]  ;;  %81 = vst [vmem:[#allocation2 + $0x380] sm:$0xff] %v80_v11  ;;  %v86_v14 = vld [vmem:[%s8061_s6 + $0x70] sm:$0xff] }
   0x8   :  { %83 = vst [vmem:[#allocation2 + $0x50] sm:$0xff] %v82_v12  ;;  %85 = vst [vmem:[#allocation2 + $0x228] sm:$0xff] %v84_v13  ;;  %v88_v15 = vld [vmem:[%s8061_s6 + $0x78] sm:$0xff]  ;;  %v90_v16 = vld [vmem:[%s8061_s6 + $0x80] sm:$0xff] }
   0x9   :  { %87 = vst [vmem:[#allocation2 + $0x40] sm:$0xff] %v86_v14  ;;  %89 = vst [vmem:[#allocation2 + $0xd0] sm:$0xff] %v88_v15  ;;  %v92_v17 = vld [vmem:[%s8061_s6 + $0x88] sm:$0xff]  ;;  %v94_v18 = vld [vmem:[%s8061_s6 + $0x90] sm:$0xff] }
   0xa   :  { %91 = vst [vmem:[#allocation2 + $0x58] sm:$0xff] %v90_v16  ;;  %v96_v19 = vld [vmem:[%s8061_s6 + $0x98] sm:$0xff]  ;;  %93 = vst [vmem:[#allocation2 + $0x158] sm:$0xff] %v92_v17  ;;  %v98_v20 = vld [vmem:[%s8061_s6 + $0xa0] sm:$0xff] }
   0xb   :  { %95 = vst [vmem:[#allocation2 + $0x218] sm:$0xff] %v94_v18  ;;  %97 = vst [vmem:[#allocation2 + $0x98] sm:$0xff] %v96_v19  ;;  %v100_v21 = vld [vmem:[%s8061_s6 + $0xa8] sm:$0xff]  ;;  %v102_v22 = vld [vmem:[%s8061_s6 + $0xb0] sm:$0xff] }
   0xc   :  { %99 = vst [vmem:[#allocation2 + $0x358] sm:$0xff] %v98_v20  ;;  %101 = vst [vmem:[#allocation2 + $0xf0] sm:$0xff] %v100_v21  ;;  %v104_v23 = vld [vmem:[%s8061_s6 + $0xb8] sm:$0xff]  ;;  %v106_v24 = vld [vmem:[%s8061_s6 + $0xc0] sm:$0xff] }
   0xd   :  { %103 = vst [vmem:[#allocation2 + $0x378] sm:$0xff] %v102_v22  ;;  %v108_v25 = vld [vmem:[%s8061_s6 + $0xc8] sm:$0xff]  ;;  %105 = vst [vmem:[#allocation2 + $0x3f0] sm:$0xff] %v104_v23  ;;  %v110_v26 = vld [vmem:[%s8061_s6 + $0xd0] sm:$0xff] }
   0xe   :  { %107 = vst [vmem:[#allocation2 + $0x1b8] sm:$0xff] %v106_v24  ;;  %109 = vst [vmem:[#allocation2 + $0x428] sm:$0xff] %v108_v25  ;;  %v112_v27 = vld [vmem:[%s8061_s6 + $0xd8] sm:$0xff]  ;;  %v114_v28 = vld [vmem:[%s8061_s6 + $0xe0] sm:$0xff] }
   0xf   :  { %111 = vst [vmem:[#allocation2 + $0x3a0] sm:$0xff] %v110_v26  ;;  %113 = vst [vmem:[#allocation2 + $0xa0] sm:$0xff] %v112_v27  ;;  %v116_v29 = vld [vmem:[%s8061_s6 + $0xe8] sm:$0xff]  ;;  %v118_v30 = vld [vmem:[%s8061_s6 + $0xf0] sm:$0xff] }
  0x10   :  { %115 = vst [vmem:[#allocation2 + $0x78] sm:$0xff] %v114_v28  ;;  %v120_v31 = vld [vmem:[%s8061_s6 + $0xf8] sm:$0xff]  ;;  %117 = vst [vmem:[#allocation2 + $0x248] sm:$0xff] %v116_v29  ;;  %v122_v32 = vld [vmem:[%s8061_s6 + $0x100] sm:$0xff] }
  0x11   :  { %119 = vst [vmem:[#allocation2 + $0x398] sm:$0xff] %v118_v30  ;;  %121 = vst [vmem:[#allocation2 + $0x420] sm:$0xff] %v120_v31  ;;  %v124_v33 = vld [vmem:[%s8061_s6 + $0x108] sm:$0xff]  ;;  %v126_v34 = vld [vmem:[%s8061_s6 + $0x110] sm:$0xff] }
  0x12   :  { %123 = vst [vmem:[#allocation2 + $0x60] sm:$0xff] %v122_v32  ;;  %125 = vst [vmem:[#allocation2 + $0x270] sm:$0xff] %v124_v33  ;;  %v128_v35 = vld [vmem:[%s8061_s6 + $0x118] sm:$0xff]  ;;  %v130_v36 = vld [vmem:[%s8061_s6 + $0x120] sm:$0xff] }
  0x13   :  { %127 = vst [vmem:[#allocation2 + $0x168] sm:$0xff] %v126_v34  ;;  %v132_v37 = vld [vmem:[%s8061_s6 + $0x128] sm:$0xff]  ;;  %129 = vst [vmem:[#allocation2 + $0x190] sm:$0xff] %v128_v35  ;;  %v134_v38 = vld [vmem:[%s8061_s6 + $0x130] sm:$0xff] }
  0x14   :  { %131 = vst [vmem:[#allocation2 + $0x1a0] sm:$0xff] %v130_v36  ;;  %133 = vst [vmem:[#allocation2 + $0x318] sm:$0xff] %v132_v37  ;;  %v136_v39 = vld [vmem:[%s8061_s6 + $0x138] sm:$0xff]  ;;  %v138_v40 = vld [vmem:[%s8061_s6 + $0x140] sm:$0xff] }
  0x15   :  { %135 = vst [vmem:[#allocation2 + $0x1e0] sm:$0xff] %v134_v38  ;;  %137 = vst [vmem:[#allocation2 + $0x1f0] sm:$0xff] %v136_v39  ;;  %v140_v41 = vld [vmem:[%s8061_s6 + $0x148] sm:$0xff]  ;;  %v142_v42 = vld [vmem:[%s8061_s6 + $0x150] sm:$0xff] }
  0x16   :  { %139 = vst [vmem:[#allocation2 + $0x2e8] sm:$0xff] %v138_v40  ;;  %v144_v43 = vld [vmem:[%s8061_s6 + $0x158] sm:$0xff]  ;;  %141 = vst [vmem:[#allocation2 + $0x3c0] sm:$0xff] %v140_v41  ;;  %v146_v44 = vld [vmem:[%s8061_s6 + $0x160] sm:$0xff] }
  0x17   :  { %143 = vst [vmem:[#allocation2 + $0x440] sm:$0xff] %v142_v42  ;;  %145 = vst [vmem:[#allocation2 + $0x360] sm:$0xff] %v144_v43  ;;  %v148_v45 = vld [vmem:[%s8061_s6 + $0x168] sm:$0xff]  ;;  %v150_v46 = vld [vmem:[%s8061_s6 + $0x170] sm:$0xff] }
  0x18   :  { %147 = vst [vmem:[#allocation2 + $0x1c8] sm:$0xff] %v146_v44  ;;  %149 = vst [vmem:[#allocation2 + $0x250] sm:$0xff] %v148_v45  ;;  %v152_v47 = vld [vmem:[%s8061_s6 + $0x178] sm:$0xff]  ;;  %v154_v48 = vld [vmem:[%s8061_s6 + $0x180] sm:$0xff] }
  0x19   :  { %151 = vst [vmem:[#allocation2 + $0x348] sm:$0xff] %v150_v46  ;;  %v156_v49 = vld [vmem:[%s8061_s6 + $0x188] sm:$0xff]  ;;  %153 = vst [vmem:[#allocation2 + $0x400] sm:$0xff] %v152_v47  ;;  %v158_v50 = vld [vmem:[%s8061_s6 + $0x190] sm:$0xff] }
  0x1a   :  { %155 = vst [vmem:[#allocation2 + $0x2b8] sm:$0xff] %v154_v48  ;;  %157 = vst [vmem:[#allocation2 + $0xb8] sm:$0xff] %v156_v49  ;;  %v160_v51 = vld [vmem:[%s8061_s6 + $0x198] sm:$0xff]  ;;  %v162_v52 = vld [vmem:[%s8061_s6 + $0x1a0] sm:$0xff] }
  0x1b   :  { %159 = vst [vmem:[#allocation2 + $0x3e8] sm:$0xff] %v158_v50  ;;  %161 = vst [vmem:[#allocation2 + $0x330] sm:$0xff] %v160_v51  ;;  %v164_v53 = vld [vmem:[%s8061_s6 + $0x1a8] sm:$0xff]  ;;  %v166_v54 = vld [vmem:[%s8061_s6 + $0x1b0] sm:$0xff] }
  0x1c   :  { %163 = vst [vmem:[#allocation2 + $0x240] sm:$0xff] %v162_v52  ;;  %v168_v55 = vld [vmem:[%s8061_s6 + $0x1b8] sm:$0xff]  ;;  %165 = vst [vmem:[#allocation2 + $0x328] sm:$0xff] %v164_v53  ;;  %v170_v56 = vld [vmem:[%s8061_s6 + $0x1c0] sm:$0xff] }
  0x1d   :  { %167 = vst [vmem:[#allocation2 + $0x90] sm:$0xff] %v166_v54  ;;  %169 = vst [vmem:[#allocation2 + $0x1b0] sm:$0xff] %v168_v55  ;;  %v172_v57 = vld [vmem:[%s8061_s6 + $0x1c8] sm:$0xff]  ;;  %v174_v58 = vld [vmem:[%s8061_s6 + $0x1d0] sm:$0xff] }
  0x1e   :  { %171 = vst [vmem:[#allocation2 + $0x308] sm:$0xff] %v170_v56  ;;  %173 = vst [vmem:[#allocation2 + $0x278] sm:$0xff] %v172_v57  ;;  %v176_v59 = vld [vmem:[%s8061_s6 + $0x1d8] sm:$0xff]  ;;  %v178_v60 = vld [vmem:[%s8061_s6 + $0x1e0] sm:$0xff] }
  0x1f   :  { %175 = vst [vmem:[#allocation2 + $0x280] sm:$0xff] %v174_v58  ;;  %v180_v61 = vld [vmem:[%s8061_s6 + $0x1e8] sm:$0xff]  ;;  %177 = vst [vmem:[#allocation2 + $0x2e0] sm:$0xff] %v176_v59  ;;  %v182_v62 = vld [vmem:[%s8061_s6 + $0x1f0] sm:$0xff] }
  0x20   :  { %179 = vst [vmem:[#allocation2 + $0x118] sm:$0xff] %v178_v60  ;;  %181 = vst [vmem:[#allocation2 + $0x2c0] sm:$0xff] %v180_v61  ;;  %v184_v63 = vld [vmem:[%s8061_s6 + $0x1f8] sm:$0xff]  ;;  %v186_v0 = vld [vmem:[%s8061_s6 + $0x200] sm:$0xff] }
  0x21   :  { %183 = vst [vmem:[#allocation2 + $0x3b8] sm:$0xff] %v182_v62  ;;  %185 = vst [vmem:[#allocation2 + $0x410] sm:$0xff] %v184_v63  ;;  %v188_v1 = vld [vmem:[%s8061_s6 + $0x208] sm:$0xff]  ;;  %v190_v2 = vld [vmem:[%s8061_s6 + $0x210] sm:$0xff] }
  0x22   :  { %187 = vst [vmem:[#allocation2 + $0x368] sm:$0xff] %v186_v0  ;;  %v192_v3 = vld [vmem:[%s8061_s6 + $0x218] sm:$0xff]  ;;  %189 = vst [vmem:[#allocation2 + $0x268] sm:$0xff] %v188_v1  ;;  %v194_v4 = vld [vmem:[%s8061_s6 + $0x220] sm:$0xff] }
  0x23   :  { %191 = vst [vmem:[#allocation2 + $0x1f8] sm:$0xff] %v190_v2  ;;  %193 = vst [vmem:[#allocation2 + $0x198] sm:$0xff] %v192_v3  ;;  %v196_v5 = vld [vmem:[%s8061_s6 + $0x228] sm:$0xff]  ;;  %v198_v6 = vld [vmem:[%s8061_s6 + $0x230] sm:$0xff] }
  0x24   :  { %195 = vst [vmem:[#allocation2 + $0x138] sm:$0xff] %v194_v4  ;;  %197 = vst [vmem:[#allocation2 + $0xa8] sm:$0xff] %v196_v5  ;;  %v200_v7 = vld [vmem:[%s8061_s6 + $0x238] sm:$0xff]  ;;  %v202_v8 = vld [vmem:[%s8061_s6 + $0x240] sm:$0xff] }
  0x25   :  { %199 = vst [vmem:[#allocation2 + $0x418] sm:$0xff] %v198_v6  ;;  %v204_v9 = vld [vmem:[%s8061_s6 + $0x248] sm:$0xff]  ;;  %201 = vst [vmem:[#allocation2 + $0x120] sm:$0xff] %v200_v7  ;;  %v206_v10 = vld [vmem:[%s8061_s6 + $0x250] sm:$0xff] }
  0x26   :  { %203 = vst [vmem:[#allocation2 + $0x88] sm:$0xff] %v202_v8  ;;  %205 = vst [vmem:[#allocation2 + $0x2a0] sm:$0xff] %v204_v9  ;;  %v208_v11 = vld [vmem:[%s8061_s6 + $0x258] sm:$0xff]  ;;  %v210_v12 = vld [vmem:[%s8061_s6 + $0x260] sm:$0xff] }
  0x27   :  { %207 = vst [vmem:[#allocation2 + $0x128] sm:$0xff] %v206_v10  ;;  %209 = vst [vmem:[#allocation2 + $0x310] sm:$0xff] %v208_v11  ;;  %v212_v13 = vld [vmem:[%s8061_s6 + $0x268] sm:$0xff]  ;;  %v214_v14 = vld [vmem:[%s8061_s6 + $0x270] sm:$0xff] }
  0x28   :  { %211 = vst [vmem:[#allocation2 + $0x260] sm:$0xff] %v210_v12  ;;  %v216_v15 = vld [vmem:[%s8061_s6 + $0x278] sm:$0xff]  ;;  %213 = vst [vmem:[#allocation2 + $0x220] sm:$0xff] %v212_v13  ;;  %v218_v16 = vld [vmem:[%s8061_s6 + $0x280] sm:$0xff]  ;;  %v350_v13 = vlaneseq }
  0x29   :  { %215 = vst [vmem:[#allocation2 + $0x140] sm:$0xff] %v214_v14  ;;  %217 = vst [vmem:[#allocation2 + $0x2d8] sm:$0xff] %v216_v15  ;;  %v220_v17 = vld [vmem:[%s8061_s6 + $0x288] sm:$0xff]  ;;  %v222_v18 = vld [vmem:[%s8061_s6 + $0x290] sm:$0xff] }
  0x2a   :  { %219 = vst [vmem:[#allocation2 + $0xd8] sm:$0xff] %v218_v16  ;;  %221 = vst [vmem:[#allocation2 + $0xf8] sm:$0xff] %v220_v17  ;;  %v224_v19 = vld [vmem:[%s8061_s6 + $0x298] sm:$0xff]  ;;  %v226_v20 = vld [vmem:[%s8061_s6 + $0x2a0] sm:$0xff]  ;;  %vm7172_vm0 = vcmp.lt.s32.totalorder %v350_v13, 896 }
  0x2b   :  { %223 = vst [vmem:[#allocation2 + $0x3d0] sm:$0xff] %v222_v18  ;;  %v228_v21 = vld [vmem:[%s8061_s6 + $0x2a8] sm:$0xff]  ;;  %225 = vst [vmem:[#allocation2 + $0x170] sm:$0xff] %v224_v19  ;;  %v230_v22 = vld [vmem:[%s8061_s6 + $0x2b0] sm:$0xff] }
  0x2c   :  { %227 = vst [vmem:[#allocation2 + $0x200] sm:$0xff] %v226_v20  ;;  %229 = vst [vmem:[#allocation2 + $0x148] sm:$0xff] %v228_v21  ;;  %v232_v23 = vld [vmem:[%s8061_s6 + $0x2b8] sm:$0xff]  ;;  %v234_v24 = vld [vmem:[%s8061_s6 + $0x2c0] sm:$0xff] }
  0x2d   :  { %231 = vst [vmem:[#allocation2 + $0x210] sm:$0xff] %v230_v22  ;;  %233 = vst [vmem:[#allocation2 + $0x340] sm:$0xff] %v232_v23  ;;  %v236_v25 = vld [vmem:[%s8061_s6 + $0x2c8] sm:$0xff]  ;;  %v238_v26 = vld [vmem:[%s8061_s6 + $0x2d0] sm:$0xff] }
  0x2e   :  { %235 = vst [vmem:[#allocation2 + $0x338] sm:$0xff] %v234_v24  ;;  %v240_v27 = vld [vmem:[%s8061_s6 + $0x2d8] sm:$0xff]  ;;  %237 = vst [vmem:[#allocation2 + $0x8] sm:$0xff] %v236_v25  ;;  %v242_v28 = vld [vmem:[%s8061_s6 + $0x2e0] sm:$0xff] }
  0x2f   :  { %239 = vst [vmem:[#allocation2 + $0x2d0] sm:$0xff] %v238_v26  ;;  %241 = vst [vmem:[#allocation2 + $0x48] sm:$0xff] %v240_v27  ;;  %v244_v29 = vld [vmem:[%s8061_s6 + $0x2e8] sm:$0xff]  ;;  %v246_v30 = vld [vmem:[%s8061_s6 + $0x2f0] sm:$0xff] }
  0x30   :  { %243 = vst [vmem:[#allocation2 + $0x2f8] sm:$0xff] %v242_v28  ;;  %245 = vst [vmem:[#allocation2 + $0x230] sm:$0xff] %v244_v29  ;;  %v248_v31 = vld [vmem:[%s8061_s6 + $0x2f8] sm:$0xff]  ;;  %v250_v32 = vld [vmem:[%s8061_s6 + $0x300] sm:$0xff] }
  0x31   :  { %247 = vst [vmem:[#allocation2 + $0x298] sm:$0xff] %v246_v30  ;;  %v252_v33 = vld [vmem:[%s8061_s6 + $0x308] sm:$0xff]  ;;  %249 = vst [vmem:[#allocation2 + $0x408] sm:$0xff] %v248_v31  ;;  %v254_v34 = vld [vmem:[%s8061_s6 + $0x310] sm:$0xff] }
  0x32   :  { %251 = vst [vmem:[#allocation2 + $0x458] sm:$0xff] %v250_v32  ;;  %253 = vst [vmem:[#allocation2 + $0x3f8] sm:$0xff] %v252_v33  ;;  %v256_v35 = vld [vmem:[%s8061_s6 + $0x318] sm:$0xff]  ;;  %v258_v36 = vld [vmem:[%s8061_s6 + $0x320] sm:$0xff] }
  0x33   :  { %255 = vst [vmem:[#allocation2 + $0x38] sm:$0xff] %v254_v34  ;;  %257 = vst [vmem:[#allocation2 + $0x3d8] sm:$0xff] %v256_v35  ;;  %v260_v37 = vld [vmem:[%s8061_s6 + $0x328] sm:$0xff]  ;;  %v262_v38 = vld [vmem:[%s8061_s6 + $0x330] sm:$0xff] }
  0x34   :  { %259 = vst [vmem:[#allocation2 + $0xc0] sm:$0xff] %v258_v36  ;;  %v264_v39 = vld [vmem:[%s8061_s6 + $0x338] sm:$0xff]  ;;  %261 = vst [vmem:[#allocation2 + $0x110] sm:$0xff] %v260_v37  ;;  %v266_v40 = vld [vmem:[%s8061_s6 + $0x340] sm:$0xff] }
  0x35   :  { %263 = vst [vmem:[#allocation2 + $0x20] sm:$0xff] %v262_v38  ;;  %265 = vst [vmem:[#allocation2 + $0x3e0] sm:$0xff] %v264_v39  ;;  %v268_v41 = vld [vmem:[%s8061_s6 + $0x348] sm:$0xff]  ;;  %v270_v42 = vld [vmem:[%s8061_s6 + $0x350] sm:$0xff] }
  0x36   :  { %267 = vst [vmem:[#allocation2 + $0x388] sm:$0xff] %v266_v40  ;;  %269 = vst [vmem:[#allocation2 + $0x70] sm:$0xff] %v268_v41  ;;  %v272_v43 = vld [vmem:[%s8061_s6 + $0x358] sm:$0xff]  ;;  %v274_v44 = vld [vmem:[%s8061_s6 + $0x360] sm:$0xff] }
  0x37   :  { %271 = vst [vmem:[#allocation2 + $0x3c8] sm:$0xff] %v270_v42  ;;  %v276_v45 = vld [vmem:[%s8061_s6 + $0x368] sm:$0xff]  ;;  %273 = vst [vmem:[#allocation2 + $0x3a8] sm:$0xff] %v272_v43  ;;  %v278_v46 = vld [vmem:[%s8061_s6 + $0x370] sm:$0xff] }
  0x38   :  { %275 = vst [vmem:[#allocation2 + $0x1c0] sm:$0xff] %v274_v44  ;;  %277 = vst [vmem:[#allocation2 + $0xc8] sm:$0xff] %v276_v45  ;;  %v280_v47 = vld [vmem:[%s8061_s6 + $0x378] sm:$0xff]  ;;  %v282_v48 = vld [vmem:[%s8061_s6 + $0x380] sm:$0xff] }
  0x39   :  { %279 = vst [vmem:[#allocation2 + $0xe0] sm:$0xff] %v278_v46  ;;  %281 = vst [vmem:[#allocation2 + $0xe8] sm:$0xff] %v280_v47  ;;  %v284_v49 = vld [vmem:[%s8061_s6 + $0x388] sm:$0xff]  ;;  %v286_v50 = vld [vmem:[%s8061_s6 + $0x390] sm:$0xff] }
  0x3a   :  { %283 = vst [vmem:[#allocation2 + $0x430] sm:$0xff] %v282_v48  ;;  %v288_v51 = vld [vmem:[%s8061_s6 + $0x398] sm:$0xff]  ;;  %285 = vst [vmem:[#allocation2 + $0x28] sm:$0xff] %v284_v49  ;;  %v290_v52 = vld [vmem:[%s8061_s6 + $0x3a0] sm:$0xff] }
  0x3b   :  { %287 = vst [vmem:[#allocation2 + $0x350] sm:$0xff] %v286_v50  ;;  %289 = vst [vmem:[#allocation2 + $0x160] sm:$0xff] %v288_v51  ;;  %v292_v53 = vld [vmem:[%s8061_s6 + $0x3a8] sm:$0xff]  ;;  %v294_v54 = vld [vmem:[%s8061_s6 + $0x3b0] sm:$0xff] }
  0x3c   :  { %291 = vst [vmem:[#allocation2 + $0x450] sm:$0xff] %v290_v52  ;;  %293 = vst [vmem:[#allocation2 + $0x80] sm:$0xff] %v292_v53  ;;  %v296_v55 = vld [vmem:[%s8061_s6 + $0x3b8] sm:$0xff]  ;;  %v298_v56 = vld [vmem:[%s8061_s6 + $0x3c0] sm:$0xff] }
  0x3d   :  { %295 = vst [vmem:[#allocation2 + $0x258] sm:$0xff] %v294_v54  ;;  %v300_v57 = vld [vmem:[%s8061_s6 + $0x3c8] sm:$0xff]  ;;  %297 = vst [vmem:[#allocation2 + $0x390] sm:$0xff] %v296_v55  ;;  %v302_v58 = vld [vmem:[%s8061_s6 + $0x3d0] sm:$0xff] }
  0x3e   :  { %299 = vst [vmem:[#allocation2 + $0x130] sm:$0xff] %v298_v56  ;;  %301 = vst [vmem:[#allocation2 + $0x1e8] sm:$0xff] %v300_v57  ;;  %v304_v59 = vld [vmem:[%s8061_s6 + $0x3d8] sm:$0xff]  ;;  %v306_v60 = vld [vmem:[%s8061_s6 + $0x3e0] sm:$0xff] }
  0x3f   :  { %303 = vst [vmem:[#allocation2 + $0x208] sm:$0xff] %v302_v58  ;;  %305 = vst [vmem:[#allocation2 + $0xb0] sm:$0xff] %v304_v59  ;;  %v308_v61 = vld [vmem:[%s8061_s6 + $0x3e8] sm:$0xff]  ;;  %v310_v62 = vld [vmem:[%s8061_s6 + $0x3f0] sm:$0xff] }
  0x40   :  { %307 = vst [vmem:[#allocation2 + $0x68] sm:$0xff] %v306_v60  ;;  %v312_v63 = vld [vmem:[%s8061_s6 + $0x3f8] sm:$0xff]  ;;  %309 = vst [vmem:[#allocation2 + $0x18] sm:$0xff] %v308_v61  ;;  %v314_v0 = vld [vmem:[%s8061_s6 + $0x400] sm:$0xff] }
  0x41   :  { %311 = vst [vmem:[#allocation2 + $0x180] sm:$0xff] %v310_v62  ;;  %313 = vst [vmem:[#allocation2 + $0x1d0] sm:$0xff] %v312_v63  ;;  %v316_v1 = vld [vmem:[%s8061_s6 + $0x408] sm:$0xff]  ;;  %v318_v2 = vld [vmem:[%s8061_s6 + $0x410] sm:$0xff] }
  0x42   :  { %315 = vst [vmem:[#allocation2 + $0x1d8] sm:$0xff] %v314_v0  ;;  %317 = vst [vmem:[#allocation2 + $0x288] sm:$0xff] %v316_v1  ;;  %v320_v3 = vld [vmem:[%s8061_s6 + $0x418] sm:$0xff]  ;;  %v322_v4 = vld [vmem:[%s8061_s6 + $0x420] sm:$0xff] }
  0x43   :  { %319 = vst [vmem:[#allocation2 + $0x108] sm:$0xff] %v318_v2  ;;  %v324_v5 = vld [vmem:[%s8061_s6 + $0x428] sm:$0xff]  ;;  %321 = vst [vmem:[#allocation2 + $0x1a8] sm:$0xff] %v320_v3  ;;  %v326_v6 = vld [vmem:[%s8061_s6 + $0x430] sm:$0xff] }
  0x44   :  { %323 = vst [vmem:[#allocation2] sm:$0xff] %v322_v4  ;;  %325 = vst [vmem:[#allocation2 + $0x178] sm:$0xff] %v324_v5  ;;  %v328_v7 = vld [vmem:[%s8061_s6 + $0x438] sm:$0xff]  ;;  %v330_v8 = vld [vmem:[%s8061_s6 + $0x440] sm:$0xff] }
  0x45   :  { %327 = vst [vmem:[#allocation2 + $0x238] sm:$0xff] %v326_v6  ;;  %329 = vst [vmem:[#allocation2 + $0x2c8] sm:$0xff] %v328_v7  ;;  %v332_v9 = vld [vmem:[%s8061_s6 + $0x448] sm:$0xff]  ;;  %v334_v10 = vld [vmem:[%s8061_s6 + $0x450] sm:$0xff] }
  0x46   :  { %331 = vst [vmem:[#allocation2 + $0x2a8] sm:$0xff] %v330_v8  ;;  %v336_v11 = vld [vmem:[%s8061_s6 + $0x458] sm:$0xff]  ;;  %333 = vst [vmem:[#allocation2 + $0x150] sm:$0xff] %v332_v9  ;;  %v7160_v12 = vld [vmem:[%s8055_s0] sm:$0xff] }
  0x47   :  { %335 = vst [vmem:[#allocation2 + $0x188] sm:$0xff] %v334_v10  ;;  %337 = vst [vmem:[#allocation2 + $0x30] sm:$0xff] %v336_v11  ;;  %868 = vrot.lane.b32.xlu0 %v7160_v12, %s6668_s30  ;;  %692 = vrot.lane.b32.xlu1 %v7160_v12, %s6669_s8  ;;  %v7169_v14 = vld [vmem:[%s8055_s0 + $0x8] sm:$0xff] }
  0x48   :  { %348 = vst [vmem:[#allocation3] ss:$8 sm:$0xf] %v7160_v12  ;;  %349 = vst [vmem:[#allocation3] ss:$8 sm:$0xf0] %v7160_v12 }
  0x49   :  { %345 = vsyncadd [#allocation8], 17920  ;;  %355 = vst.msk [vmem:[#allocation3 + $0x40] ss:$8 sm:$0xf] %vm7172_vm0, %v7169_v14  ;;  %s6670_s0 = smov 42  }
  0x4a   :  { %356 = vst.msk [vmem:[#allocation3 + $0x40] ss:$8 sm:$0x70] %vm7172_vm0, %v7169_v14  ;;  %s6671_s10 = smov 41   ;;  %s6672_s11 = smov 40   ;;  %v6692_v16 = vmov 0.0  }
  0x4b   :  { %870 = vrot.lane.b32.xlu0 %v7169_v14, %s6668_s30  ;;  %694 = vrot.lane.b32.xlu1 %v7169_v14, %s6669_s8  ;;  %s6673_s12 = smov 16   ;;  %s6674_s13 = smov 15   ;;  %vm875_vm1 = vcmask 97280   ;;  %vm367_vm2 = vcmask 1046528   ;;  %vm699_vm3 = vcmask 351232   ;;  %vm721_vm4 = vcmask 343040  }
  0x4c   :  { %s6675_s14 = smov 14   ;;  %s6676_s15 = smov 13   ;;  %1067 = vmatprep.mubr.f32.mxu0 %v6692_v16  ;;  %1138 = vmatprep.mubr.f32.mxu1 %v6692_v16  ;;  %v947_v35 = vld [vmem:[%s8057_s2] sm:$0x1f]  ;;  %v6693_v36 = vmov 0   ;;  %vm743_vm5 = vcmask 334848  }
  0x4d   :  { %s6677_s16 = smov 97   ;;  %s6678_s17 = smov 96   ;;  %6619 = vset.pattern.permute.xlu0 %v6693_v36  ;;  %6620 = vset.pattern.permute.xlu1 %v6693_v36  ;;  %vm957_vm6 = vcmask 1040384   ;;  %vm765_vm7 = vcmask 326656   ;;  %vm787_vm8 = vcmask 130048   ;;  %vm809_vm9 = vcmask 121856  }
  0x4e   :  { %s6679_s18 = smov 72   ;;  %s6680_s19 = smov 71   ;;  %vm831_vm10 = vcmask 113664   ;;  %vm853_vm11 = vcmask 105472   ;;  %vm523_vm12 = vcmask 793600   ;;  %vm545_vm13 = vcmask 785408  }
  0x4f   :  { %714 = vrot.lane.b32.xlu0 %v7160_v12, %s6670_s0  ;;  %716 = vrot.lane.b32.xlu1 %v7169_v14, %s6670_s0  ;;  %s6681_s20 = smov 70   ;;  %s6682_s21 = smov 69   ;;  %vm567_vm14 = vcmask 588800   ;;  %vm589_vm15 = vcmask 580608  }
  0x50   :  { %s6683_s22 = smov 68   ;;  %s6684_s23 = smov 44  }
  0x51   :  { %s6685_s24 = smov 127   ;;  %s6686_s25 = smov 126  }
  0x52   :  { %s6687_s26 = smov 125   ;;  %s6688_s27 = smov 124  }
  0x53   :  { %736 = vrot.lane.b32.xlu0 %v7160_v12, %s6671_s10  ;;  %738 = vrot.lane.b32.xlu1 %v7169_v14, %s6671_s10  ;;  %s6689_s28 = smov 100   ;;  %s6690_s29 = smov 99  }
  0x54   :  { %s6691_s30 = smov 98  }
  0x57   :  { %758 = vrot.lane.b32.xlu0 %v7160_v12, %s6672_s11  ;;  %760 = vrot.lane.b32.xlu1 %v7169_v14, %s6672_s11 }
  0x5b   :  { %780 = vrot.lane.b32.xlu0 %v7160_v12, %s6673_s12  ;;  %782 = vrot.lane.b32.xlu1 %v7169_v14, %s6673_s12 }
  0x5f   :  { %802 = vrot.lane.b32.xlu0 %v7160_v12, %s6674_s13  ;;  %804 = vrot.lane.b32.xlu1 %v7169_v14, %s6674_s13 }
  0x63   :  { %824 = vrot.lane.b32.xlu0 %v7160_v12, %s6675_s14  ;;  %826 = vrot.lane.b32.xlu1 %v7169_v14, %s6675_s14 }
  0x67   :  { %846 = vrot.lane.b32.xlu0 %v7160_v12, %s6676_s15  ;;  %848 = vrot.lane.b32.xlu1 %v7169_v14, %s6676_s15 }
  0x6b   :  { %518 = vrot.lane.b32.xlu1 %v7169_v14, %s6677_s16  ;;  %516 = vrot.lane.b32.xlu0 %v7160_v12, %s6677_s16 }
  0x6f   :  { %540 = vrot.lane.b32.xlu1 %v7169_v14, %s6678_s17  ;;  %538 = vrot.lane.b32.xlu0 %v7160_v12, %s6678_s17 }
  0x73   :  { %562 = vrot.lane.b32.xlu1 %v7169_v14, %s6679_s18  ;;  %560 = vrot.lane.b32.xlu0 %v7160_v12, %s6679_s18 }
  0x77   :  { %584 = vrot.lane.b32.xlu1 %v7169_v14, %s6680_s19  ;;  %582 = vrot.lane.b32.xlu0 %v7160_v12, %s6680_s19 }
  0x7b   :  { %606 = vrot.lane.b32.xlu1 %v7169_v14, %s6681_s20  ;;  %604 = vrot.lane.b32.xlu0 %v7160_v12, %s6681_s20 }
  0x7f   :  { %628 = vrot.lane.b32.xlu1 %v7169_v14, %s6682_s21  ;;  %626 = vrot.lane.b32.xlu0 %v7160_v12, %s6682_s21 }
  0x83   :  { %650 = vrot.lane.b32.xlu1 %v7169_v14, %s6683_s22  ;;  %648 = vrot.lane.b32.xlu0 %v7160_v12, %s6683_s22 }
  0x87   :  { %672 = vrot.lane.b32.xlu1 %v7169_v14, %s6684_s23  ;;  %670 = vrot.lane.b32.xlu0 %v7160_v12, %s6684_s23 }
  0x8b   :  { %363 = vrot.lane.b32.xlu1 %v7169_v14, %s6685_s24  ;;  %361 = vrot.lane.b32.xlu0 %v7160_v12, %s6685_s24 }
  0x8f   :  { %386 = vrot.lane.b32.xlu1 %v7169_v14, %s6686_s25  ;;  %384 = vrot.lane.b32.xlu0 %v7160_v12, %s6686_s25 }
  0x93   :  { %408 = vrot.lane.b32.xlu1 %v7169_v14, %s6687_s26  ;;  %406 = vrot.lane.b32.xlu0 %v7160_v12, %s6687_s26 }
  0x97   :  { %430 = vrot.lane.b32.xlu1 %v7169_v14, %s6688_s27  ;;  %428 = vrot.lane.b32.xlu0 %v7160_v12, %s6688_s27 }
  0x9b   :  { %452 = vrot.lane.b32.xlu1 %v7169_v14, %s6689_s28  ;;  %450 = vrot.lane.b32.xlu0 %v7160_v12, %s6689_s28 }
  0x9f   :  { %474 = vrot.lane.b32.xlu1 %v7169_v14, %s6690_s29  ;;  %472 = vrot.lane.b32.xlu0 %v7160_v12, %s6690_s29 }
  0xa3   :  { %496 = vrot.lane.b32.xlu1 %v7169_v14, %s6691_s30  ;;  %494 = vrot.lane.b32.xlu0 %v7160_v12, %s6691_s30 }
  0xa7   :  { %950 = vperm.xlu0 %6619, %v947_v35  }
  0xb9   :  { %v869_v17 = vpop.permute.xlu0 %868  ;;  %v693_v18 = vpop.permute.xlu1 %692 }
  0xba   :  { %v872_v21 = vrot.slane %v869_v17, 1  ;;  %v696_v22 = vrot.slane %v693_v18, 1 }
  0xbd   :  { %v871_v19 = vpop.permute.xlu0 %870  ;;  %v695_v20 = vpop.permute.xlu1 %694 }
  0xbe   :  { %v873_v23 = vrot.slane %v871_v19, 1  ;;  %v697_v24 = vrot.slane %v695_v20, 1 }
  0xc0   :  { %v874_v25 = vsel %vm367_vm2, %v872_v21, %v873_v23  ;;  %v877_v26 = vsel %vm875_vm1, %v871_v19, %v873_v23  ;;  %v698_v27 = vsel %vm367_vm2, %v696_v22, %v697_v24  ;;  %v701_v28 = vsel %vm699_vm3, %v695_v20, %v697_v24 }
  0xc1   :  { %v876_v29 = vsel %vm875_vm1, %v869_v17, %v874_v25  ;;  %884 = vst.msk [vmem:[#allocation3 + $0x1a8] ss:$8 sm:$0xf] %vm7172_vm0, %v877_v26  ;;  %885 = vst.msk [vmem:[#allocation3 + $0x1a8] ss:$8 sm:$0x70] %vm7172_vm0, %v877_v26  ;;  %v700_v30 = vsel %vm699_vm3, %v693_v18, %v698_v27  ;;  %v715_v31 = vpop.permute.xlu0 %714  ;;  %v717_v32 = vpop.permute.xlu1 %716 }
  0xc2   :  { %708 = vst.msk [vmem:[#allocation3 + $0x130] ss:$8 sm:$0xf] %vm7172_vm0, %v701_v28  ;;  %709 = vst.msk [vmem:[#allocation3 + $0x130] ss:$8 sm:$0x70] %vm7172_vm0, %v701_v28 }
  0xc3   :  { %881 = vst [vmem:[#allocation3 + $0x168] ss:$8 sm:$0xf] %v876_v29  ;;  %882 = vst [vmem:[#allocation3 + $0x168] ss:$8 sm:$0xf0] %v876_v29 }
  0xc4   :  { %705 = vst [vmem:[#allocation3 + $0xf0] ss:$8 sm:$0xf] %v700_v30  ;;  %706 = vst [vmem:[#allocation3 + $0xf0] ss:$8 sm:$0xf0] %v700_v30 }
  0xc5   :  { %v718_v33 = vrot.slane %v715_v31, 1  ;;  %v719_v34 = vrot.slane %v717_v32, 1  ;;  %v737_v40 = vpop.permute.xlu0 %736  ;;  %v739_v41 = vpop.permute.xlu1 %738  ;;  %vm611_vm1 = vcmask 572416   ;;  %vm633_vm3 = vcmask 564224  }
  0xc6   :  { %v740_v42 = vrot.slane %v737_v40, 1  ;;  %v741_v43 = vrot.slane %v739_v41, 1 }
  0xc7   :  { %v720_v37 = vsel %vm367_vm2, %v718_v33, %v719_v34  ;;  %v723_v38 = vsel %vm721_vm4, %v717_v32, %v719_v34 }
  0xc8   :  { %v722_v39 = vsel %vm721_vm4, %v715_v31, %v720_v37  ;;  %730 = vst.msk [vmem:[#allocation3 + $0x131] ss:$8 sm:$0xf] %vm7172_vm0, %v723_v38  ;;  %731 = vst.msk [vmem:[#allocation3 + $0x131] ss:$8 sm:$0x70] %vm7172_vm0, %v723_v38  ;;  %v742_v44 = vsel %vm367_vm2, %v740_v42, %v741_v43  ;;  %v745_v45 = vsel %vm743_vm5, %v739_v41, %v741_v43 }
  0xc9   :  { %727 = vst [vmem:[#allocation3 + $0xf1] ss:$8 sm:$0xf] %v722_v39  ;;  %728 = vst [vmem:[#allocation3 + $0xf1] ss:$8 sm:$0xf0] %v722_v39  ;;  %v744_v46 = vsel %vm743_vm5, %v737_v40, %v742_v44  ;;  %v759_v47 = vpop.permute.xlu0 %758  ;;  %v761_v48 = vpop.permute.xlu1 %760 }
  0xca   :  { %752 = vst.msk [vmem:[#allocation3 + $0x132] ss:$8 sm:$0xf] %vm7172_vm0, %v745_v45  ;;  %753 = vst.msk [vmem:[#allocation3 + $0x132] ss:$8 sm:$0x70] %vm7172_vm0, %v745_v45 }
  0xcb   :  { %v933_v49 = vld [vmem:[#allocation3 + $0x170] sm:$0x1]  ;;  %v935_v50 = vld [vmem:[#allocation3 + $0x180] sm:$0x1]  ;;  %v932_v51 = vld [vmem:[#allocation3 + $0x168] sm:$0x1] }
  0xcc   :  { %749 = vst [vmem:[#allocation3 + $0xf2] ss:$8 sm:$0xf] %v744_v46  ;;  %750 = vst [vmem:[#allocation3 + $0xf2] ss:$8 sm:$0xf0] %v744_v46  ;;  %6520 = vmatprep.subr.msk.mxu0 %vm957_vm6, %v933_v49  ;;  %6523 = vmatprep.subr.msk.mxu1 %vm957_vm6, %v935_v50 }
  0xcd   :  { %v762_v52 = vrot.slane %v759_v47, 1  ;;  %v763_v53 = vrot.slane %v761_v48, 1  ;;  %v934_v54 = vld [vmem:[#allocation3 + $0x178] sm:$0x1]  ;;  %6521 = vmatpush1.msk.msra.mxu0 %vm957_vm6, %v932_v51  ;;  %v781_v58 = vpop.permute.xlu0 %780  ;;  %v783_v59 = vpop.permute.xlu1 %782  ;;  %vm655_vm4 = vcmask 556032   ;;  %vm677_vm5 = vcmask 359424  }
  0xce   :  { %6524 = vmatpush1.msk.msra.mxu1 %vm957_vm6, %v934_v54  ;;  %v784_v60 = vrot.slane %v781_v58, 1  ;;  %v785_v61 = vrot.slane %v783_v59, 1 }
  0xcf   :  { %v764_v55 = vsel %vm367_vm2, %v762_v52, %v763_v53  ;;  %v767_v56 = vsel %vm765_vm7, %v761_v48, %v763_v53 }
  0xd0   :  { %v766_v57 = vsel %vm765_vm7, %v759_v47, %v764_v55  ;;  %774 = vst.msk [vmem:[#allocation3 + $0x133] ss:$8 sm:$0xf] %vm7172_vm0, %v767_v56  ;;  %775 = vst.msk [vmem:[#allocation3 + $0x133] ss:$8 sm:$0x70] %vm7172_vm0, %v767_v56  ;;  %v786_v62 = vsel %vm367_vm2, %v784_v60, %v785_v61  ;;  %v789_v63 = vsel %vm787_vm8, %v783_v59, %v785_v61 }
  0xd1   :  { %771 = vst [vmem:[#allocation3 + $0xf3] ss:$8 sm:$0xf] %v766_v57  ;;  %772 = vst [vmem:[#allocation3 + $0xf3] ss:$8 sm:$0xf0] %v766_v57  ;;  %v788_v0 = vsel %vm787_vm8, %v781_v58, %v786_v62  ;;  %v803_v1 = vpop.permute.xlu0 %802  ;;  %v805_v2 = vpop.permute.xlu1 %804 }
  0xd2   :  { %796 = vst.msk [vmem:[#allocation3 + $0x134] ss:$8 sm:$0xf] %vm7172_vm0, %v789_v63  ;;  %797 = vst.msk [vmem:[#allocation3 + $0x134] ss:$8 sm:$0x70] %vm7172_vm0, %v789_v63 }
  0xd3   :  { %793 = vst [vmem:[#allocation3 + $0xf4] ss:$8 sm:$0xf] %v788_v0  ;;  %794 = vst [vmem:[#allocation3 + $0xf4] ss:$8 sm:$0xf0] %v788_v0 }
  0xd4   :  { %v806_v3 = vrot.slane %v803_v1, 1  ;;  %v807_v4 = vrot.slane %v805_v2, 1  ;;  %vm369_vm7 = vcmask 1039360   ;;  %vm391_vm8 = vcmask 1031168  }
  0xd5   :  { %v825_v8 = vpop.permute.xlu0 %824  ;;  %v827_v9 = vpop.permute.xlu1 %826 }
  0xd6   :  { %v808_v5 = vsel %vm367_vm2, %v806_v3, %v807_v4  ;;  %v811_v6 = vsel %vm809_vm9, %v805_v2, %v807_v4  ;;  %v828_v10 = vrot.slane %v825_v8, 1  ;;  %v829_v11 = vrot.slane %v827_v9, 1 }
  0xd7   :  { %v810_v7 = vsel %vm809_vm9, %v803_v1, %v808_v5  ;;  %818 = vst.msk [vmem:[#allocation3 + $0x135] ss:$8 sm:$0xf] %vm7172_vm0, %v811_v6  ;;  %819 = vst.msk [vmem:[#allocation3 + $0x135] ss:$8 sm:$0x70] %vm7172_vm0, %v811_v6 }
  0xd8   :  { %815 = vst [vmem:[#allocation3 + $0xf5] ss:$8 sm:$0xf] %v810_v7  ;;  %816 = vst [vmem:[#allocation3 + $0xf5] ss:$8 sm:$0xf0] %v810_v7  ;;  %v830_v12 = vsel %vm367_vm2, %v828_v10, %v829_v11  ;;  %v833_v14 = vsel %vm831_vm10, %v827_v9, %v829_v11 }
  0xd9   :  { %v832_v17 = vsel %vm831_vm10, %v825_v8, %v830_v12  ;;  %840 = vst.msk [vmem:[#allocation3 + $0x136] ss:$8 sm:$0xf] %vm7172_vm0, %v833_v14  ;;  %841 = vst.msk [vmem:[#allocation3 + $0x136] ss:$8 sm:$0x70] %vm7172_vm0, %v833_v14  ;;  %v847_v18 = vpop.permute.xlu0 %846  ;;  %v849_v19 = vpop.permute.xlu1 %848 }
  0xda   :  { %837 = vst [vmem:[#allocation3 + $0xf6] ss:$8 sm:$0xf] %v832_v17  ;;  %838 = vst [vmem:[#allocation3 + $0xf6] ss:$8 sm:$0xf0] %v832_v17 }
  0xdb   :  { %v850_v20 = vrot.slane %v847_v18, 1  ;;  %v851_v21 = vrot.slane %v849_v19, 1  ;;  %vm413_vm9 = vcmask 1022976   ;;  %vm435_vm10 = vcmask 1014784  }
  0xdd   :  { %v852_v22 = vsel %vm367_vm2, %v850_v20, %v851_v21  ;;  %v855_v23 = vsel %vm853_vm11, %v849_v19, %v851_v21  ;;  %v519_v25 = vpop.permute.xlu1 %518  ;;  %v517_v26 = vpop.permute.xlu0 %516 }
  0xde   :  { %v854_v24 = vsel %vm853_vm11, %v847_v18, %v852_v22  ;;  %862 = vst.msk [vmem:[#allocation3 + $0x137] ss:$8 sm:$0xf] %vm7172_vm0, %v855_v23  ;;  %863 = vst.msk [vmem:[#allocation3 + $0x137] ss:$8 sm:$0x70] %vm7172_vm0, %v855_v23 }
  0xdf   :  { %859 = vst [vmem:[#allocation3 + $0xf7] ss:$8 sm:$0xf] %v854_v24  ;;  %860 = vst [vmem:[#allocation3 + $0xf7] ss:$8 sm:$0xf0] %v854_v24 }
  0xe0   :  { %v521_v27 = vrot.slane %v519_v25, 1  ;;  %v520_v28 = vrot.slane %v517_v26, 1  ;;  %vm457_vm11 = vcmask 818176  }
  0xe1   :  { %v541_v32 = vpop.permute.xlu1 %540  ;;  %v539_v33 = vpop.permute.xlu0 %538 }
  0xe2   :  { %v525_v29 = vsel %vm523_vm12, %v519_v25, %v521_v27  ;;  %v522_v30 = vsel %vm367_vm2, %v520_v28, %v521_v27  ;;  %v543_v34 = vrot.slane %v541_v32, 1  ;;  %v542_v35 = vrot.slane %v539_v33, 1 }
  0xe3   :  { %532 = vst.msk [vmem:[#allocation3 + $0xb8] ss:$8 sm:$0xf] %vm7172_vm0, %v525_v29  ;;  %533 = vst.msk [vmem:[#allocation3 + $0xb8] ss:$8 sm:$0x70] %vm7172_vm0, %v525_v29  ;;  %v524_v31 = vsel %vm523_vm12, %v517_v26, %v522_v30 }
  0xe4   :  { %529 = vst [vmem:[#allocation3 + $0x78] ss:$8 sm:$0xf] %v524_v31  ;;  %530 = vst [vmem:[#allocation3 + $0x78] ss:$8 sm:$0xf0] %v524_v31  ;;  %v547_v36 = vsel %vm545_vm13, %v541_v32, %v543_v34  ;;  %v544_v37 = vsel %vm367_vm2, %v542_v35, %v543_v34 }
  0xe5   :  { %554 = vst.msk [vmem:[#allocation3 + $0xb9] ss:$8 sm:$0xf] %vm7172_vm0, %v547_v36  ;;  %555 = vst.msk [vmem:[#allocation3 + $0xb9] ss:$8 sm:$0x70] %vm7172_vm0, %v547_v36  ;;  %v546_v38 = vsel %vm545_vm13, %v539_v33, %v544_v37  ;;  %v563_v39 = vpop.permute.xlu1 %562  ;;  %v561_v40 = vpop.permute.xlu0 %560 }
  0xe6   :  { %v918_v41 = vld [vmem:[#allocation3 + $0xf8] sm:$0xff]  ;;  %v920_v42 = vld [vmem:[#allocation3 + $0x108] sm:$0xff]  ;;  %v917_v43 = vld [vmem:[#allocation3 + $0xf0] sm:$0xff]  ;;  %551 = vst [vmem:[#allocation3 + $0x79] ss:$8 sm:$0xf] %v546_v38 }
  0xe7   :  { %552 = vst [vmem:[#allocation3 + $0x79] ss:$8 sm:$0xf0] %v546_v38  ;;  %v565_v44 = vrot.slane %v563_v39, 1  ;;  %v564_v45 = vrot.slane %v561_v40, 1  ;;  %1029 = vmatprep.subr.mxu0 %v918_v41  ;;  %1100 = vmatprep.subr.mxu1 %v920_v42  ;;  %v919_v46 = vld [vmem:[#allocation3 + $0x100] sm:$0xff] }
  0xe8   :  { %1030 = vmatpush1.msra.mxu0 %v917_v43  ;;  %1101 = vmatpush1.msra.mxu1 %v919_v46  ;;  %vm479_vm12 = vcmask 809984   ;;  %vm501_vm13 = vcmask 801792  }
  0xe9   :  { %v569_v47 = vsel %vm567_vm14, %v563_v39, %v565_v44  ;;  %v566_v48 = vsel %vm367_vm2, %v564_v45, %v565_v44  ;;  %v585_v50 = vpop.permute.xlu1 %584  ;;  %v583_v51 = vpop.permute.xlu0 %582 }
  0xea   :  { %576 = vst.msk [vmem:[#allocation3 + $0xba] ss:$8 sm:$0xf] %vm7172_vm0, %v569_v47  ;;  %577 = vst.msk [vmem:[#allocation3 + $0xba] ss:$8 sm:$0x70] %vm7172_vm0, %v569_v47  ;;  %v568_v49 = vsel %vm567_vm14, %v561_v40, %v566_v48 }
  0xeb   :  { %573 = vst [vmem:[#allocation3 + $0x7a] ss:$8 sm:$0xf] %v568_v49  ;;  %574 = vst [vmem:[#allocation3 + $0x7a] ss:$8 sm:$0xf0] %v568_v49 }
  0xec   :  { %v587_v52 = vrot.slane %v585_v50, 1  ;;  %v586_v53 = vrot.slane %v583_v51, 1 }
  0xed   :  { %v607_v57 = vpop.permute.xlu1 %606  ;;  %v605_v58 = vpop.permute.xlu0 %604 }
  0xee   :  { %v591_v54 = vsel %vm589_vm15, %v585_v50, %v587_v52  ;;  %v588_v55 = vsel %vm367_vm2, %v586_v53, %v587_v52  ;;  %v609_v59 = vrot.slane %v607_v57, 1  ;;  %v608_v60 = vrot.slane %v605_v58, 1 }
  0xef   :  { %598 = vst.msk [vmem:[#allocation3 + $0xbb] ss:$8 sm:$0xf] %vm7172_vm0, %v591_v54  ;;  %599 = vst.msk [vmem:[#allocation3 + $0xbb] ss:$8 sm:$0x70] %vm7172_vm0, %v591_v54  ;;  %v590_v56 = vsel %vm589_vm15, %v583_v51, %v588_v55 }
  0xf0   :  { %595 = vst [vmem:[#allocation3 + $0x7b] ss:$8 sm:$0xf] %v590_v56  ;;  %596 = vst [vmem:[#allocation3 + $0x7b] ss:$8 sm:$0xf0] %v590_v56  ;;  %v613_v61 = vsel %vm611_vm1, %v607_v57, %v609_v59  ;;  %v610_v62 = vsel %vm367_vm2, %v608_v60, %v609_v59 }
  0xf1   :  { %620 = vst.msk [vmem:[#allocation3 + $0xbc] ss:$8 sm:$0xf] %vm7172_vm0, %v613_v61  ;;  %621 = vst.msk [vmem:[#allocation3 + $0xbc] ss:$8 sm:$0x70] %vm7172_vm0, %v613_v61  ;;  %v612_v63 = vsel %vm611_vm1, %v605_v58, %v610_v62  ;;  %v629_v0 = vpop.permute.xlu1 %628  ;;  %v627_v1 = vpop.permute.xlu0 %626 }
  0xf2   :  { %617 = vst [vmem:[#allocation3 + $0x7c] ss:$8 sm:$0xf] %v612_v63  ;;  %618 = vst [vmem:[#allocation3 + $0x7c] ss:$8 sm:$0xf0] %v612_v63 }
  0xf3   :  { %v631_v2 = vrot.slane %v629_v0, 1  ;;  %v630_v3 = vrot.slane %v627_v1, 1 }
  0xf5   :  { %v635_v4 = vsel %vm633_vm3, %v629_v0, %v631_v2  ;;  %v632_v5 = vsel %vm367_vm2, %v630_v3, %v631_v2  ;;  %v651_v7 = vpop.permute.xlu1 %650  ;;  %v649_v8 = vpop.permute.xlu0 %648 }
  0xf6   :  { %642 = vst.msk [vmem:[#allocation3 + $0xbd] ss:$8 sm:$0xf] %vm7172_vm0, %v635_v4  ;;  %643 = vst.msk [vmem:[#allocation3 + $0xbd] ss:$8 sm:$0x70] %vm7172_vm0, %v635_v4  ;;  %v634_v6 = vsel %vm633_vm3, %v627_v1, %v632_v5 }
  0xf7   :  { %639 = vst [vmem:[#allocation3 + $0x7d] ss:$8 sm:$0xf] %v634_v6  ;;  %640 = vst [vmem:[#allocation3 + $0x7d] ss:$8 sm:$0xf0] %v634_v6 }
  0xf8   :  { %v653_v9 = vrot.slane %v651_v7, 1  ;;  %v652_v10 = vrot.slane %v649_v8, 1  ;;  %vm953_vm3 = vcmask 203776  }
  0xf9   :  { %v673_v17 = vpop.permute.xlu1 %672  ;;  %v671_v18 = vpop.permute.xlu0 %670 }
  0xfa   :  { %v657_v11 = vsel %vm655_vm4, %v651_v7, %v653_v9  ;;  %v654_v12 = vsel %vm367_vm2, %v652_v10, %v653_v9  ;;  %v675_v19 = vrot.slane %v673_v17, 1  ;;  %v674_v20 = vrot.slane %v671_v18, 1 }
  0xfb   :  { %664 = vst.msk [vmem:[#allocation3 + $0xbe] ss:$8 sm:$0xf] %vm7172_vm0, %v657_v11  ;;  %665 = vst.msk [vmem:[#allocation3 + $0xbe] ss:$8 sm:$0x70] %vm7172_vm0, %v657_v11  ;;  %v656_v14 = vsel %vm655_vm4, %v649_v8, %v654_v12 }
  0xfc   :  { %661 = vst [vmem:[#allocation3 + $0x7e] ss:$8 sm:$0xf] %v656_v14  ;;  %662 = vst [vmem:[#allocation3 + $0x7e] ss:$8 sm:$0xf0] %v656_v14  ;;  %v679_v21 = vsel %vm677_vm5, %v673_v17, %v675_v19  ;;  %v676_v22 = vsel %vm367_vm2, %v674_v20, %v675_v19 }
  0xfd   :  { %686 = vst.msk [vmem:[#allocation3 + $0xbf] ss:$8 sm:$0xf] %vm7172_vm0, %v679_v21  ;;  %687 = vst.msk [vmem:[#allocation3 + $0xbf] ss:$8 sm:$0x70] %vm7172_vm0, %v679_v21  ;;  %v678_v23 = vsel %vm677_vm5, %v671_v18, %v676_v22  ;;  %v364_v24 = vpop.permute.xlu1 %363  ;;  %v362_v25 = vpop.permute.xlu0 %361 }
  0xfe   :  { %683 = vst [vmem:[#allocation3 + $0x7f] ss:$8 sm:$0xf] %v678_v23  ;;  %684 = vst [vmem:[#allocation3 + $0x7f] ss:$8 sm:$0xf0] %v678_v23 }
  0xff   :  { %v366_v26 = vrot.slane %v364_v24, 1  ;;  %v365_v27 = vrot.slane %v362_v25, 1  ;;  %v7396_v14 = vld [vmem:[%s8056_s1] sm:$0x1f]  ;;  %v937_v21 = vld [vmem:[#allocation3 + $0x190] sm:$0x1] }
 0x100   :  { %v939_v22 = vld [vmem:[#allocation3 + $0x1a0] sm:$0x1]  ;;  %v936_v23 = vld [vmem:[#allocation3 + $0x188] sm:$0x1]  ;;  %vm2703_vm4 = vcmask 367616  }
 0x101   :  { %v371_v28 = vsel %vm369_vm7, %v364_v24, %v366_v26  ;;  %v368_v29 = vsel %vm367_vm2, %v365_v27, %v366_v26  ;;  %v387_v31 = vpop.permute.xlu1 %386  ;;  %v385_v32 = vpop.permute.xlu0 %384  ;;  %v938_v24 = vld [vmem:[#allocation3 + $0x198] sm:$0x1]  ;;  %v924_v26 = vld [vmem:[#allocation3 + $0x128] sm:$0xff]  ;;  %v921_v27 = vld [vmem:[#allocation3 + $0x110] sm:$0xff] }
 0x102   :  { %378 = vst.msk [vmem:[#allocation3 + $0x41] ss:$8 sm:$0xf] %vm7172_vm0, %v371_v28  ;;  %379 = vst.msk [vmem:[#allocation3 + $0x41] ss:$8 sm:$0x70] %vm7172_vm0, %v371_v28  ;;  %v370_v30 = vsel %vm369_vm7, %v362_v25, %v368_v29 }
 0x103   :  { %375 = vst [vmem:[#allocation3 + $0x1] ss:$8 sm:$0xf] %v370_v30  ;;  %376 = vst [vmem:[#allocation3 + $0x1] ss:$8 sm:$0xf0] %v370_v30 }
 0x104   :  { %v389_v33 = vrot.slane %v387_v31, 1  ;;  %v388_v34 = vrot.slane %v385_v32, 1  ;;  %v922_v25 = vld [vmem:[#allocation3 + $0x118] sm:$0xff]  ;;  %v923_v28 = vld [vmem:[#allocation3 + $0x120] sm:$0xff] }
 0x105   :  { %v409_v38 = vpop.permute.xlu1 %408  ;;  %v407_v39 = vpop.permute.xlu0 %406  ;;  %v903_v40 = vld [vmem:[#allocation3 + $0x80] sm:$0xff]  ;;  %v905_v41 = vld [vmem:[#allocation3 + $0x90] sm:$0xff]  ;;  %v902_v42 = vld [vmem:[#allocation3 + $0x78] sm:$0xff] }
 0x106   :  { %v393_v35 = vsel %vm391_vm8, %v387_v31, %v389_v33  ;;  %v390_v36 = vsel %vm367_vm2, %v388_v34, %v389_v33  ;;  %v411_v43 = vrot.slane %v409_v38, 1  ;;  %v410_v44 = vrot.slane %v407_v39, 1  ;;  %1031 = vmatprep.subr.mxu0 %v903_v40  ;;  %1102 = vmatprep.subr.mxu1 %v905_v41  ;;  %v904_v45 = vld [vmem:[#allocation3 + $0x88] sm:$0xff]  ;;  %v907_v29 = vld [vmem:[#allocation3 + $0xa0] sm:$0xff]  ;;  %v909_v30 = vld [vmem:[#allocation3 + $0xb0] sm:$0xff] }
 0x107   :  { %400 = vst.msk [vmem:[#allocation3 + $0x42] ss:$8 sm:$0xf] %vm7172_vm0, %v393_v35  ;;  %401 = vst.msk [vmem:[#allocation3 + $0x42] ss:$8 sm:$0x70] %vm7172_vm0, %v393_v35  ;;  %v392_v37 = vsel %vm391_vm8, %v385_v32, %v390_v36  ;;  %1032 = vmatpush1.msra.mxu0 %v902_v42  ;;  %1103 = vmatpush1.msra.mxu1 %v904_v45 }
 0x108   :  { %397 = vst [vmem:[#allocation3 + $0x2] ss:$8 sm:$0xf] %v392_v37  ;;  %398 = vst [vmem:[#allocation3 + $0x2] ss:$8 sm:$0xf0] %v392_v37  ;;  %v415_v46 = vsel %vm413_vm9, %v409_v38, %v411_v43  ;;  %v412_v47 = vsel %vm367_vm2, %v410_v44, %v411_v43 }
 0x109   :  { %422 = vst.msk [vmem:[#allocation3 + $0x43] ss:$8 sm:$0xf] %vm7172_vm0, %v415_v46  ;;  %423 = vst.msk [vmem:[#allocation3 + $0x43] ss:$8 sm:$0x70] %vm7172_vm0, %v415_v46  ;;  %v414_v48 = vsel %vm413_vm9, %v407_v39, %v412_v47  ;;  %v431_v49 = vpop.permute.xlu1 %430  ;;  %v429_v50 = vpop.permute.xlu0 %428 }
 0x10a   :  { %419 = vst [vmem:[#allocation3 + $0x3] ss:$8 sm:$0xf] %v414_v48  ;;  %420 = vst [vmem:[#allocation3 + $0x3] ss:$8 sm:$0xf0] %v414_v48 }
 0x10b   :  { %v433_v51 = vrot.slane %v431_v49, 1  ;;  %v432_v52 = vrot.slane %v429_v50, 1  ;;  %v906_v31 = vld [vmem:[#allocation3 + $0x98] sm:$0xff]  ;;  %v908_v32 = vld [vmem:[#allocation3 + $0xa8] sm:$0xff]  ;;  %v941_v37 = vld [vmem:[#allocation3 + $0x1b0] sm:$0x1] }
 0x10c   :  { %v943_v38 = vld [vmem:[#allocation3 + $0x1c0] sm:$0x1]  ;;  %v940_v39 = vld [vmem:[#allocation3 + $0x1a8] sm:$0x1]  ;;  %v942_v40 = vld [vmem:[#allocation3 + $0x1b8] sm:$0x1] }
 0x10d   :  { %v437_v53 = vsel %vm435_vm10, %v431_v49, %v433_v51  ;;  %v434_v54 = vsel %vm367_vm2, %v432_v52, %v433_v51  ;;  %v453_v56 = vpop.permute.xlu1 %452  ;;  %v451_v57 = vpop.permute.xlu0 %450  ;;  %v926_v41 = vld [vmem:[#allocation3 + $0x138] sm:$0xff]  ;;  %v928_v42 = vld [vmem:[#allocation3 + $0x148] sm:$0xff]  ;;  %v925_v43 = vld [vmem:[#allocation3 + $0x130] sm:$0xff] }
 0x10e   :  { %444 = vst.msk [vmem:[#allocation3 + $0x44] ss:$8 sm:$0xf] %vm7172_vm0, %v437_v53  ;;  %445 = vst.msk [vmem:[#allocation3 + $0x44] ss:$8 sm:$0x70] %vm7172_vm0, %v437_v53  ;;  %v436_v55 = vsel %vm435_vm10, %v429_v50, %v434_v54 }
 0x10f   :  { %441 = vst [vmem:[#allocation3 + $0x4] ss:$8 sm:$0xf] %v436_v55  ;;  %442 = vst [vmem:[#allocation3 + $0x4] ss:$8 sm:$0xf0] %v436_v55 }
 0x110   :  { %v455_v58 = vrot.slane %v453_v56, 1  ;;  %v454_v59 = vrot.slane %v451_v57, 1  ;;  %v927_v44 = vld [vmem:[#allocation3 + $0x140] sm:$0xff]  ;;  %v913_v46 = vld [vmem:[#allocation3 + $0xd0] sm:$0xff]  ;;  %v910_v47 = vld [vmem:[#allocation3 + $0xb8] sm:$0xff] }
 0x111   :  { %v475_v63 = vpop.permute.xlu1 %474  ;;  %v473_v0 = vpop.permute.xlu0 %472  ;;  %v911_v45 = vld [vmem:[#allocation3 + $0xc0] sm:$0xff]  ;;  %v912_v48 = vld [vmem:[#allocation3 + $0xc8] sm:$0xff]  ;;  %v945_v53 = vld [vmem:[#allocation3 + $0x1d0] sm:$0x1] }
 0x112   :  { %v459_v60 = vsel %vm457_vm11, %v453_v56, %v455_v58  ;;  %v456_v61 = vsel %vm367_vm2, %v454_v59, %v455_v58  ;;  %v477_v1 = vrot.slane %v475_v63, 1  ;;  %v476_v2 = vrot.slane %v473_v0, 1  ;;  %v944_v54 = vld [vmem:[#allocation3 + $0x1c8] sm:$0x1]  ;;  %v946_v55 = vld [vmem:[#allocation3 + $0x1d8] sm:$0x1] }
 0x113   :  { %466 = vst.msk [vmem:[#allocation3 + $0x45] ss:$8 sm:$0xf] %vm7172_vm0, %v459_v60  ;;  %467 = vst.msk [vmem:[#allocation3 + $0x45] ss:$8 sm:$0x70] %vm7172_vm0, %v459_v60  ;;  %v458_v62 = vsel %vm457_vm11, %v451_v57, %v456_v61 }
 0x114   :  { %463 = vst [vmem:[#allocation3 + $0x5] ss:$8 sm:$0xf] %v458_v62  ;;  %464 = vst [vmem:[#allocation3 + $0x5] ss:$8 sm:$0xf0] %v458_v62  ;;  %v481_v3 = vsel %vm479_vm12, %v475_v63, %v477_v1  ;;  %v478_v4 = vsel %vm367_vm2, %v476_v2, %v477_v1 }
 0x115   :  { %488 = vst.msk [vmem:[#allocation3 + $0x46] ss:$8 sm:$0xf] %vm7172_vm0, %v481_v3  ;;  %489 = vst.msk [vmem:[#allocation3 + $0x46] ss:$8 sm:$0x70] %vm7172_vm0, %v481_v3  ;;  %v480_v5 = vsel %vm479_vm12, %v473_v0, %v478_v4  ;;  %v497_v6 = vpop.permute.xlu1 %496  ;;  %v495_v7 = vpop.permute.xlu0 %494 }
 0x116   :  { %485 = vst [vmem:[#allocation3 + $0x6] ss:$8 sm:$0xf] %v480_v5  ;;  %486 = vst [vmem:[#allocation3 + $0x6] ss:$8 sm:$0xf0] %v480_v5 }
 0x117   :  { %v499_v8 = vrot.slane %v497_v6, 1  ;;  %v498_v9 = vrot.slane %v495_v7, 1  ;;  %v930_v56 = vld [vmem:[#allocation3 + $0x158] sm:$0xff]  ;;  %v929_v57 = vld [vmem:[#allocation3 + $0x150] sm:$0xff]  ;;  %v931_v58 = vld [vmem:[#allocation3 + $0x160] sm:$0xff] }
 0x118   :  { %v915_v59 = vld [vmem:[#allocation3 + $0xe0] sm:$0xff]  ;;  %v914_v60 = vld [vmem:[#allocation3 + $0xd8] sm:$0xff]  ;;  %v916_v61 = vld [vmem:[#allocation3 + $0xe8] sm:$0xff] }
 0x119   :  { %v503_v10 = vsel %vm501_vm13, %v497_v6, %v499_v8  ;;  %v500_v11 = vsel %vm367_vm2, %v498_v9, %v499_v8  ;;  %vm6694_vm2 = vmmov 0  }
 0x11a   :  { %510 = vst.msk [vmem:[#allocation3 + $0x47] ss:$8 sm:$0xf] %vm7172_vm0, %v503_v10  ;;  %511 = vst.msk [vmem:[#allocation3 + $0x47] ss:$8 sm:$0x70] %vm7172_vm0, %v503_v10  ;;  %v502_v12 = vsel %vm501_vm13, %v495_v7, %v500_v11 }
 0x11b   :  { %507 = vst [vmem:[#allocation3 + $0x7] ss:$8 sm:$0xf] %v502_v12  ;;  %508 = vst [vmem:[#allocation3 + $0x7] ss:$8 sm:$0xf0] %v502_v12 }
 0x121   :  { %v896_v49 = vld [vmem:[#allocation3 + $0x48] sm:$0xff]  ;;  %v898_v50 = vld [vmem:[#allocation3 + $0x58] sm:$0xff]  ;;  %v895_v51 = vld [vmem:[#allocation3 + $0x40] sm:$0xff] }
 0x122   :  { %v888_v17 = vld [vmem:[#allocation3 + $0x8] sm:$0xff]  ;;  %v890_v18 = vld [vmem:[#allocation3 + $0x18] sm:$0xff]  ;;  %v887_v19 = vld [vmem:[#allocation3] sm:$0xff]  ;;  %v7437_v1 = vpop.permute.xlu0 %950 }
 0x123   :  { %1033 = vmatprep.subr.mxu0 %v888_v17  ;;  %1104 = vmatprep.subr.mxu1 %v890_v18  ;;  %v889_v20 = vld [vmem:[#allocation3 + $0x10] sm:$0xff]  ;;  %v892_v33 = vld [vmem:[#allocation3 + $0x28] sm:$0xff]  ;;  %v894_v34 = vld [vmem:[#allocation3 + $0x38] sm:$0xff] }
 0x124   :  { %1034 = vmatpush1.msra.mxu0 %v887_v19  ;;  %1105 = vmatpush1.msra.mxu1 %v889_v20  ;;  %v891_v35 = vld [vmem:[#allocation3 + $0x20] sm:$0xff]  ;;  %v893_v36 = vld [vmem:[#allocation3 + $0x30] sm:$0xff]  ;;  %v900_v62 = vld [vmem:[#allocation3 + $0x68] sm:$0xff] }
 0x125   :  { %6522 = vmatmul.mubr.msk.f32.vlgmr.msra.gmra.mxu0 %vm953_vm3, %v7396_v14  ;;  %6525 = vmatmul.mubr.msk.f32.vlgmr.msra.gmra.mxu1 %vm953_vm3, %v7396_v14  ;;  %v897_v52 = vld [vmem:[#allocation3 + $0x50] sm:$0xff]  ;;  %v899_v63 = vld [vmem:[#allocation3 + $0x60] sm:$0xff] }
 0x126   :  { %6526 = vmatprep.subr.msk.mxu0 %vm957_vm6, %v937_v21  ;;  %6529 = vmatprep.subr.msk.mxu1 %vm957_vm6, %v939_v22  ;;  %v901_v0 = vld [vmem:[#allocation3 + $0x70] sm:$0xff] }
 0x127   :  { %6527 = vmatpush1.msk.msra.mxu0 %vm957_vm6, %v936_v23  ;;  %6530 = vmatpush1.msk.msra.mxu1 %vm957_vm6, %v938_v24 }
 0x128   :  { %1171 = vmatprep.subr.mxu0 %v922_v25  ;;  %1242 = vmatprep.subr.mxu1 %v924_v26 }
 0x129   :  { %1172 = vmatpush1.msra.mxu0 %v921_v27  ;;  %1243 = vmatpush1.msra.mxu1 %v923_v28 }
 0x12a   :  { %1173 = vmatprep.subr.mxu0 %v907_v29  ;;  %1244 = vmatprep.subr.mxu1 %v909_v30 }
 0x12b   :  { %1174 = vmatpush1.msra.mxu0 %v906_v31  ;;  %1245 = vmatpush1.msra.mxu1 %v908_v32 }
 0x12c   :  { %1175 = vmatprep.subr.mxu0 %v892_v33  ;;  %1246 = vmatprep.subr.mxu1 %v894_v34 }
 0x12d   :  { %1176 = vmatpush1.msra.mxu0 %v891_v35  ;;  %1209 = vmatprep.mubr.f32.mxu0 %v6692_v16 }
 0x12e   :  { %1247 = vmatpush1.msra.mxu1 %v893_v36  ;;  %1280 = vmatprep.mubr.f32.mxu1 %v6692_v16 }
 0x12f   :  { %6528 = vmatmul.mubr.msk.f32.vlgmr.msra.gmra.mxu0 %vm953_vm3, %v7396_v14  ;;  %6531 = vmatmul.mubr.msk.f32.vlgmr.msra.gmra.mxu1 %vm953_vm3, %v7396_v14 }
 0x130   :  { %6532 = vmatprep.subr.msk.mxu0 %vm957_vm6, %v941_v37  ;;  %6535 = vmatprep.subr.msk.mxu1 %vm957_vm6, %v943_v38 }
 0x131   :  { %6533 = vmatpush1.msk.msra.mxu0 %vm957_vm6, %v940_v39  ;;  %6536 = vmatpush1.msk.msra.mxu1 %vm957_vm6, %v942_v40 }
 0x132   :  { %1313 = vmatprep.subr.mxu0 %v926_v41  ;;  %1384 = vmatprep.subr.mxu1 %v928_v42 }
 0x133   :  { %1314 = vmatpush1.msra.mxu0 %v925_v43  ;;  %1385 = vmatpush1.msra.mxu1 %v927_v44 }
 0x134   :  { %1315 = vmatprep.subr.mxu0 %v911_v45  ;;  %1386 = vmatprep.subr.mxu1 %v913_v46 }
 0x135   :  { %1316 = vmatpush1.msra.mxu0 %v910_v47  ;;  %1387 = vmatpush1.msra.mxu1 %v912_v48 }
 0x136   :  { %1317 = vmatprep.subr.mxu0 %v896_v49  ;;  %1388 = vmatprep.subr.mxu1 %v898_v50 }
 0x137   :  { %1318 = vmatpush1.msra.mxu0 %v895_v51  ;;  %1351 = vmatprep.mubr.f32.mxu0 %v6692_v16 }
 0x138   :  { %1389 = vmatpush1.msra.mxu1 %v897_v52  ;;  %1422 = vmatprep.mubr.f32.mxu1 %v6692_v16 }
 0x139   :  { %6534 = vmatmul.mubr.msk.f32.vlgmr.msra.gmra.mxu0 %vm953_vm3, %v7396_v14  ;;  %6537 = vmatmul.mubr.msk.f32.vlgmr.msra.gmra.mxu1 %vm953_vm3, %v7396_v14 }
 0x13a   :  { %6538 = vmatprep.subr.msk.mxu0 %vm957_vm6, %v945_v53  ;;  %6579 = vmatprep.subr.mxu1 %v6692_v16 }
 0x13b   :  { %6539 = vmatpush1.msk.msra.mxu0 %vm957_vm6, %v944_v54  ;;  %6580 = vmatpush3.msk.msra.mxu1 %vm957_vm6, %v946_v55  ;;  %vm2710_vm6 = vcmask 1044480  }
 0x13c   :  { %1455 = vmatprep.subr.mxu0 %v930_v56  ;;  %6581 = vmatprep.subr.mxu1 %v6692_v16 }
 0x13d   :  { %1456 = vmatpush1.msra.mxu0 %v929_v57  ;;  %6582 = vmatpush3.msra.mxu1 %v931_v58 }
 0x13e   :  { %1457 = vmatprep.subr.mxu0 %v915_v59  ;;  %6583 = vmatprep.subr.mxu1 %v6692_v16 }
 0x13f   :  { %1458 = vmatpush1.msra.mxu0 %v914_v60  ;;  %6584 = vmatpush3.msra.mxu1 %v916_v61 }
 0x140   :  { %1459 = vmatprep.subr.mxu0 %v900_v62  ;;  %6585 = vmatprep.subr.mxu1 %v6692_v16 }
 0x141   :  { %1460 = vmatpush1.msra.mxu0 %v899_v63  ;;  %1493 = vmatprep.mubr.f32.mxu0 %v6692_v16 }
 0x142   :  { %6586 = vmatpush3.msra.mxu1 %v901_v0  ;;  %6587 = vmatprep.mubr.msk.f32.mxu1 %vm6694_vm2, %v6692_v16 }
 0x143   :  { %6540 = vmatmul.mubr.msk.f32.vlgmr.msra.gmra.mxu0 %vm953_vm3, %v7396_v14  ;;  %6588 = vmatmul.mubr.msk.f32.vlgmr.msra.gmra.mxu1 %vm953_vm3, %v7396_v14 }
 0x144   :  { %2817 = vmatprep.mubr.f32.mxu0 %v6692_v16  ;;  %2894 = vmatprep.mubr.f32.mxu1 %v6692_v16 }
 0x1e5   :  { %v1069_v2 = vpop.f32.mrf.mxu0  ;;  %v1140_v3 = vpop.f32.mrf.mxu1 }
 0x1e6   :  { %v1070_v4 = vadd.f32 %v1069_v2, %v7437_v1  ;;  %v1141_v5 = vadd.f32 %v1140_v3, %v7437_v1 }
 0x1e7   :  { %v1071_v6 = vpop.f32.mrf.mxu0  ;;  %v1142_v7 = vpop.f32.mrf.mxu1 }
 0x1e8   :  { %v1570_v8 = vmax.f32 %v1070_v4, 0.0  ;;  %v1572_v9 = vmax.f32 %v1141_v5, 0.0  ;;  %v1072_v10 = vadd.f32 %v1071_v6, %v7437_v1  ;;  %v1143_v11 = vadd.f32 %v1142_v7, %v7437_v1 }
 0x1ea   :  { %1585 = vst [vmem:[#allocation4 + $0x38] sm:$0x1f] %v1570_v8  ;;  %1587 = vst [vmem:[#allocation4 + $0x28] sm:$0x1f] %v1572_v9  ;;  %v1571_v12 = vmax.f32 %v1072_v10, 0.0  ;;  %v1573_v14 = vmax.f32 %v1143_v11, 0.0 }
 0x1ec   :  { %1586 = vst [vmem:[#allocation4 + $0x18] sm:$0x1f] %v1571_v12  ;;  %1588 = vst [vmem:[#allocation4 + $0x70] sm:$0x1f] %v1573_v14 }
 0x1ef   :  { %v1211_v17 = vpop.f32.mrf.mxu0  ;;  %v1282_v18 = vpop.f32.mrf.mxu1 }
 0x1f0   :  { %v1212_v19 = vadd.f32 %v1211_v17, %v7437_v1  ;;  %v1283_v20 = vadd.f32 %v1282_v18, %v7437_v1 }
 0x1f1   :  { %v1600_v21 = vld [vmem:[#allocation4 + $0x38] sm:$0x1f]  ;;  %v1602_v22 = vld [vmem:[#allocation4 + $0x28] sm:$0x1f]  ;;  %v1213_v23 = vpop.f32.mrf.mxu0  ;;  %v1284_v24 = vpop.f32.mrf.mxu1 }
 0x1f2   :  { %v2505_v25 = vld [vmem:[#allocation4 + $0x28] sm:$0x1f]  ;;  %1614 = vst [vmem:[#allocation5 + $0x50] sm:$0x1f] %v1600_v21  ;;  %1616 = vst [vmem:[#allocation5 + $0x130] sm:$0x1f] %v1602_v22  ;;  %v1214_v28 = vadd.f32 %v1213_v23, %v7437_v1  ;;  %v1285_v29 = vadd.f32 %v1284_v24, %v7437_v1 }
 0x1f3   :  { %v1574_v26 = vmax.f32 %v1212_v19, 0.0  ;;  %v1576_v27 = vmax.f32 %v1283_v20, 0.0  ;;  %2537 = vrot.lane.b32.xlu1 %v2505_v25, %s6681_s20  ;;  %v2503_v30 = vld [vmem:[#allocation4 + $0x38] sm:$0x1f]  ;;  %v2257_v31 = vld [vmem:[#allocation4 + $0x28] sm:$0x1f] }
 0x1f4   :  { %v1601_v32 = vld [vmem:[#allocation4 + $0x18] sm:$0x1f]  ;;  %v1603_v33 = vld [vmem:[#allocation4 + $0x70] sm:$0x1f]  ;;  %2533 = vrot.lane.b32.xlu0 %v2503_v30, %s6681_s20  ;;  %v1575_v34 = vmax.f32 %v1214_v28, 0.0  ;;  %v1577_v35 = vmax.f32 %v1285_v29, 0.0 }
 0x1f5   :  { %1615 = vst [vmem:[#allocation5 + $0x278] sm:$0x1f] %v1601_v32  ;;  %1617 = vst [vmem:[#allocation5 + $0x30] sm:$0x1f] %v1603_v33  ;;  %v2504_v36 = vld [vmem:[#allocation4 + $0x18] sm:$0x1f] }
 0x1f6   :  { %1589 = vst [vmem:[#allocation4 + $0x20] sm:$0x1f] %v1574_v26  ;;  %1591 = vst [vmem:[#allocation4 + $0x60] sm:$0x1f] %v1576_v27  ;;  %v2287_v37 = vrot.slane %v2257_v31, 2 }
 0x1f7   :  { %v2255_v38 = vld [vmem:[#allocation4 + $0x38] sm:$0x1f]  ;;  %1590 = vst [vmem:[#allocation4 + $0x10] sm:$0x1f] %v1575_v34  ;;  %1592 = vst [vmem:[#allocation4 + $0x48] sm:$0x1f] %v1577_v35  ;;  %2535 = vrot.lane.b32.xlu1 %v2504_v36, %s6681_s20 }
 0x1f8   :  { %v2388_v39 = vld [vmem:[#allocation4 + $0x28] sm:$0x1f]  ;;  %2304 = vrot.lane.b32.xlu0 %v2287_v37, %s6679_s18  ;;  %v2285_v40 = vrot.slane %v2255_v38, 2  ;;  %v2386_v41 = vld [vmem:[#allocation4 + $0x38] sm:$0x1f] }
 0x1f9   :  { %v2007_v42 = vld [vmem:[#allocation4 + $0x38] sm:$0x1f]  ;;  %v1353_v43 = vpop.f32.mrf.mxu0  ;;  %v1424_v44 = vpop.f32.mrf.mxu1  ;;  %v2418_v45 = vrot.slane %v2388_v39, 5  ;;  %v2416_v52 = vrot.slane %v2386_v41, 5  ;;  %v2009_v63 = vld [vmem:[#allocation4 + $0x28] sm:$0x1f] }
 0x1fa   :  { %v1354_v46 = vadd.f32 %v1353_v43, %v7437_v1  ;;  %v1425_v47 = vadd.f32 %v1424_v44, %v7437_v1  ;;  %v2037_v53 = vrot.slane %v2007_v42, 4  ;;  %v1876_v60 = vld [vmem:[#allocation4 + $0x38] sm:$0x1f]  ;;  %v2039_v2 = vrot.slane %v2009_v63, 4  ;;  %v2140_v3 = vld [vmem:[#allocation4 + $0x28] sm:$0x1f] }
 0x1fb   :  { %2300 = vrot.lane.b32.xlu1 %v2285_v40, %s6679_s18  ;;  %v1355_v50 = vpop.f32.mrf.mxu0  ;;  %v1426_v51 = vpop.f32.mrf.mxu1  ;;  %v1906_v0 = vrot.slane %v1876_v60, 1  ;;  %v1630_v4 = vld [vmem:[#allocation4 + $0x28] sm:$0x1f]  ;;  %v2170_v9 = vrot.slane %v2140_v3, 7  ;;  %v2138_v22 = vld [vmem:[#allocation4 + $0x38] sm:$0x1f] }
 0x1fc   :  { %2435 = vrot.lane.b32.xlu0 %v2418_v45, %s6680_s19  ;;  %v1578_v54 = vmax.f32 %v1354_v46, 0.0  ;;  %v1580_v55 = vmax.f32 %v1425_v47, 0.0  ;;  %v1356_v56 = vadd.f32 %v1355_v50, %v7437_v1  ;;  %v1427_v57 = vadd.f32 %v1426_v51, %v7437_v1  ;;  %v1761_v17 = vld [vmem:[#allocation4 + $0x28] sm:$0x1f]  ;;  %v1759_v28 = vld [vmem:[#allocation4 + $0x38] sm:$0x1f] }
 0x1fd   :  { %v1604_v48 = vld [vmem:[#allocation4 + $0x20] sm:$0x1f]  ;;  %v1660_v10 = vrot.slane %v1630_v4, 3  ;;  %v1791_v26 = vrot.slane %v1761_v17, 6  ;;  %v2168_v27 = vrot.slane %v2138_v22, 7 }
 0x1fe   :  { %v1606_v49 = vld [vmem:[#allocation4 + $0x60] sm:$0x1f]  ;;  %1618 = vst [vmem:[#allocation5 + $0x78] sm:$0x1f] %v1604_v48  ;;  %v1605_v58 = vld [vmem:[#allocation4 + $0x10] sm:$0x1f] }
 0x1ff   :  { %1620 = vst [vmem:[#allocation5 + $0x1a8] sm:$0x1f] %v1606_v49  ;;  %v1607_v59 = vld [vmem:[#allocation4 + $0x48] sm:$0x1f]  ;;  %1619 = vst [vmem:[#allocation5 + $0xd8] sm:$0x1f] %v1605_v58  ;;  %2052 = vrot.lane.b32.xlu1 %v2037_v53, %s6690_s29 }
 0x200   :  { %1621 = vst [vmem:[#allocation5 + $0x148] sm:$0x1f] %v1607_v59  ;;  %1593 = vst [vmem:[#allocation4 + $0x8] sm:$0x1f] %v1578_v54  ;;  %v1579_v61 = vmax.f32 %v1356_v56, 0.0  ;;  %v1581_v62 = vmax.f32 %v1427_v57, 0.0  ;;  %2431 = vrot.lane.b32.xlu0 %v2416_v52, %s6680_s19 }
 0x201   :  { %1595 = vst [vmem:[#allocation4 + $0x68] sm:$0x1f] %v1580_v55  ;;  %v1878_v29 = vld [vmem:[#allocation4 + $0x28] sm:$0x1f]  ;;  %v2256_v31 = vld [vmem:[#allocation4 + $0x18] sm:$0x1f] }
 0x202   :  { %1594 = vst [vmem:[#allocation4 + $0x30] sm:$0x1f] %v1579_v61  ;;  %1596 = vst [vmem:[#allocation4 + $0x58] sm:$0x1f] %v1581_v62  ;;  %v1908_v30 = vrot.slane %v1878_v29, 1  ;;  %v2286_v34 = vrot.slane %v2256_v31, 2 }
 0x203   :  { %1921 = vrot.lane.b32.xlu1 %v1906_v0, %s6689_s28  ;;  %v1495_v5 = vpop.f32.mrf.mxu0  ;;  %v1566_v6 = vpop.f32.mrf.mxu1  ;;  %v1628_v32 = vld [vmem:[#allocation4 + $0x38] sm:$0x1f]  ;;  %v2506_v40 = vld [vmem:[#allocation4 + $0x70] sm:$0x1f]  ;;  %v2507_v53 = vld [vmem:[#allocation4 + $0x20] sm:$0x1f] }
 0x204   :  { %2056 = vrot.lane.b32.xlu0 %v2039_v2, %s6690_s29  ;;  %v1496_v7 = vadd.f32 %v1495_v5, %v7437_v1  ;;  %v1567_v8 = vadd.f32 %v1566_v6, %v7437_v1  ;;  %v1658_v36 = vrot.slane %v1628_v32, 3  ;;  %v2387_v37 = vld [vmem:[#allocation4 + $0x18] sm:$0x1f]  ;;  %v2258_v49 = vld [vmem:[#allocation4 + $0x70] sm:$0x1f] }
 0x205   :  { %v1497_v14 = vpop.f32.mrf.mxu0  ;;  %v6589_v18 = vpop.f32.mrf.mxu1  ;;  %v2417_v38 = vrot.slane %v2387_v37, 5  ;;  %v2008_v39 = vld [vmem:[#allocation4 + $0x18] sm:$0x1f]  ;;  %v2288_v51 = vrot.slane %v2258_v49, 2  ;;  %v2389_v52 = vld [vmem:[#allocation4 + $0x70] sm:$0x1f] }
 0x206   :  { %v1582_v19 = vmax.f32 %v1496_v7, 0.0  ;;  %v1584_v20 = vmax.f32 %v1567_v8, 0.0  ;;  %v1498_v21 = vadd.f32 %v1497_v14, %v7437_v1  ;;  %v1789_v1 = vrot.slane %v1759_v28, 6  ;;  %v1629_v41 = vld [vmem:[#allocation4 + $0x18] sm:$0x1f] }
 0x207   :  { %v1608_v11 = vld [vmem:[#allocation4 + $0x8] sm:$0x1f]  ;;  %1677 = vrot.lane.b32.xlu1 %v1660_v10, %s6685_s24  ;;  %v2038_v42 = vrot.slane %v2008_v39, 4  ;;  %v1659_v43 = vrot.slane %v1629_v41, 3  ;;  %v2139_v44 = vld [vmem:[#allocation4 + $0x18] sm:$0x1f] }
 0x208   :  { %v1610_v12 = vld [vmem:[#allocation4 + $0x68] sm:$0x1f]  ;;  %1622 = vst [vmem:[#allocation5 + $0x248] sm:$0x1f] %v1608_v11  ;;  %2187 = vrot.lane.b32.xlu0 %v2170_v9, %s6691_s30  ;;  %1597 = vst [vmem:[#allocation4] sm:$0x1f] %v1582_v19 }
 0x209   :  { %1624 = vst [vmem:[#allocation5 + $0xe8] sm:$0x1f] %v1610_v12  ;;  %v1609_v23 = vld [vmem:[#allocation4 + $0x30] sm:$0x1f]  ;;  %v1611_v24 = vld [vmem:[#allocation4 + $0x58] sm:$0x1f] }
 0x20a   :  { %1623 = vst [vmem:[#allocation5 + $0x140] sm:$0x1f] %v1609_v23  ;;  %1625 = vst [vmem:[#allocation5 + $0x1d0] sm:$0x1f] %v1611_v24  ;;  %v1583_v25 = vmax.f32 %v1498_v21, 0.0  ;;  %v2169_v46 = vrot.slane %v2139_v44, 7 }
 0x20b   :  { %1599 = vst [vmem:[#allocation4 + $0x40] sm:$0x1f] %v1584_v20  ;;  %1808 = vrot.lane.b32.xlu1 %v1791_v26, %s6686_s25  ;;  %v1760_v45 = vld [vmem:[#allocation4 + $0x18] sm:$0x1f]  ;;  %v2419_v54 = vrot.slane %v2389_v52, 5 }
 0x20c   :  { %1598 = vst [vmem:[#allocation4 + $0x50] sm:$0x1f] %v1583_v25  ;;  %2183 = vrot.lane.b32.xlu0 %v2168_v27, %s6691_s30  ;;  %v1790_v47 = vrot.slane %v1760_v45, 6  ;;  %v1877_v48 = vld [vmem:[#allocation4 + $0x18] sm:$0x1f] }
 0x20d   :  { %v1907_v50 = vrot.slane %v1877_v48, 1  ;;  %v2010_v55 = vld [vmem:[#allocation4 + $0x70] sm:$0x1f]  ;;  %v2509_v56 = vld [vmem:[#allocation4 + $0x60] sm:$0x1f] }
 0x20e   :  { %v2040_v57 = vrot.slane %v2010_v55, 4  ;;  %v2259_v58 = vld [vmem:[#allocation4 + $0x20] sm:$0x1f]  ;;  %v2141_v59 = vld [vmem:[#allocation4 + $0x70] sm:$0x1f] }
 0x20f   :  { %1804 = vrot.lane.b32.xlu1 %v1789_v1, %s6686_s25  ;;  %v1612_v33 = vld [vmem:[#allocation4] sm:$0x1f]  ;;  %v2289_v60 = vrot.slane %v2259_v58, 2  ;;  %v2171_v61 = vrot.slane %v2141_v59, 7  ;;  %v1879_v63 = vld [vmem:[#allocation4 + $0x70] sm:$0x1f] }
 0x210   :  { %1925 = vrot.lane.b32.xlu0 %v1908_v30, %s6689_s28  ;;  %1626 = vst [vmem:[#allocation5 + $0xa0] sm:$0x1f] %v1612_v33  ;;  %v2261_v62 = vld [vmem:[#allocation4 + $0x60] sm:$0x1f]  ;;  %v1909_v2 = vrot.slane %v1879_v63, 1 }
 0x211   :  { %v2291_v0 = vrot.slane %v2261_v62, 2  ;;  %v2390_v3 = vld [vmem:[#allocation4 + $0x20] sm:$0x1f]  ;;  %v1631_v4 = vld [vmem:[#allocation4 + $0x70] sm:$0x1f] }
 0x212   :  { %v2420_v5 = vrot.slane %v2390_v3, 5  ;;  %v1661_v6 = vrot.slane %v1631_v4, 3  ;;  %v2392_v7 = vld [vmem:[#allocation4 + $0x60] sm:$0x1f]  ;;  %v1762_v8 = vld [vmem:[#allocation4 + $0x70] sm:$0x1f] }
 0x213   :  { %v1613_v35 = vld [vmem:[#allocation4 + $0x50] sm:$0x1f]  ;;  %2302 = vrot.lane.b32.xlu1 %v2286_v34, %s6679_s18  ;;  %v2422_v9 = vrot.slane %v2392_v7, 5  ;;  %v1792_v10 = vrot.slane %v1762_v8, 6  ;;  %v2011_v11 = vld [vmem:[#allocation4 + $0x20] sm:$0x1f] }
 0x214   :  { %1627 = vst [vmem:[#allocation5 + $0xc8] sm:$0x1f] %v1613_v35  ;;  %1673 = vrot.lane.b32.xlu0 %v1658_v36, %s6685_s24  ;;  %v2041_v12 = vrot.slane %v2011_v11, 4  ;;  %v2013_v14 = vld [vmem:[#allocation4 + $0x60] sm:$0x1f] }
 0x215   :  { %v2508_v17 = vld [vmem:[#allocation4 + $0x10] sm:$0x1f]  ;;  %v2043_v18 = vrot.slane %v2013_v14, 4  ;;  %v2142_v19 = vld [vmem:[#allocation4 + $0x20] sm:$0x1f] }
 0x216   :  { %v2510_v20 = vld [vmem:[#allocation4 + $0x48] sm:$0x1f]  ;;  %v2260_v21 = vld [vmem:[#allocation4 + $0x10] sm:$0x1f]  ;;  %v2172_v22 = vrot.slane %v2142_v19, 7 }
 0x217   :  { %2433 = vrot.lane.b32.xlu1 %v2417_v38, %s6680_s19  ;;  %v2290_v23 = vrot.slane %v2260_v21, 2  ;;  %v2144_v24 = vld [vmem:[#allocation4 + $0x60] sm:$0x1f]  ;;  %v2391_v25 = vld [vmem:[#allocation4 + $0x10] sm:$0x1f] }
 0x218   :  { %2539 = vrot.lane.b32.xlu0 %v2506_v40, %s6681_s20  ;;  %v2174_v26 = vrot.slane %v2144_v24, 7  ;;  %v2421_v27 = vrot.slane %v2391_v25, 5  ;;  %v1880_v28 = vld [vmem:[#allocation4 + $0x20] sm:$0x1f]  ;;  %v2012_v29 = vld [vmem:[#allocation4 + $0x10] sm:$0x1f] }
 0x219   :  { %v1910_v1 = vrot.slane %v1880_v28, 1  ;;  %v2042_v30 = vrot.slane %v2012_v29, 4  ;;  %v1882_v31 = vld [vmem:[#allocation4 + $0x60] sm:$0x1f]  ;;  %v2143_v32 = vld [vmem:[#allocation4 + $0x10] sm:$0x1f] }
 0x21a   :  { %v1912_v33 = vrot.slane %v1882_v31, 1  ;;  %v2173_v34 = vrot.slane %v2143_v32, 7  ;;  %v1632_v35 = vld [vmem:[#allocation4 + $0x20] sm:$0x1f]  ;;  %v1881_v36 = vld [vmem:[#allocation4 + $0x10] sm:$0x1f] }
 0x21b   :  { %2054 = vrot.lane.b32.xlu1 %v2038_v42, %s6690_s29  ;;  %v1662_v37 = vrot.slane %v1632_v35, 3  ;;  %v1911_v38 = vrot.slane %v1881_v36, 1  ;;  %v1634_v39 = vld [vmem:[#allocation4 + $0x60] sm:$0x1f]  ;;  %v1633_v40 = vld [vmem:[#allocation4 + $0x10] sm:$0x1f] }
 0x21c   :  { %1675 = vrot.lane.b32.xlu0 %v1659_v43, %s6685_s24  ;;  %v1664_v41 = vrot.slane %v1634_v39, 3  ;;  %v1663_v42 = vrot.slane %v1633_v40, 3  ;;  %v1763_v43 = vld [vmem:[#allocation4 + $0x20] sm:$0x1f]  ;;  %v1764_v44 = vld [vmem:[#allocation4 + $0x10] sm:$0x1f] }
 0x21d   :  { %v1793_v45 = vrot.slane %v1763_v43, 6  ;;  %v2262_v48 = vld [vmem:[#allocation4 + $0x48] sm:$0x1f]  ;;  %v2264_v39 = vld [vmem:[#allocation4 + $0x30] sm:$0x1f] }
 0x21e   :  { %v2263_v63 = vld [vmem:[#allocation4 + $0x8] sm:$0x1f] }
 0x21f   :  { %2185 = vrot.lane.b32.xlu1 %v2169_v46, %s6691_s30  ;;  %v1794_v46 = vrot.slane %v1764_v44, 6  ;;  %v2293_v3 = vrot.slane %v2263_v63, 2  ;;  %v1883_v7 = vld [vmem:[#allocation4 + $0x48] sm:$0x1f] }
 0x220   :  { %1806 = vrot.lane.b32.xlu0 %v1790_v47, %s6686_s25  ;;  %v1765_v47 = vld [vmem:[#allocation4 + $0x60] sm:$0x1f]  ;;  %v1913_v14 = vrot.slane %v1883_v7, 1  ;;  %v1766_v24 = vld [vmem:[#allocation4 + $0x48] sm:$0x1f] }
 0x221   :  { %v1795_v49 = vrot.slane %v1765_v47, 6  ;;  %v1796_v28 = vrot.slane %v1766_v24, 6  ;;  %v2015_v29 = vld [vmem:[#allocation4 + $0x8] sm:$0x1f]  ;;  %v2395_v47 = vld [vmem:[#allocation4 + $0x30] sm:$0x1f] }
 0x222   :  { %v2017_v32 = vld [vmem:[#allocation4 + $0x68] sm:$0x1f] }
 0x223   :  { %1923 = vrot.lane.b32.xlu1 %v1907_v50, %s6689_s28  ;;  %v2292_v50 = vrot.slane %v2262_v48, 2  ;;  %v2047_v35 = vrot.slane %v2017_v32, 4 }
 0x224   :  { %2306 = vrot.lane.b32.xlu0 %v2288_v51, %s6679_s18  ;;  %v2393_v51 = vld [vmem:[#allocation4 + $0x48] sm:$0x1f] }
 0x225   :  { %v2423_v55 = vrot.slane %v2393_v51, 5 }
 0x227   :  { %2541 = vrot.lane.b32.xlu1 %v2507_v53, %s6681_s20 }
 0x228   :  { %2437 = vrot.lane.b32.xlu0 %v2419_v54, %s6680_s19  ;;  %v2511_v54 = vld [vmem:[#allocation4 + $0x8] sm:$0x1f] }
 0x22b   :  { %2545 = vrot.lane.b32.xlu1 %v2509_v56, %s6681_s20  ;;  %v2014_v56 = vld [vmem:[#allocation4 + $0x48] sm:$0x1f] }
 0x22c   :  { %2058 = vrot.lane.b32.xlu0 %v2040_v57, %s6690_s29  ;;  %v2044_v62 = vrot.slane %v2014_v56, 4 }
 0x22f   :  { %2308 = vrot.lane.b32.xlu1 %v2289_v60, %s6679_s18 }
 0x230   :  { %2189 = vrot.lane.b32.xlu0 %v2171_v61, %s6691_s30  ;;  %v2513_v61 = vld [vmem:[#allocation4 + $0x68] sm:$0x1f] }
 0x233   :  { %2312 = vrot.lane.b32.xlu1 %v2291_v0, %s6679_s18  ;;  %v2145_v0 = vld [vmem:[#allocation4 + $0x48] sm:$0x1f] }
 0x234   :  { %1927 = vrot.lane.b32.xlu0 %v1909_v2, %s6689_s28 }
 0x237   :  { %2439 = vrot.lane.b32.xlu1 %v2420_v5, %s6680_s19  ;;  %v2175_v5 = vrot.slane %v2145_v0, 7 }
 0x238   :  { %1679 = vrot.lane.b32.xlu0 %v1661_v6, %s6685_s24  ;;  %v2265_v6 = vld [vmem:[#allocation4 + $0x68] sm:$0x1f] }
 0x23b   :  { %2443 = vrot.lane.b32.xlu1 %v2422_v9, %s6680_s19  ;;  %v2295_v9 = vrot.slane %v2265_v6, 2 }
 0x23c   :  { %1810 = vrot.lane.b32.xlu0 %v1792_v10, %s6686_s25  ;;  %v2394_v10 = vld [vmem:[#allocation4 + $0x8] sm:$0x1f] }
 0x23f   :  { %2060 = vrot.lane.b32.xlu1 %v2041_v12, %s6690_s29 }
 0x240   :  { %2543 = vrot.lane.b32.xlu0 %v2508_v17, %s6681_s20 }
 0x243   :  { %2064 = vrot.lane.b32.xlu1 %v2043_v18, %s6690_s29  ;;  %v1635_v18 = vld [vmem:[#allocation4 + $0x48] sm:$0x1f] }
 0x244   :  { %2547 = vrot.lane.b32.xlu0 %v2510_v20, %s6681_s20  ;;  %v2424_v20 = vrot.slane %v2394_v10, 5 }
 0x247   :  { %2191 = vrot.lane.b32.xlu1 %v2172_v22, %s6691_s30  ;;  %v1665_v22 = vrot.slane %v1635_v18, 3 }
 0x248   :  { %2310 = vrot.lane.b32.xlu0 %v2290_v23, %s6679_s18  ;;  %v2396_v23 = vld [vmem:[#allocation4 + $0x68] sm:$0x1f] }
 0x24b   :  { %2195 = vrot.lane.b32.xlu1 %v2174_v26, %s6691_s30  ;;  %v2426_v26 = vrot.slane %v2396_v23, 5 }
 0x24c   :  { %2441 = vrot.lane.b32.xlu0 %v2421_v27, %s6680_s19 }
 0x24f   :  { %1929 = vrot.lane.b32.xlu1 %v1910_v1, %s6689_s28 }
 0x250   :  { %2062 = vrot.lane.b32.xlu0 %v2042_v30, %s6690_s29  ;;  %v2045_v30 = vrot.slane %v2015_v29, 4 }
 0x253   :  { %1933 = vrot.lane.b32.xlu1 %v1912_v33, %s6689_s28  ;;  %v2512_v33 = vld [vmem:[#allocation4 + $0x30] sm:$0x1f] }
 0x254   :  { %2193 = vrot.lane.b32.xlu0 %v2173_v34, %s6691_s30 }
 0x257   :  { %1681 = vrot.lane.b32.xlu1 %v1662_v37, %s6685_s24  ;;  %v2146_v37 = vld [vmem:[#allocation4 + $0x8] sm:$0x1f] }
 0x258   :  { %1931 = vrot.lane.b32.xlu0 %v1911_v38, %s6689_s28  ;;  %v2514_v38 = vld [vmem:[#allocation4 + $0x58] sm:$0x1f] }
 0x25b   :  { %1685 = vrot.lane.b32.xlu1 %v1664_v41, %s6685_s24  ;;  %v2176_v41 = vrot.slane %v2146_v37, 7 }
 0x25c   :  { %1683 = vrot.lane.b32.xlu0 %v1663_v42, %s6685_s24 }
 0x25f   :  { %1812 = vrot.lane.b32.xlu1 %v1793_v45, %s6686_s25  ;;  %v2294_v45 = vrot.slane %v2264_v39, 2 }
 0x260   :  { %1814 = vrot.lane.b32.xlu0 %v1794_v46, %s6686_s25  ;;  %v2148_v46 = vld [vmem:[#allocation4 + $0x68] sm:$0x1f] }
 0x263   :  { %1816 = vrot.lane.b32.xlu1 %v1795_v49, %s6686_s25  ;;  %v2178_v49 = vrot.slane %v2148_v46, 7 }
 0x264   :  { %2314 = vrot.lane.b32.xlu0 %v2292_v50, %s6679_s18 }
 0x265   :  { %v7512_v52 = vpop.permute.xlu1 %2537 }
 0x266   :  { %v2534_v53 = vpop.permute.xlu0 %2533 }
 0x267   :  { %2549 = vrot.lane.b32.xlu1 %v2511_v54, %s6681_s20  ;;  %v2425_v54 = vrot.slane %v2395_v47, 5 }
 0x268   :  { %2445 = vrot.lane.b32.xlu0 %v2423_v55, %s6680_s19  ;;  %v1884_v55 = vld [vmem:[#allocation4 + $0x8] sm:$0x1f] }
 0x269   :  { %v2536_v57 = vpop.permute.xlu1 %2535 }
 0x26a   :  { %v2563_v58 = vsel %vm611_vm1, %v2534_v53, %v2536_v57  ;;  %v2564_v59 = vsel %vm611_vm1, %v2536_v57, %v7512_v52  ;;  %v7519_v60 = vpop.permute.xlu0 %2304  ;;  %v2016_v57 = vld [vmem:[#allocation4 + $0x30] sm:$0x1f] }
 0x26b   :  { %2591 = vst [vmem:[#allocation5 + $0x68] sm:$0x1f] %v2563_v58  ;;  %2592 = vst [vmem:[#allocation5 + $0x108] sm:$0x1f] %v2564_v59  ;;  %2553 = vrot.lane.b32.xlu1 %v2513_v61, %s6681_s20  ;;  %v1914_v59 = vrot.slane %v1884_v55, 1  ;;  %v2046_v0 = vrot.slane %v2016_v57, 4 }
 0x26c   :  { %2066 = vrot.lane.b32.xlu0 %v2044_v62, %s6690_s29 }
 0x26d   :  { %v2301_v2 = vpop.permute.xlu1 %2300 }
 0x26e   :  { %v7523_v4 = vpop.permute.xlu0 %2435 }
 0x26f   :  { %2316 = vrot.lane.b32.xlu1 %v2293_v3, %s6679_s18 }
 0x270   :  { %2197 = vrot.lane.b32.xlu0 %v2175_v5, %s6691_s30  ;;  %v2147_v5 = vld [vmem:[#allocation4 + $0x30] sm:$0x1f] }
 0x271   :  { %v7527_v8 = vpop.permute.xlu1 %2052 }
 0x272   :  { %v2432_v11 = vpop.permute.xlu0 %2431  ;;  %v2678_v12 = vld [vmem:[#allocation5 + $0x108] sm:$0x1f] }
 0x273   :  { %v2677_v17 = vld [vmem:[#allocation5 + $0x68] sm:$0x1f]  ;;  %6543 = vmatprep.subr.msk.mxu0 %vm2710_vm6, %v2678_v12  ;;  %2320 = vrot.lane.b32.xlu1 %v2295_v9, %s6679_s18  ;;  %v2177_v12 = vrot.slane %v2147_v5, 7 }
 0x274   :  { %1935 = vrot.lane.b32.xlu0 %v1913_v14, %s6689_s28  ;;  %6544 = vmatpush1.msk.msra.mxu0 %vm2710_vm6, %v2677_v17  ;;  %v1636_v17 = vld [vmem:[#allocation4 + $0x8] sm:$0x1f] }
 0x275   :  { %v7533_v19 = vpop.permute.xlu1 %1921  ;;  %v1666_v24 = vrot.slane %v1636_v17, 3 }
 0x276   :  { %v7535_v21 = vpop.permute.xlu0 %2056 }
 0x277   :  { %2447 = vrot.lane.b32.xlu1 %v2424_v20, %s6680_s19 }
 0x278   :  { %1687 = vrot.lane.b32.xlu0 %v1665_v22, %s6685_s24  ;;  %v1885_v22 = vld [vmem:[#allocation4 + $0x30] sm:$0x1f] }
 0x279   :  { %v7539_v25 = vpop.permute.xlu1 %1677 }
 0x27a   :  { %v7541_v27 = vpop.permute.xlu0 %2187 }
 0x27b   :  { %2451 = vrot.lane.b32.xlu1 %v2426_v26, %s6680_s19 }
 0x27c   :  { %1818 = vrot.lane.b32.xlu0 %v1796_v28, %s6686_s25 }
 0x27d   :  { %v7545_v1 = vpop.permute.xlu1 %1808 }
 0x27e   :  { %v2184_v31 = vpop.permute.xlu0 %2183 }
 0x27f   :  { %2068 = vrot.lane.b32.xlu1 %v2045_v30, %s6690_s29  ;;  %v1915_v30 = vrot.slane %v1885_v22, 1 }
 0x280   :  { %2551 = vrot.lane.b32.xlu0 %v2512_v33, %s6681_s20  ;;  %v1637_v33 = vld [vmem:[#allocation4 + $0x30] sm:$0x1f] }
 0x281   :  { %v1805_v34 = vpop.permute.xlu1 %1804  ;;  %v1667_v39 = vrot.slane %v1637_v33, 3 }
 0x282   :  { %v7549_v36 = vpop.permute.xlu0 %1925 }
 0x283   :  { %2072 = vrot.lane.b32.xlu1 %v2047_v35, %s6690_s29 }
 0x284   :  { %2555 = vrot.lane.b32.xlu0 %v2514_v38, %s6681_s20 }
 0x285   :  { %v2303_v40 = vpop.permute.xlu1 %2302 }
 0x286   :  { %v2330_v42 = vsel %vm567_vm14, %v2301_v2, %v2303_v40  ;;  %v2331_v43 = vsel %vm567_vm14, %v2303_v40, %v7519_v60  ;;  %v1674_v44 = vpop.permute.xlu0 %1673  ;;  %v1886_v2 = vld [vmem:[#allocation4 + $0x68] sm:$0x1f] }
 0x287   :  { %2358 = vst [vmem:[#allocation5 + $0xb8] ss:$-52 sps:$4 sm:$0xc7] %v2330_v42   ;;  %2359 = vst [vmem:[#allocation5 + $0x138] ss:$-292 sps:$4 sm:$0xc7] %v2331_v43   ;;  %2199 = vrot.lane.b32.xlu1 %v2176_v41, %s6691_s30 }
 0x288   :  { %2318 = vrot.lane.b32.xlu0 %v2294_v45, %s6679_s18  ;;  %v1916_v7 = vrot.slane %v1886_v2, 1  ;;  %v1767_v41 = vld [vmem:[#allocation4 + $0x8] sm:$0x1f]  ;;  %v1768_v42 = vld [vmem:[#allocation4 + $0x30] sm:$0x1f] }
 0x289   :  { %v2434_v48 = vpop.permute.xlu1 %2433  ;;  %v1798_v47 = vrot.slane %v1768_v42, 6 }
 0x28a   :  { %v2461_v50 = vsel %vm589_vm15, %v2432_v11, %v2434_v48  ;;  %v2462_v51 = vsel %vm589_vm15, %v2434_v48, %v7523_v4  ;;  %v7561_v53 = vpop.permute.xlu0 %2539 }
 0x28b   :  { %2489 = vst [vmem:[#allocation5 + $0xb8] sm:$0xf8] %v2461_v50  ;;  %2490 = vst [vmem:[#allocation5 + $0x138] sm:$0xf8] %v2462_v51  ;;  %v2565_v56 = vsel %vm611_vm1, %v7512_v52, %v7561_v53  ;;  %2203 = vrot.lane.b32.xlu1 %v2178_v49, %s6691_s30  ;;  %v1769_v49 = vld [vmem:[#allocation4 + $0x68] sm:$0x1f] }
 0x28c   :  { %2593 = vst [vmem:[#allocation5 + $0x178] sm:$0x1f] %v2565_v56  ;;  %2449 = vrot.lane.b32.xlu0 %v2425_v54, %s6680_s19  ;;  %v2266_v50 = vld [vmem:[#allocation4 + $0x58] sm:$0x1f]  ;;  %v1799_v55 = vrot.slane %v1769_v49, 6 }
 0x28d   :  { %v2055_v58 = vpop.permute.xlu1 %2054 }
 0x28e   :  { %v2082_v61 = vsel %vm479_vm12, %v7527_v8, %v2055_v58  ;;  %v2083_v62 = vsel %vm479_vm12, %v2055_v58, %v7535_v21  ;;  %v1676_v63 = vpop.permute.xlu0 %1675 }
 0x28f   :  { %2110 = vst [vmem:[#allocation5 + $0x80] ss:$380 sps:$4 sm:$0xf1] %v2082_v61   ;;  %2111 = vst [vmem:[#allocation5 + $0x10] ss:$476 sps:$4 sm:$0xf1] %v2083_v62   ;;  %v1703_v52 = vsel %vm369_vm7, %v1674_v44, %v1676_v63  ;;  %v1704_v3 = vsel %vm369_vm7, %v1676_v63, %v7539_v25  ;;  %1937 = vrot.lane.b32.xlu1 %v1914_v59, %s6689_s28 }
 0x290   :  { %1731 = vst [vmem:[#allocation5 + $0x70] ss:$-28 sps:$4 sm:$0xe3] %v1703_v52   ;;  %1732 = vst [vmem:[#allocation5 + $0x190] ss:$236 sps:$4 sm:$0xe3] %v1704_v3   ;;  %2070 = vrot.lane.b32.xlu0 %v2046_v0, %s6690_s29 }
 0x291   :  { %v2186_v6 = vpop.permute.xlu1 %2185  ;;  %v1797_v44 = vrot.slane %v1767_v41, 6  ;;  %v7627_v62 = vld [vmem:[%s8058_s3] sm:$0xff]  ;;  %v2397_v63 = vld [vmem:[#allocation4 + $0x58] sm:$0x1f] }
 0x292   :  { %v2213_v8 = vsel %vm501_vm13, %v2184_v31, %v2186_v6  ;;  %v2214_v9 = vsel %vm501_vm13, %v2186_v6, %v7541_v27  ;;  %v1807_v10 = vpop.permute.xlu0 %1806  ;;  %v2664_v11 = vld [vmem:[#allocation5 + $0x138] sm:$0xff]  ;;  %v1638_v31 = vld [vmem:[#allocation4 + $0x68] sm:$0x1f]  ;;  %v2515_v3 = vld [vmem:[#allocation4] sm:$0x1f]  ;;  %v2427_v5 = vrot.slane %v2397_v63, 5 }
 0x293   :  { %v2663_v14 = vld [vmem:[#allocation5 + $0xb8] sm:$0xff]  ;;  %2241 = vst [vmem:[#allocation5 + $0x80] sm:$0x3e] %v2213_v8  ;;  %2242 = vst [vmem:[#allocation5 + $0x10] sm:$0x3e] %v2214_v9  ;;  %v1834_v18 = vsel %vm391_vm8, %v1805_v34, %v1807_v10  ;;  %v1835_v20 = vsel %vm391_vm8, %v1807_v10, %v7545_v1  ;;  %1941 = vrot.lane.b32.xlu1 %v1916_v7, %s6689_s28  ;;  %2775 = vmatprep.subr.mxu0 %v2664_v11 }
 0x294   :  { %1862 = vst [vmem:[#allocation5 + $0x70] sm:$0x7c] %v1834_v18  ;;  %1863 = vst [vmem:[#allocation5 + $0x190] sm:$0x7c] %v1835_v20  ;;  %2201 = vrot.lane.b32.xlu0 %v2177_v12, %s6691_s30  ;;  %2776 = vmatpush1.msra.mxu0 %v2663_v14  ;;  %v2679_v2 = vld [vmem:[#allocation5 + $0x178] sm:$0x1f] }
 0x295   :  { %v1924_v23 = vpop.permute.xlu1 %1923  ;;  %v2018_v7 = vld [vmem:[#allocation4 + $0x58] sm:$0x1f]  ;;  %v7646_v8 = vld [vmem:[%s8058_s3 + $0x8] sm:$0x3]  ;;  %v2517_v11 = vld [vmem:[#allocation4 + $0x40] sm:$0x1f] }
 0x296   :  { %v1951_v26 = vsel %vm457_vm11, %v7533_v19, %v1924_v23  ;;  %v1952_v28 = vsel %vm457_vm11, %v1924_v23, %v7549_v36  ;;  %v2307_v29 = vpop.permute.xlu0 %2306  ;;  %v1668_v19 = vrot.slane %v1638_v31, 3  ;;  %v2048_v12 = vrot.slane %v2018_v7, 4  ;;  %v2267_v14 = vld [vmem:[#allocation4] sm:$0x1f]  ;;  %v2149_v18 = vld [vmem:[#allocation4 + $0x58] sm:$0x1f] }
 0x297   :  { %1979 = vst [vmem:[#allocation5 + $0x1f8] ss:$-388 sps:$4 sm:$0x8f] %v1951_v26   ;;  %1980 = vst [vmem:[#allocation5 + $0x1e8] ss:$-84 sps:$4 sm:$0x8f] %v1952_v28   ;;  %v2332_v32 = vsel %vm567_vm14, %v7519_v60, %v2307_v29  ;;  %1689 = vrot.lane.b32.xlu1 %v1666_v24, %s6685_s24 }
 0x298   :  { %2360 = vst [vmem:[#allocation5 + $0xd0] ss:$-28 sps:$4 sm:$0xc7] %v2332_v32   ;;  %1939 = vrot.lane.b32.xlu0 %v1915_v30, %s6689_s28  ;;  %v2608_v58 = vld [vmem:[#allocation5 + $0x278] sm:$0xff]  ;;  %v2607_v0 = vld [vmem:[#allocation5 + $0x50] sm:$0xff]  ;;  %v2297_v22 = vrot.slane %v2267_v14, 2 }
 0x299   :  { %v7593_v34 = vpop.permute.xlu1 %2541  ;;  %v2179_v24 = vrot.slane %v2149_v18, 7  ;;  %v2269_v26 = vld [vmem:[#allocation4 + $0x40] sm:$0x1f]  ;;  %v2268_v63 = vld [vmem:[#allocation4 + $0x50] sm:$0x1f] }
 0x29a   :  { %v2566_v35 = vsel %vm611_vm1, %v7561_v53, %v7593_v34  ;;  %v7598_v37 = vpop.permute.xlu0 %2437  ;;  %v2650_v38 = vld [vmem:[#allocation5 + $0x10] sm:$0xff]  ;;  %v2649_v40 = vld [vmem:[#allocation5 + $0x80] sm:$0xff]  ;;  %v2299_v30 = vrot.slane %v2269_v26, 2  ;;  %v2399_v14 = vld [vmem:[#allocation4 + $0x50] sm:$0x1f] }
 0x29b   :  { %2594 = vst [vmem:[#allocation5 + $0x90] sm:$0x1f] %v2566_v35  ;;  %v2463_v60 = vsel %vm589_vm15, %v7523_v4, %v7598_v37  ;;  %1693 = vrot.lane.b32.xlu1 %v1668_v19, %s6685_s24  ;;  %2777 = vmatprep.subr.mxu0 %v2650_v38  ;;  %v2398_v35 = vld [vmem:[#allocation4] sm:$0x1f] }
 0x29c   :  { %2491 = vst [vmem:[#allocation5 + $0xd0] sm:$0xf8] %v2463_v60  ;;  %1691 = vrot.lane.b32.xlu0 %v1667_v39, %s6685_s24  ;;  %2778 = vmatpush1.msra.mxu0 %v2649_v40  ;;  %v1639_v39 = vld [vmem:[#allocation4 + $0x58] sm:$0x1f]  ;;  %v2428_v41 = vrot.slane %v2398_v35, 5 }
 0x29d   :  { %v7605_v43 = vpop.permute.xlu1 %2545  ;;  %v1669_v42 = vrot.slane %v1639_v39, 3 }
 0x29e   :  { %v7607_v45 = vpop.permute.xlu0 %2058  ;;  %v2636_v46 = vld [vmem:[#allocation5 + $0x1e8] sm:$0xff]  ;;  %v2635_v48 = vld [vmem:[#allocation5 + $0x1f8] sm:$0xff]  ;;  %v2622_v51 = vld [vmem:[#allocation5 + $0x190] sm:$0xff] }
 0x29f   :  { %v2084_v4 = vsel %vm479_vm12, %v7535_v21, %v7607_v45  ;;  %1820 = vrot.lane.b32.xlu1 %v1797_v44, %s6686_s25  ;;  %2779 = vmatprep.subr.mxu0 %v2636_v46  ;;  %v2621_v54 = vld [vmem:[#allocation5 + $0x70] sm:$0xff]  ;;  %v2296_v21 = vrot.slane %v2266_v50, 2  ;;  %v2019_v50 = vld [vmem:[#allocation4] sm:$0x1f] }
 0x2a0   :  { %2112 = vst [vmem:[#allocation5 + $0xb0] ss:$212 sps:$4 sm:$0xf1] %v2084_v4   ;;  %1822 = vrot.lane.b32.xlu0 %v1798_v47, %s6686_s25  ;;  %2780 = vmatpush1.msra.mxu0 %v2635_v48 }
 0x2a1   :  { %v7614_v53 = vpop.permute.xlu1 %2308  ;;  %2781 = vmatprep.subr.mxu0 %v2622_v51 }
 0x2a2   :  { %v2333_v56 = vsel %vm567_vm14, %v2307_v29, %v7614_v53  ;;  %v7618_v57 = vpop.permute.xlu0 %2189  ;;  %2782 = vmatpush1.msra.mxu0 %v2621_v54  ;;  %v2680_v59 = vld [vmem:[#allocation5 + $0x90] sm:$0x1f] }
 0x2a3   :  { %2361 = vst [vmem:[#allocation5 + $0x60] ss:$388 sps:$4 sm:$0xc7] %v2333_v56   ;;  %v2215_v61 = vsel %vm501_vm13, %v7541_v27, %v7618_v57  ;;  %1824 = vrot.lane.b32.xlu1 %v1799_v55, %s6686_s25  ;;  %2783 = vmatprep.subr.mxu0 %v2608_v58  ;;  %v2665_v38 = vld [vmem:[#allocation5 + $0xd0] sm:$0xff] }
 0x2a4   :  { %2243 = vst [vmem:[#allocation5 + $0xb0] sm:$0x3e] %v2215_v61  ;;  %2322 = vrot.lane.b32.xlu0 %v2296_v21, %s6679_s18  ;;  %6547 = vmatprep.subr.msk.mxu1 %vm2710_vm6, %v2680_v59  ;;  %v2516_v61 = vld [vmem:[#allocation4 + $0x50] sm:$0x1f] }
 0x2a5   :  { %2784 = vmatpush1.msra.mxu0 %v2607_v0  ;;  %6548 = vmatpush1.msk.msra.mxu1 %vm2710_vm6, %v2679_v2  ;;  %v7632_v27 = vpop.permute.xlu1 %2312 }
 0x2a6   :  { %v7634_v52 = vpop.permute.xlu0 %1927  ;;  %6545 = vmatmul.mubr.msk.f32.vlgmr.msra.gmra.mxu0 %vm2703_vm4, %v7627_v62 }
 0x2a7   :  { %v1953_v6 = vsel %vm457_vm11, %v7549_v36, %v7634_v52  ;;  %2557 = vrot.lane.b32.xlu1 %v2515_v3, %s6681_s20  ;;  %2823 = vmatprep.mubr.f32.mxu0 %v6692_v16 }
 0x2a8   :  { %1981 = vst [vmem:[#allocation5 + $0x180] ss:$-324 sps:$4 sm:$0x8f] %v1953_v6   ;;  %2453 = vrot.lane.b32.xlu0 %v2427_v5, %s6680_s19  ;;  %v2298_v6 = vrot.slane %v2268_v63, 2 }
 0x2a9   :  { %v7649_v9 = vpop.permute.xlu1 %2439 }
 0x2aa   :  { %v2464_v10 = vsel %vm589_vm15, %v7598_v37, %v7649_v9  ;;  %v7654_v36 = vpop.permute.xlu0 %1679  ;;  %6546 = vmatmul.mubr.msk.f32.gmra.mxu0 %vm2703_vm4, %v7646_v8 }
 0x2ab   :  { %2492 = vst [vmem:[#allocation5 + $0x60] sm:$0xf8] %v2464_v10  ;;  %v1705_v17 = vsel %vm369_vm7, %v7539_v25, %v7654_v36  ;;  %2561 = vrot.lane.b32.xlu1 %v2517_v11, %s6681_s20  ;;  %2971 = vmatprep.mubr.f32.mxu0 %v6692_v16  ;;  %v1887_v25 = vld [vmem:[#allocation4 + $0x58] sm:$0x1f] }
 0x2ac   :  { %1733 = vst [vmem:[#allocation5 + $0x38] ss:$252 sps:$4 sm:$0xe3] %v1705_v17   ;;  %2074 = vrot.lane.b32.xlu0 %v2048_v12, %s6690_s29  ;;  %v1917_v33 = vrot.slane %v1887_v25, 1  ;;  %v2651_v12 = vld [vmem:[#allocation5 + $0xb0] sm:$0xff] }
 0x2ad   :  { %v7664_v20 = vpop.permute.xlu1 %2443 }
 0x2ae   :  { %v7666_v23 = vpop.permute.xlu0 %1810 }
 0x2af   :  { %v1836_v28 = vsel %vm391_vm8, %v7545_v1, %v7666_v23  ;;  %2324 = vrot.lane.b32.xlu1 %v2297_v22, %s6679_s18  ;;  %v2429_v22 = vrot.slane %v2399_v14, 5 }
 0x2b0   :  { %1864 = vst [vmem:[#allocation5 + $0x38] sm:$0x7c] %v1836_v28  ;;  %2205 = vrot.lane.b32.xlu0 %v2179_v24, %s6691_s30  ;;  %v2152_v24 = vld [vmem:[#allocation4 + $0x40] sm:$0x1f] }
 0x2b1   :  { %v7673_v29 = vpop.permute.xlu1 %2060 }
 0x2b2   :  { %v2085_v31 = vsel %vm479_vm12, %v7607_v45, %v7673_v29  ;;  %v2544_v32 = vpop.permute.xlu0 %2543  ;;  %v2666_v19 = vld [vmem:[#allocation5 + $0x60] sm:$0xff] }
 0x2b3   :  { %2113 = vst [vmem:[#allocation5 + $0x1e0] ss:$-324 sps:$4 sm:$0xf1] %v2085_v31   ;;  %v2567_v1 = vsel %vm611_vm1, %v7593_v34, %v2544_v32  ;;  %v2568_v37 = vsel %vm611_vm1, %v2544_v32, %v7605_v43  ;;  %2328 = vrot.lane.b32.xlu1 %v2299_v30, %s6679_s18  ;;  %2852 = vmatprep.subr.mxu1 %v2666_v19  ;;  %v2400_v34 = vld [vmem:[#allocation4 + $0x40] sm:$0x1f]  ;;  %v2182_v32 = vrot.slane %v2152_v24, 7 }
 0x2b4   :  { %2595 = vst [vmem:[#allocation5 + $0x228] sm:$0x1f] %v2567_v1  ;;  %2596 = vst [vmem:[#allocation5 + $0x218] sm:$0x1f] %v2568_v37  ;;  %1943 = vrot.lane.b32.xlu0 %v1917_v33, %s6689_s28  ;;  %2853 = vmatpush1.msra.mxu1 %v2665_v38  ;;  %v1770_v45 = vld [vmem:[#allocation4 + $0x58] sm:$0x1f] }
 0x2b5   :  { %v7684_v40 = vpop.permute.xlu1 %2064  ;;  %v2430_v47 = vrot.slane %v2400_v34, 5  ;;  %v1800_v4 = vrot.slane %v1770_v45, 6  ;;  %v2020_v30 = vld [vmem:[#allocation4 + $0x50] sm:$0x1f]  ;;  %v1888_v37 = vld [vmem:[#allocation4] sm:$0x1f] }
 0x2b6   :  { %v7686_v60 = vpop.permute.xlu0 %2547  ;;  %v2050_v35 = vrot.slane %v2020_v30, 4  ;;  %v1918_v34 = vrot.slane %v1888_v37, 1  ;;  %v1773_v30 = vld [vmem:[#allocation4 + $0x40] sm:$0x1f] }
 0x2b7   :  { %v2569_v44 = vsel %vm611_vm1, %v7605_v43, %v7686_v60  ;;  %2455 = vrot.lane.b32.xlu1 %v2428_v41, %s6680_s19  ;;  %v2637_v41 = vld [vmem:[#allocation5 + $0x180] sm:$0xff] }
 0x2b8   :  { %2597 = vst [vmem:[#allocation5 + $0x270] sm:$0x1f] %v2569_v44  ;;  %1695 = vrot.lane.b32.xlu0 %v1669_v42, %s6685_s24  ;;  %v2151_v42 = vld [vmem:[#allocation4 + $0x50] sm:$0x1f] }
 0x2b9   :  { %v2192_v46 = vpop.permute.xlu1 %2191  ;;  %v2181_v45 = vrot.slane %v2151_v42, 7 }
 0x2ba   :  { %v2216_v48 = vsel %vm501_vm13, %v7618_v57, %v2192_v46  ;;  %v2311_v49 = vpop.permute.xlu0 %2310  ;;  %v2049_v57 = vrot.slane %v2019_v50, 4  ;;  %v1889_v50 = vld [vmem:[#allocation4 + $0x50] sm:$0x1f] }
 0x2bb   :  { %2244 = vst [vmem:[#allocation5 + $0x1e0] sm:$0x3e] %v2216_v48  ;;  %v2334_v51 = vsel %vm567_vm14, %v7614_v53, %v2311_v49  ;;  %v2335_v43 = vsel %vm567_vm14, %v2311_v49, %v7632_v27  ;;  %2459 = vrot.lane.b32.xlu1 %v2430_v47, %s6680_s19  ;;  %v2682_v54 = vld [vmem:[#allocation5 + $0x218] sm:$0x1f]  ;;  %v2681_v55 = vld [vmem:[#allocation5 + $0x228] sm:$0x1f] }
 0x2bc   :  { %2362 = vst [vmem:[#allocation5 + $0x18] ss:$204 sps:$4 sm:$0xc7] %v2334_v51   ;;  %2363 = vst [vmem:[#allocation5 + $0x238] ss:$-276 sps:$4 sm:$0xc7] %v2335_v43   ;;  %1826 = vrot.lane.b32.xlu0 %v1800_v4, %s6686_s25  ;;  %6551 = vmatprep.subr.msk.mxu0 %vm2710_vm6, %v2682_v54 }
 0x2bd   :  { %6552 = vmatpush1.msk.msra.mxu0 %vm2710_vm6, %v2681_v55  ;;  %v7703_v56 = vpop.permute.xlu1 %2195  ;;  %v2021_v53 = vld [vmem:[#allocation4 + $0x40] sm:$0x1f] }
 0x2be   :  { %v2442_v21 = vpop.permute.xlu0 %2441  ;;  %v2051_v2 = vrot.slane %v2021_v53, 4 }
 0x2bf   :  { %v2465_v58 = vsel %vm589_vm15, %v7649_v9, %v2442_v21  ;;  %v2466_v59 = vsel %vm589_vm15, %v2442_v21, %v7664_v20  ;;  %2076 = vrot.lane.b32.xlu1 %v2049_v57, %s6690_s29  ;;  %v2150_v9 = vld [vmem:[#allocation4] sm:$0x1f]  ;;  %v1919_v57 = vrot.slane %v1889_v50, 1 }
 0x2c0   :  { %2493 = vst [vmem:[#allocation5 + $0x18] sm:$0xf8] %v2465_v58  ;;  %2494 = vst [vmem:[#allocation5 + $0x238] sm:$0xf8] %v2466_v59  ;;  %2559 = vrot.lane.b32.xlu0 %v2516_v61, %s6681_s20  ;;  %v2180_v17 = vrot.slane %v2150_v9, 7 }
 0x2c1   :  { %v1930_v0 = vpop.permute.xlu1 %1929  ;;  %v1640_v21 = vld [vmem:[#allocation4] sm:$0x1f]  ;;  %v1641_v61 = vld [vmem:[#allocation4 + $0x50] sm:$0x1f] }
 0x2c2   :  { %v1954_v3 = vsel %vm457_vm11, %v7634_v52, %v1930_v0  ;;  %v2063_v5 = vpop.permute.xlu0 %2062  ;;  %v2652_v7 = vld [vmem:[#allocation5 + $0x1e0] sm:$0xff] }
 0x2c3   :  { %1982 = vst [vmem:[#allocation5 + $0x98] ss:$260 sps:$4 sm:$0x8f] %v1954_v3   ;;  %v2086_v10 = vsel %vm479_vm12, %v7673_v29, %v2063_v5  ;;  %v2087_v11 = vsel %vm479_vm12, %v2063_v5, %v7684_v40  ;;  %2080 = vrot.lane.b32.xlu1 %v2051_v2, %s6690_s29  ;;  %2854 = vmatprep.subr.mxu1 %v2652_v7  ;;  %v1671_v3 = vrot.slane %v1641_v61, 3  ;;  %v1642_v5 = vld [vmem:[#allocation4 + $0x40] sm:$0x1f] }
 0x2c4   :  { %2114 = vst [vmem:[#allocation5 + $0xe0] ss:$36 sps:$4 sm:$0xf1] %v2086_v10   ;;  %2115 = vst [vmem:[#allocation5 + $0x120] ss:$148 sps:$4 sm:$0xf1] %v2087_v11   ;;  %2326 = vrot.lane.b32.xlu0 %v2298_v6, %s6679_s18  ;;  %2855 = vmatpush1.msra.mxu1 %v2651_v12 }
 0x2c5   :  { %v7719_v52 = vpop.permute.xlu1 %1933  ;;  %v1772_v7 = vld [vmem:[#allocation4 + $0x50] sm:$0x1f]  ;;  %v1672_v10 = vrot.slane %v1642_v5, 3 }
 0x2c6   :  { %v2194_v18 = vpop.permute.xlu0 %2193  ;;  %v1802_v14 = vrot.slane %v1772_v7, 6 }
 0x2c7   :  { %v2217_v26 = vsel %vm501_vm13, %v2192_v46, %v2194_v18  ;;  %v2218_v28 = vsel %vm501_vm13, %v2194_v18, %v7703_v56  ;;  %2207 = vrot.lane.b32.xlu1 %v2180_v17, %s6691_s30  ;;  %v2668_v25 = vld [vmem:[#allocation5 + $0x238] sm:$0xff]  ;;  %v1890_v46 = vld [vmem:[#allocation4 + $0x40] sm:$0x1f] }
 0x2c8   :  { %v2667_v29 = vld [vmem:[#allocation5 + $0x18] sm:$0xff]  ;;  %2245 = vst [vmem:[#allocation5 + $0xe0] sm:$0x3e] %v2217_v26  ;;  %2246 = vst [vmem:[#allocation5 + $0x120] sm:$0x3e] %v2218_v28  ;;  %2457 = vrot.lane.b32.xlu0 %v2429_v22, %s6680_s19  ;;  %2929 = vmatprep.subr.mxu0 %v2668_v25  ;;  %v1920_v43 = vrot.slane %v1890_v46, 1 }
 0x2c9   :  { %2930 = vmatpush1.msra.mxu0 %v2667_v29  ;;  %v1682_v31 = vpop.permute.xlu1 %1681  ;;  %v1771_v18 = vld [vmem:[#allocation4] sm:$0x1f]  ;;  %v2623_v22 = vld [vmem:[#allocation5 + $0x38] sm:$0xff] }
 0x2ca   :  { %v1706_v33 = vsel %vm369_vm7, %v7654_v36, %v1682_v31  ;;  %v1932_v19 = vpop.permute.xlu0 %1931  ;;  %v2638_v1 = vld [vmem:[#allocation5 + $0x98] sm:$0xff]  ;;  %v1801_v28 = vrot.slane %v1771_v18, 6  ;;  %v2691_v25 = vld [vmem:[%s8059_s4] sm:$0xff] }
 0x2cb   :  { %1734 = vst [vmem:[#allocation5 + $0x198] ss:$-356 sps:$4 sm:$0xe3] %v1706_v33   ;;  %v1955_v38 = vsel %vm457_vm11, %v1930_v0, %v1932_v19  ;;  %v1956_v39 = vsel %vm457_vm11, %v1932_v19, %v7719_v52  ;;  %2211 = vrot.lane.b32.xlu1 %v2182_v32, %s6691_s30  ;;  %2856 = vmatprep.subr.mxu1 %v2638_v1  ;;  %v1670_v0 = vrot.slane %v1640_v21, 3 }
 0x2cc   :  { %1983 = vst [vmem:[#allocation5 + $0x100] ss:$404 sps:$4 sm:$0x8f] %v1955_v38   ;;  %1984 = vst [vmem:[#allocation5 + $0x1b0] ss:$220 sps:$4 sm:$0x8f] %v1956_v39   ;;  %2078 = vrot.lane.b32.xlu0 %v2050_v35, %s6690_s29  ;;  %2857 = vmatpush1.msra.mxu1 %v2637_v41 }
 0x2cd   :  { %v7733_v36 = vpop.permute.xlu1 %1685  ;;  %v1803_v35 = vrot.slane %v1773_v30, 6  ;;  %v2683_v41 = vld [vmem:[#allocation5 + $0x270] sm:$0x1f] }
 0x2ce   :  { %v1684_v44 = vpop.permute.xlu0 %1683 }
 0x2cf   :  { %v1707_v47 = vsel %vm369_vm7, %v1682_v31, %v1684_v44  ;;  %v1708_v48 = vsel %vm369_vm7, %v1684_v44, %v7733_v36  ;;  %1945 = vrot.lane.b32.xlu1 %v1918_v34, %s6689_s28  ;;  %v2654_v49 = vld [vmem:[#allocation5 + $0x120] sm:$0xff] }
 0x2d0   :  { %v2653_v4 = vld [vmem:[#allocation5 + $0xe0] sm:$0xff]  ;;  %1735 = vst [vmem:[#allocation5 + $0x290] ss:$-532 sps:$4 sm:$0xe3] %v1707_v47   ;;  %2209 = vrot.lane.b32.xlu0 %v2181_v45, %s6691_s30  ;;  %2931 = vmatprep.subr.mxu0 %v2654_v49 }
 0x2d1   :  { %1736 = vst [vmem:[#allocation5 + $0x288] ss:$-428 sps:$4 sm:$0xe3] %v1708_v48   ;;  %2932 = vmatpush1.msra.mxu0 %v2653_v4  ;;  %v1813_v51 = vpop.permute.xlu1 %1812  ;;  %v2692_v48 = vld [vmem:[%s8059_s4 + $0x8] sm:$0x3] }
 0x2d2   :  { %v1837_v54 = vsel %vm391_vm8, %v7666_v23, %v1813_v51  ;;  %v1815_v55 = vpop.permute.xlu0 %1814  ;;  %v2610_v24 = vld [vmem:[#allocation5 + $0x30] sm:$0xff] }
 0x2d3   :  { %1865 = vst [vmem:[#allocation5 + $0x198] sm:$0x7c] %v1837_v54  ;;  %v1838_v53 = vsel %vm391_vm8, %v1813_v51, %v1815_v55  ;;  %1949 = vrot.lane.b32.xlu1 %v1920_v43, %s6689_s28  ;;  %v2640_v58 = vld [vmem:[#allocation5 + $0x1b0] sm:$0xff]  ;;  %v2639_v59 = vld [vmem:[#allocation5 + $0x100] sm:$0xff] }
 0x2d4   :  { %1866 = vst [vmem:[#allocation5 + $0x290] sm:$0x7c] %v1838_v53  ;;  %1947 = vrot.lane.b32.xlu0 %v1919_v57, %s6689_s28  ;;  %2933 = vmatprep.subr.mxu0 %v2640_v58 }
 0x2d5   :  { %2934 = vmatpush1.msra.mxu0 %v2639_v59  ;;  %v7745_v63 = vpop.permute.xlu1 %1816 }
 0x2d6   :  { %v1839_v23 = vsel %vm391_vm8, %v1815_v55, %v7745_v63  ;;  %v2315_v2 = vpop.permute.xlu0 %2314 }
 0x2d7   :  { %1867 = vst [vmem:[#allocation5 + $0x288] sm:$0x7c] %v1839_v23  ;;  %v2336_v6 = vsel %vm567_vm14, %v7632_v27, %v2315_v2  ;;  %1697 = vrot.lane.b32.xlu1 %v1670_v0, %s6685_s24 }
 0x2d8   :  { %2364 = vst [vmem:[#allocation5 + $0x170] ss:$-300 sps:$4 sm:$0xc7] %v2336_v6   ;;  %1699 = vrot.lane.b32.xlu0 %v1671_v3, %s6685_s24  ;;  %v2612_v19 = vld [vmem:[#allocation5 + $0xd8] sm:$0xff] }
 0x2d9   :  { %v7753_v9 = vpop.permute.xlu1 %2549 }
 0x2da   :  { %v2570_v11 = vsel %vm611_vm1, %v7686_v60, %v7753_v9  ;;  %v2446_v12 = vpop.permute.xlu0 %2445  ;;  %v2624_v17 = vld [vmem:[#allocation5 + $0x198] sm:$0xff]  ;;  %v2609_v60 = vld [vmem:[#allocation5 + $0x130] sm:$0xff] }
 0x2db   :  { %2598 = vst [vmem:[#allocation5 + $0x1b8] sm:$0x1f] %v2570_v11  ;;  %v2467_v27 = vsel %vm589_vm15, %v7664_v20, %v2446_v12  ;;  %1701 = vrot.lane.b32.xlu1 %v1672_v10, %s6685_s24  ;;  %2858 = vmatprep.subr.mxu1 %v2624_v17  ;;  %v2625_v32 = vld [vmem:[#allocation5 + $0x290] sm:$0xff] }
 0x2dc   :  { %2495 = vst [vmem:[#allocation5 + $0x170] sm:$0xf8] %v2467_v27  ;;  %1830 = vrot.lane.b32.xlu0 %v1802_v14, %s6686_s25  ;;  %2859 = vmatpush1.msra.mxu1 %v2623_v22 }
 0x2dd   :  { %v7762_v26 = vpop.permute.xlu1 %2553  ;;  %2860 = vmatprep.subr.mxu1 %v2610_v24 }
 0x2de   :  { %v2067_v29 = vpop.permute.xlu0 %2066  ;;  %2861 = vmatpush1.msra.mxu1 %v2609_v60  ;;  %v2626_v20 = vld [vmem:[#allocation5 + $0x288] sm:$0xff] }
 0x2df   :  { %v2088_v31 = vsel %vm479_vm12, %v7684_v40, %v2067_v29  ;;  %1828 = vrot.lane.b32.xlu1 %v1801_v28, %s6686_s25  ;;  %6549 = vmatmul.mubr.msk.f32.vlgmr.msra.gmra.mxu1 %vm2703_vm4, %v7627_v62  ;;  %v2611_v40 = vld [vmem:[#allocation5 + $0x78] sm:$0xff] }
 0x2e0   :  { %2116 = vst [vmem:[#allocation5 + $0x40] ss:$388 sps:$4 sm:$0xf1] %v2088_v31   ;;  %2695 = vperm.xlu0 %6619, %v2691_v25   ;;  %2935 = vmatprep.subr.mxu0 %v2626_v20 }
 0x2e1   :  { %2936 = vmatpush1.msra.mxu0 %v2625_v32  ;;  %v2317_v33 = vpop.permute.xlu1 %2316  ;;  %2900 = vmatprep.mubr.f32.mxu1 %v6692_v16 }
 0x2e2   :  { %v2337_v1 = vsel %vm567_vm14, %v2315_v2, %v2317_v33  ;;  %v2198_v37 = vpop.permute.xlu0 %2197  ;;  %2937 = vmatprep.subr.mxu0 %v2612_v19  ;;  %v2684_v38 = vld [vmem:[#allocation5 + $0x1b8] sm:$0x1f] }
 0x2e3   :  { %2365 = vst [vmem:[#allocation5 + $0x48] ss:$508 sps:$4 sm:$0xc7] %v2337_v1   ;;  %v2219_v39 = vsel %vm501_vm13, %v7703_v56, %v2198_v37  ;;  %2938 = vmatpush1.msra.mxu0 %v2611_v40  ;;  %1832 = vrot.lane.b32.xlu1 %v1803_v35, %s6686_s25  ;;  %v2669_v57 = vld [vmem:[#allocation5 + $0x170] sm:$0xff] }
 0x2e4   :  { %2247 = vst [vmem:[#allocation5 + $0x40] sm:$0x3e] %v2219_v39  ;;  %6553 = vmatmul.mubr.msk.f32.vlgmr.msra.gmra.mxu0 %vm2703_vm4, %v7627_v62  ;;  %6555 = vmatprep.subr.msk.mxu1 %vm2710_vm6, %v2684_v38 }
 0x2e5   :  { %6556 = vmatpush1.msk.msra.mxu1 %vm2710_vm6, %v2683_v41  ;;  %v7781_v42 = vpop.permute.xlu1 %2320  ;;  %2977 = vmatprep.mubr.f32.mxu0 %v6692_v16 }
 0x2e6   :  { %v1936_v34 = vpop.permute.xlu0 %1935  ;;  %6550 = vmatmul.mubr.msk.f32.gmra.mxu1 %vm2703_vm4, %v7646_v8 }
 0x2e7   :  { %v1957_v56 = vsel %vm457_vm11, %v7719_v52, %v1936_v34  ;;  %3048 = vmatprep.mubr.f32.mxu1 %v6692_v16  ;;  %2700 = vperm.xlu1 %6620, %v2692_v48  }
 0x2e8   :  { %1985 = vst [vmem:[#allocation5 + $0x1c0] ss:$-404 sps:$4 sm:$0x8f] %v1957_v56   ;;  %6554 = vmatmul.mubr.msk.f32.gmra.mxu0 %vm2703_vm4, %v7646_v8 }
 0x2e9   :  { %v2448_v44 = vpop.permute.xlu1 %2447  ;;  %3125 = vmatprep.mubr.f32.mxu0 %v6692_v16 }
 0x2ea   :  { %v2468_v45 = vsel %vm589_vm15, %v2446_v12, %v2448_v44  ;;  %v7793_v46 = vpop.permute.xlu0 %1687 }
 0x2eb   :  { %2496 = vst [vmem:[#allocation5 + $0x48] sm:$0xf8] %v2468_v45  ;;  %v1709_v47 = vsel %vm369_vm7, %v7733_v36, %v7793_v46  ;;  %v2655_v27 = vld [vmem:[#allocation5 + $0x40] sm:$0xff] }
 0x2ec   :  { %1737 = vst [vmem:[#allocation5 + $0x28] ss:$388 sps:$4 sm:$0xe3] %v1709_v47  }
 0x2ed   :  { %v7798_v52 = vpop.permute.xlu1 %2451 }
 0x2ee   :  { %v7803_v49 = vpop.permute.xlu0 %1818 }
 0x2ef   :  { %v1840_v4 = vsel %vm391_vm8, %v7745_v63, %v7803_v49  ;;  %v2641_v19 = vld [vmem:[#allocation5 + $0x1c0] sm:$0xff] }
 0x2f0   :  { %1868 = vst [vmem:[#allocation5 + $0x28] sm:$0x7c] %v1840_v4 }
 0x2f1   :  { %v2069_v50 = vpop.permute.xlu1 %2068 }
 0x2f2   :  { %v2089_v51 = vsel %vm479_vm12, %v2067_v29, %v2069_v50  ;;  %v2552_v43 = vpop.permute.xlu0 %2551  ;;  %v2670_v36 = vld [vmem:[#allocation5 + $0x48] sm:$0xff] }
 0x2f3   :  { %2117 = vst [vmem:[#allocation5 + $0x240] ss:$20 sps:$4 sm:$0xf1] %v2089_v51   ;;  %v2571_v54 = vsel %vm611_vm1, %v7753_v9, %v2552_v43  ;;  %v2572_v55 = vsel %vm611_vm1, %v2552_v43, %v7762_v26  ;;  %3006 = vmatprep.subr.mxu1 %v2670_v36 }
 0x2f4   :  { %2599 = vst [vmem:[#allocation5 + $0x150] sm:$0x1f] %v2571_v54  ;;  %2600 = vst [vmem:[#allocation5 + $0x168] sm:$0x1f] %v2572_v55  ;;  %3007 = vmatpush1.msra.mxu1 %v2669_v57 }
 0x2f5   :  { %v7813_v21 = vpop.permute.xlu1 %2072 }
 0x2f6   :  { %v7815_v53 = vpop.permute.xlu0 %2555 }
 0x2f7   :  { %v2573_v58 = vsel %vm611_vm1, %v7762_v26, %v7815_v53  ;;  %v2627_v55 = vld [vmem:[#allocation5 + $0x28] sm:$0xff] }
 0x2f8   :  { %2601 = vst [vmem:[#allocation5 + $0x1c8] sm:$0x1f] %v2573_v58 }
 0x2f9   :  { %v2200_v59 = vpop.permute.xlu1 %2199 }
 0x2fa   :  { %v2220_v61 = vsel %vm501_vm13, %v2198_v37, %v2200_v59  ;;  %v2319_v63 = vpop.permute.xlu0 %2318 }
 0x2fb   :  { %2248 = vst [vmem:[#allocation5 + $0x240] sm:$0x3e] %v2220_v61  ;;  %v2338_v0 = vsel %vm567_vm14, %v2317_v33, %v2319_v63  ;;  %v2339_v23 = vsel %vm567_vm14, %v2319_v63, %v7781_v42  ;;  %v2686_v2 = vld [vmem:[#allocation5 + $0x168] sm:$0x1f]  ;;  %v2685_v3 = vld [vmem:[#allocation5 + $0x150] sm:$0x1f] }
 0x2fc   :  { %2366 = vst [vmem:[#allocation5 + $0x8] ss:$508 sps:$4 sm:$0xc7] %v2338_v0   ;;  %2367 = vst [vmem:[#allocation5 + $0x258] ss:$-564 sps:$4 sm:$0xc7] %v2339_v23   ;;  %6559 = vmatprep.subr.msk.mxu0 %vm2710_vm6, %v2686_v2 }
 0x2fd   :  { %6560 = vmatpush1.msk.msra.mxu0 %vm2710_vm6, %v2685_v3  ;;  %v7826_v5 = vpop.permute.xlu1 %2203 }
 0x2fe   :  { %v2450_v6 = vpop.permute.xlu0 %2449 }
 0x2ff   :  { %v2469_v7 = vsel %vm589_vm15, %v2448_v44, %v2450_v6  ;;  %v2470_v9 = vsel %vm589_vm15, %v2450_v6, %v7798_v52 }
 0x300   :  { %2497 = vst [vmem:[#allocation5 + $0x8] sm:$0xf8] %v2469_v7  ;;  %2498 = vst [vmem:[#allocation5 + $0x258] sm:$0xf8] %v2470_v9  ;;  %v2687_v7 = vld [vmem:[#allocation5 + $0x1c8] sm:$0x1f] }
 0x301   :  { %v1938_v10 = vpop.permute.xlu1 %1937 }
 0x302   :  { %v1958_v11 = vsel %vm457_vm11, %v1936_v34, %v1938_v10  ;;  %v2071_v12 = vpop.permute.xlu0 %2070  ;;  %v2656_v14 = vld [vmem:[#allocation5 + $0x240] sm:$0xff] }
 0x303   :  { %1986 = vst [vmem:[#allocation5 + $0x250] ss:$-92 sps:$4 sm:$0x8f] %v1958_v11   ;;  %v2090_v17 = vsel %vm479_vm12, %v2069_v50, %v2071_v12  ;;  %v2091_v18 = vsel %vm479_vm12, %v2071_v12, %v7813_v21  ;;  %3008 = vmatprep.subr.mxu1 %v2656_v14 }
 0x304   :  { %2118 = vst [vmem:[#allocation5 + $0x200] ss:$-36 sps:$4 sm:$0xf1] %v2090_v17   ;;  %2119 = vst [vmem:[#allocation5 + $0x20] ss:$364 sps:$4 sm:$0xf1] %v2091_v18   ;;  %3009 = vmatpush1.msra.mxu1 %v2655_v27 }
 0x305   :  { %v7835_v22 = vpop.permute.xlu1 %1941 }
 0x306   :  { %v2202_v24 = vpop.permute.xlu0 %2201 }
 0x307   :  { %v2221_v26 = vsel %vm501_vm13, %v2200_v59, %v2202_v24  ;;  %v2222_v60 = vsel %vm501_vm13, %v2202_v24, %v7826_v5  ;;  %v2672_v28 = vld [vmem:[#allocation5 + $0x258] sm:$0xff]  ;;  %v2671_v25 = vld [vmem:[#allocation5 + $0x8] sm:$0xff] }
 0x308   :  { %2249 = vst [vmem:[#allocation5 + $0x200] sm:$0x3e] %v2221_v26  ;;  %2250 = vst [vmem:[#allocation5 + $0x20] sm:$0x3e] %v2222_v60  ;;  %3083 = vmatprep.subr.mxu0 %v2672_v28 }
 0x309   :  { %3084 = vmatpush1.msra.mxu0 %v2671_v25  ;;  %v1690_v29 = vpop.permute.xlu1 %1689 }
 0x30a   :  { %v1710_v20 = vsel %vm369_vm7, %v7793_v46, %v1690_v29  ;;  %v1940_v30 = vpop.permute.xlu0 %1939  ;;  %v2642_v31 = vld [vmem:[#allocation5 + $0x250] sm:$0xff] }
 0x30b   :  { %1738 = vst [vmem:[#allocation5 + $0x1f0] ss:$-164 sps:$4 sm:$0xe3] %v1710_v20   ;;  %v1959_v32 = vsel %vm457_vm11, %v1938_v10, %v1940_v30  ;;  %v1960_v33 = vsel %vm457_vm11, %v1940_v30, %v7835_v22  ;;  %3010 = vmatprep.subr.mxu1 %v2642_v31 }
 0x30c   :  { %1987 = vst [vmem:[#allocation5 + $0x1d8] ss:$196 sps:$4 sm:$0x8f] %v1959_v32   ;;  %1988 = vst [vmem:[#allocation5 + $0x188] ss:$-44 sps:$4 sm:$0x8f] %v1960_v33   ;;  %3011 = vmatpush1.msra.mxu1 %v2641_v19 }
 0x30d   :  { %v7845_v35 = vpop.permute.xlu1 %1693 }
 0x30e   :  { %v1692_v1 = vpop.permute.xlu0 %1691 }
 0x30f   :  { %v1711_v37 = vsel %vm369_vm7, %v1690_v29, %v1692_v1  ;;  %v1712_v40 = vsel %vm369_vm7, %v1692_v1, %v7845_v35  ;;  %v2658_v38 = vld [vmem:[#allocation5 + $0x20] sm:$0xff] }
 0x310   :  { %v2657_v39 = vld [vmem:[#allocation5 + $0x200] sm:$0xff]  ;;  %1739 = vst [vmem:[#allocation5 + $0x298] ss:$-76 sps:$4 sm:$0xe3] %v1711_v37   ;;  %3085 = vmatprep.subr.mxu0 %v2658_v38 }
 0x311   :  { %1740 = vst [vmem:[#allocation5 + $0x158] ss:$-20 sps:$4 sm:$0xe3] %v1712_v40   ;;  %3086 = vmatpush1.msra.mxu0 %v2657_v39  ;;  %v1821_v41 = vpop.permute.xlu1 %1820 }
 0x312   :  { %v1841_v34 = vsel %vm391_vm8, %v7803_v49, %v1821_v41  ;;  %v1823_v56 = vpop.permute.xlu0 %1822  ;;  %v2614_v57 = vld [vmem:[#allocation5 + $0x148] sm:$0xff] }
 0x313   :  { %1869 = vst [vmem:[#allocation5 + $0x1f0] sm:$0x7c] %v1841_v34  ;;  %v1842_v44 = vsel %vm391_vm8, %v1821_v41, %v1823_v56  ;;  %v2644_v45 = vld [vmem:[#allocation5 + $0x188] sm:$0xff]  ;;  %v2643_v46 = vld [vmem:[#allocation5 + $0x1d8] sm:$0xff] }
 0x314   :  { %1870 = vst [vmem:[#allocation5 + $0x298] sm:$0x7c] %v1842_v44  ;;  %3087 = vmatprep.subr.mxu0 %v2644_v45 }
 0x315   :  { %3088 = vmatpush1.msra.mxu0 %v2643_v46  ;;  %v7853_v47 = vpop.permute.xlu1 %1824 }
 0x316   :  { %v1843_v48 = vsel %vm391_vm8, %v1823_v56, %v7853_v47  ;;  %v2323_v4 = vpop.permute.xlu0 %2322 }
 0x317   :  { %1871 = vst [vmem:[#allocation5 + $0x158] sm:$0x7c] %v1843_v48  ;;  %v2340_v50 = vsel %vm567_vm14, %v7781_v42, %v2323_v4  ;;  %v2613_v42 = vld [vmem:[#allocation5 + $0x1a8] sm:$0xff] }
 0x318   :  { %2368 = vst [vmem:[#allocation5 + $0x128] ss:$252 sps:$4 sm:$0xc7] %v2340_v50   ;;  %v2615_v23 = vld [vmem:[#allocation5 + $0x248] sm:$0xff] }
 0x319   :  { %v7859_v49 = vpop.permute.xlu1 %2557 }
 0x31a   :  { %v2574_v51 = vsel %vm611_vm1, %v7815_v53, %v7859_v49  ;;  %v2454_v43 = vpop.permute.xlu0 %2453  ;;  %v2628_v36 = vld [vmem:[#allocation5 + $0x1f0] sm:$0xff] }
 0x31b   :  { %2602 = vst [vmem:[#allocation5 + $0x110] sm:$0x1f] %v2574_v51  ;;  %v2471_v54 = vsel %vm589_vm15, %v7798_v52, %v2454_v43  ;;  %3012 = vmatprep.subr.mxu1 %v2628_v36  ;;  %v2629_v63 = vld [vmem:[#allocation5 + $0x298] sm:$0xff]  ;;  %v2616_v52 = vld [vmem:[#allocation5 + $0x140] sm:$0xff] }
 0x31c   :  { %2499 = vst [vmem:[#allocation5 + $0x128] sm:$0xf8] %v2471_v54  ;;  %3013 = vmatpush1.msra.mxu1 %v2627_v55 }
 0x31d   :  { %v2562_v58 = vpop.permute.xlu1 %2561  ;;  %3014 = vmatprep.subr.mxu1 %v2614_v57 }
 0x31e   :  { %v2075_v59 = vpop.permute.xlu0 %2074  ;;  %3015 = vmatpush1.msra.mxu1 %v2613_v42  ;;  %v2630_v61 = vld [vmem:[#allocation5 + $0x158] sm:$0xff] }
 0x31f   :  { %v2092_v53 = vsel %vm479_vm12, %v7813_v21, %v2075_v59  ;;  %6557 = vmatmul.mubr.msk.f32.vlgmr.msra.gmra.mxu1 %vm2703_vm4, %v7627_v62  ;;  %3089 = vmatprep.subr.mxu0 %v2630_v61 }
 0x320   :  { %2120 = vst [vmem:[#allocation5 + $0x220] ss:$-452 sps:$4 sm:$0xf1] %v2092_v53   ;;  %3090 = vmatpush1.msra.mxu0 %v2629_v63  ;;  %3054 = vmatprep.mubr.f32.mxu1 %v6692_v16 }
 0x321   :  { %v2325_v0 = vpop.permute.xlu1 %2324  ;;  %3091 = vmatprep.subr.mxu0 %v2616_v52 }
 0x322   :  { %v2341_v2 = vsel %vm567_vm14, %v2323_v4, %v2325_v0  ;;  %v2206_v3 = vpop.permute.xlu0 %2205  ;;  %3092 = vmatpush1.msra.mxu0 %v2615_v23  ;;  %v2688_v6 = vld [vmem:[#allocation5 + $0x110] sm:$0x1f] }
 0x323   :  { %2369 = vst [vmem:[#allocation5 + $0x210] ss:$92 sps:$4 sm:$0xc7] %v2341_v2   ;;  %v2223_v21 = vsel %vm501_vm13, %v7826_v5, %v2206_v3  ;;  %6561 = vmatmul.mubr.msk.f32.vlgmr.msra.gmra.mxu0 %vm2703_vm4, %v7627_v62  ;;  %6563 = vmatprep.subr.msk.mxu1 %vm2710_vm6, %v2688_v6  ;;  %v2673_v29 = vld [vmem:[#allocation5 + $0x128] sm:$0xff] }
 0x324   :  { %2251 = vst [vmem:[#allocation5 + $0x220] sm:$0x3e] %v2223_v21  ;;  %6564 = vmatpush1.msk.msra.mxu1 %vm2710_vm6, %v2687_v7  ;;  %3131 = vmatprep.mubr.f32.mxu0 %v6692_v16 }
 0x325   :  { %v2329_v9 = vpop.permute.xlu1 %2328  ;;  %6558 = vmatmul.mubr.msk.f32.gmra.mxu1 %vm2703_vm4, %v7646_v8 }
 0x326   :  { %v1944_v10 = vpop.permute.xlu0 %1943  ;;  %3202 = vmatprep.mubr.f32.mxu1 %v6692_v16 }
 0x327   :  { %v1961_v5 = vsel %vm457_vm11, %v7835_v22, %v1944_v10  ;;  %6562 = vmatmul.mubr.msk.f32.gmra.mxu0 %vm2703_vm4, %v7646_v8 }
 0x328   :  { %1989 = vst [vmem:[#allocation5 + $0x58] ss:$476 sps:$4 sm:$0x8f] %v1961_v5   ;;  %3279 = vmatprep.mubr.f32.mxu0 %v6692_v16 }
 0x329   :  { %v2456_v62 = vpop.permute.xlu1 %2455 }
 0x32a   :  { %v2472_v11 = vsel %vm589_vm15, %v2454_v43, %v2456_v62  ;;  %v7888_v12 = vpop.permute.xlu0 %1695 }
 0x32b   :  { %2500 = vst [vmem:[#allocation5 + $0x210] sm:$0xf8] %v2472_v11  ;;  %v1713_v14 = vsel %vm369_vm7, %v7845_v35, %v7888_v12 }
 0x32c   :  { %1741 = vst [vmem:[#allocation5 + $0x230] ss:$-324 sps:$4 sm:$0xe3] %v1713_v14  }
 0x32d   :  { %v2460_v17 = vpop.permute.xlu1 %2459 }
 0x32e   :  { %v7893_v18 = vpop.permute.xlu0 %1826 }
 0x32f   :  { %v1844_v27 = vsel %vm391_vm8, %v7853_v47, %v7893_v18  ;;  %v2645_v63 = vld [vmem:[#allocation5 + $0x58] sm:$0xff] }
 0x330   :  { %1872 = vst [vmem:[#allocation5 + $0x230] sm:$0x7c] %v1844_v27 }
 0x331   :  { %v2077_v22 = vpop.permute.xlu1 %2076 }
 0x332   :  { %v2093_v24 = vsel %vm479_vm12, %v2075_v59, %v2077_v22  ;;  %v2560_v26 = vpop.permute.xlu0 %2559  ;;  %v2674_v60 = vld [vmem:[#allocation5 + $0x210] sm:$0xff] }
 0x333   :  { %2121 = vst [vmem:[#allocation5 + $0x268] ss:$-420 sps:$4 sm:$0xf1] %v2093_v24   ;;  %v2575_v28 = vsel %vm611_vm1, %v7859_v49, %v2560_v26  ;;  %v2576_v25 = vsel %vm611_vm1, %v2560_v26, %v2562_v58  ;;  %3160 = vmatprep.subr.mxu1 %v2674_v60  ;;  %v2659_v49 = vld [vmem:[#allocation5 + $0x220] sm:$0xff]  ;;  %v2617_v14 = vld [vmem:[#allocation5 + $0xe8] sm:$0xff] }
 0x334   :  { %2603 = vst [vmem:[#allocation5 + $0xa8] sm:$0x1f] %v2575_v28  ;;  %2604 = vst [vmem:[#allocation5 + $0x208] sm:$0x1f] %v2576_v25  ;;  %3161 = vmatpush1.msra.mxu1 %v2673_v29  ;;  %v6622_v25 = vld [vmem:[%s8058_s3 + $0x8] sm:$0x3] }
 0x335   :  { %v2081_v20 = vpop.permute.xlu1 %2080 }
 0x336   :  { %v2327_v30 = vpop.permute.xlu0 %2326 }
 0x337   :  { %v2342_v31 = vsel %vm567_vm14, %v2325_v0, %v2327_v30  ;;  %v2343_v32 = vsel %vm567_vm14, %v2327_v30, %v2329_v9  ;;  %v2631_v11 = vld [vmem:[#allocation5 + $0x230] sm:$0xff] }
 0x338   :  { %2370 = vst [vmem:[#allocation5] ss:$612 sps:$4 sm:$0xc7] %v2342_v31   ;;  %2371 = vst [vmem:[#allocation5 + $0x1a0] ss:$228 sps:$4 sm:$0xc7] %v2343_v32  }
 0x339   :  { %v2208_v33 = vpop.permute.xlu1 %2207 }
 0x33a   :  { %v2224_v19 = vsel %vm501_vm13, %v2206_v3, %v2208_v33  ;;  %v2458_v35 = vpop.permute.xlu0 %2457 }
 0x33b   :  { %2252 = vst [vmem:[#allocation5 + $0x268] sm:$0x3e] %v2224_v19  ;;  %v2473_v1 = vsel %vm589_vm15, %v2456_v62, %v2458_v35  ;;  %v2474_v37 = vsel %vm589_vm15, %v2458_v35, %v2460_v17  ;;  %v2690_v40 = vld [vmem:[#allocation5 + $0x208] sm:$0x1f] }
 0x33c   :  { %v2689_v38 = vld [vmem:[#allocation5 + $0xa8] sm:$0x1f]  ;;  %2501 = vst [vmem:[#allocation5] sm:$0xf8] %v2473_v1  ;;  %2502 = vst [vmem:[#allocation5 + $0x1a0] sm:$0xf8] %v2474_v37  ;;  %6567 = vmatprep.subr.msk.mxu0 %vm2710_vm6, %v2690_v40 }
 0x33d   :  { %6568 = vmatpush1.msk.msra.mxu0 %vm2710_vm6, %v2689_v38  ;;  %v2212_v39 = vpop.permute.xlu1 %2211 }
 0x33e   :  { %v2079_v41 = vpop.permute.xlu0 %2078 }
 0x33f   :  { %v2094_v34 = vsel %vm479_vm12, %v2077_v22, %v2079_v41  ;;  %v2095_v56 = vsel %vm479_vm12, %v2079_v41, %v2081_v20 }
 0x340   :  { %2122 = vst [vmem:[#allocation5 + $0x260] ss:$-356 sps:$4 sm:$0xf1] %v2094_v34   ;;  %2123 = vst [vmem:[#allocation5 + $0x280] ss:$-396 sps:$4 sm:$0xf1] %v2095_v56  }
 0x341   :  { %v1946_v44 = vpop.permute.xlu1 %1945 }
 0x342   :  { %v1962_v45 = vsel %vm457_vm11, %v1944_v10, %v1946_v44  ;;  %v2210_v46 = vpop.permute.xlu0 %2209  ;;  %v2660_v47 = vld [vmem:[#allocation5 + $0x268] sm:$0xff] }
 0x343   :  { %1990 = vst [vmem:[#allocation5 + $0xc0] ss:$92 sps:$4 sm:$0x8f] %v1962_v45   ;;  %v2225_v48 = vsel %vm501_vm13, %v2208_v33, %v2210_v46  ;;  %v2226_v4 = vsel %vm501_vm13, %v2210_v46, %v2212_v39  ;;  %3162 = vmatprep.subr.mxu1 %v2660_v47  ;;  %v2676_v50 = vld [vmem:[#allocation5 + $0x1a0] sm:$0xff] }
 0x344   :  { %v2675_v51 = vld [vmem:[#allocation5] sm:$0xff]  ;;  %2253 = vst [vmem:[#allocation5 + $0x260] sm:$0x3e] %v2225_v48  ;;  %2254 = vst [vmem:[#allocation5 + $0x280] sm:$0x3e] %v2226_v4  ;;  %3237 = vmatprep.subr.mxu0 %v2676_v50  ;;  %3163 = vmatpush1.msra.mxu1 %v2659_v49 }
 0x345   :  { %3238 = vmatpush1.msra.mxu0 %v2675_v51  ;;  %v1950_v43 = vpop.permute.xlu1 %1949 }
 0x346   :  { %v1948_v36 = vpop.permute.xlu0 %1947 }
 0x347   :  { %v1963_v54 = vsel %vm457_vm11, %v1946_v44, %v1948_v36  ;;  %v1964_v55 = vsel %vm457_vm11, %v1948_v36, %v1950_v43 }
 0x348   :  { %1991 = vst [vmem:[#allocation5 + $0xf8] ss:$108 sps:$4 sm:$0x8f] %v1963_v54   ;;  %1992 = vst [vmem:[#allocation5 + $0xf0] ss:$-100 sps:$4 sm:$0x8f] %v1964_v55  }
 0x349   :  { %v1698_v57 = vpop.permute.xlu1 %1697 }
 0x34a   :  { %v1714_v58 = vsel %vm369_vm7, %v7888_v12, %v1698_v57  ;;  %v1700_v42 = vpop.permute.xlu0 %1699  ;;  %v2646_v59 = vld [vmem:[#allocation5 + $0xc0] sm:$0xff] }
 0x34b   :  { %1742 = vst [vmem:[#allocation5 + $0x118] ss:$188 sps:$4 sm:$0xe3] %v1714_v58   ;;  %v1715_v61 = vsel %vm369_vm7, %v1698_v57, %v1700_v42  ;;  %3164 = vmatprep.subr.mxu1 %v2646_v59  ;;  %v2662_v53 = vld [vmem:[#allocation5 + $0x280] sm:$0xff] }
 0x34c   :  { %v2661_v52 = vld [vmem:[#allocation5 + $0x260] sm:$0xff]  ;;  %1743 = vst [vmem:[#allocation5 + $0x160] ss:$-188 sps:$4 sm:$0xe3] %v1715_v61   ;;  %3239 = vmatprep.subr.mxu0 %v2662_v53  ;;  %3165 = vmatpush1.msra.mxu1 %v2645_v63 }
 0x34d   :  { %3240 = vmatpush1.msra.mxu0 %v2661_v52  ;;  %v1702_v0 = vpop.permute.xlu1 %1701 }
 0x34e   :  { %v1716_v23 = vsel %vm369_vm7, %v1700_v42, %v1702_v0  ;;  %v1831_v6 = vpop.permute.xlu0 %1830 }
 0x34f   :  { %1744 = vst [vmem:[#allocation5 + $0x88] ss:$68 sps:$4 sm:$0xe3] %v1716_v23   ;;  %v2648_v2 = vld [vmem:[#allocation5 + $0xf0] sm:$0xff]  ;;  %v2647_v3 = vld [vmem:[#allocation5 + $0xf8] sm:$0xff] }
 0x350   :  { %3241 = vmatprep.subr.mxu0 %v2648_v2 }
 0x351   :  { %3242 = vmatpush1.msra.mxu0 %v2647_v3  ;;  %v1829_v21 = vpop.permute.xlu1 %1828 }
 0x352   :  { %v1845_v7 = vsel %vm391_vm8, %v7893_v18, %v1829_v21  ;;  %v1846_v9 = vsel %vm391_vm8, %v1829_v21, %v1831_v6  ;;  %v2618_v12 = vld [vmem:[#allocation5 + $0x1d0] sm:$0xff]  ;;  %v6621_v18 = vld [vmem:[%s8058_s3] sm:$0xff] }
 0x353   :  { %1873 = vst [vmem:[#allocation5 + $0x118] sm:$0x7c] %v1845_v7  ;;  %1874 = vst [vmem:[#allocation5 + $0x160] sm:$0x7c] %v1846_v9  ;;  %v2619_v24 = vld [vmem:[#allocation5 + $0xa0] sm:$0xff] }
 0x355   :  { %v1833_v10 = vpop.permute.xlu1 %1832 }
 0x356   :  { %v1847_v5 = vsel %vm391_vm8, %v1831_v6, %v1833_v10  ;;  %v2620_v22 = vld [vmem:[#allocation5 + $0xc8] sm:$0xff] }
 0x357   :  { %1875 = vst [vmem:[#allocation5 + $0x88] sm:$0x7c] %v1847_v5 }
 0x35a   :  { %v2632_v62 = vld [vmem:[#allocation5 + $0x118] sm:$0xff]  ;;  %v2633_v27 = vld [vmem:[#allocation5 + $0x160] sm:$0xff] }
 0x35b   :  { %3166 = vmatprep.subr.mxu1 %v2632_v62  ;;  %v7933_v26 = vpop.permute.xlu0 %2695 }
 0x35c   :  { %3167 = vmatpush1.msra.mxu1 %v2631_v11 }
 0x35d   :  { %3168 = vmatprep.subr.mxu1 %v2618_v12 }
 0x35e   :  { %3169 = vmatpush1.msra.mxu1 %v2617_v14  ;;  %v2634_v17 = vld [vmem:[#allocation5 + $0x88] sm:$0xff] }
 0x35f   :  { %6565 = vmatmul.mubr.msk.f32.vlgmr.msra.gmra.mxu1 %vm2703_vm4, %v6621_v18  ;;  %3243 = vmatprep.subr.mxu0 %v2634_v17 }
 0x360   :  { %3244 = vmatpush1.msra.mxu0 %v2633_v27  ;;  %3208 = vmatprep.mubr.f32.mxu1 %v6692_v16 }
 0x361   :  { %3245 = vmatprep.subr.mxu0 %v2620_v22 }
 0x362   :  { %3246 = vmatpush1.msra.mxu0 %v2619_v24  ;;  %v7941_v32 = vpop.permute.xlu1 %2700 }
 0x363   :  { %6566 = vmatmul.mubr.msk.f32.gmra.mxu1 %vm2703_vm4, %v7646_v8  ;;  %6569 = vmatmul.mubr.msk.f32.vlgmr.msra.gmra.mxu0 %vm2703_vm4, %v6621_v18 }
 0x364   :  { %3285 = vmatprep.mubr.f32.mxu0 %v6692_v16 }
 0x366   :  { %v2819_v60 = vpop.f32.mrf.mxu0 }
 0x367   :  { %v2820_v28 = vadd.f32 %v2819_v60, %v7933_v26  ;;  %6570 = vmatmul.mubr.msk.f32.gmra.mxu0 %vm2703_vm4, %v6622_v25 }
 0x368   :  { %v2821_v29 = vpop.f32.mrf.mxu0 }
 0x369   :  { %v3292_v20 = vmax.f32 %v2820_v28, 0.0  ;;  %v2822_v30 = vadd.f32 %v2821_v29, %v7933_v26 }
 0x36a   :  { %v2825_v31 = vpop.f32.mrf.mxu0 }
 0x36b   :  { %3320 = vst [vmem:[#allocation6] sm:$0xff] %v3292_v20  ;;  %v3293_v8 = vmax.f32 %v2822_v30, 0.0  ;;  %v2826_v33 = vadd.f32 %v2825_v31, %v7941_v32 }
 0x36c   :  { %v2827_v16 = vpop.f32.mrf.mxu0 }
 0x36d   :  { %3321 = vst [vmem:[#allocation6 + $0x8] sm:$0xff] %v3293_v8  ;;  %v2828_v19 = vadd.f32 %v2827_v16, %v7941_v32  ;;  %v3306_v35 = vmax.f32 %v2826_v33, 0.0 }
 0x36f   :  { %v3307_v1 = vmax.f32 %v2828_v19, 0.0  ;;  %3334 = vst [vmem:[#allocation6 + $0x70] sm:$0x3] %v3306_v35 }
 0x371   :  { %3335 = vst [vmem:[#allocation6 + $0x78] sm:$0x3] %v3307_v1 }
 0x39f   :  { %v2896_v37 = vpop.f32.mrf.mxu1 }
 0x3a0   :  { %v2897_v40 = vadd.f32 %v2896_v37, %v7933_v26 }
 0x3a1   :  { %v2898_v38 = vpop.f32.mrf.mxu1 }
 0x3a2   :  { %v3294_v39 = vmax.f32 %v2897_v40, 0.0  ;;  %v2899_v41 = vadd.f32 %v2898_v38, %v7933_v26 }
 0x3a4   :  { %3322 = vst [vmem:[#allocation6 + $0x10] sm:$0xff] %v3294_v39  ;;  %v3295_v34 = vmax.f32 %v2899_v41, 0.0  ;;  %v2973_v56 = vpop.f32.mrf.mxu0 }
 0x3a5   :  { %v2974_v44 = vadd.f32 %v2973_v56, %v7933_v26 }
 0x3a6   :  { %3323 = vst [vmem:[#allocation6 + $0x18] sm:$0xff] %v3295_v34  ;;  %v2975_v45 = vpop.f32.mrf.mxu0  ;;  %v2902_v46 = vpop.f32.mrf.mxu1 }
 0x3a7   :  { %v3296_v47 = vmax.f32 %v2974_v44, 0.0  ;;  %v2976_v48 = vadd.f32 %v2975_v45, %v7933_v26  ;;  %v2903_v4 = vadd.f32 %v2902_v46, %v7941_v32 }
 0x3a8   :  { %v2904_v50 = vpop.f32.mrf.mxu1  ;;  %v2979_v49 = vpop.f32.mrf.mxu0 }
 0x3a9   :  { %3324 = vst [vmem:[#allocation6 + $0x20] sm:$0xff] %v3296_v47  ;;  %v3297_v51 = vmax.f32 %v2976_v48, 0.0  ;;  %v2905_v43 = vadd.f32 %v2904_v50, %v7941_v32  ;;  %v2980_v36 = vadd.f32 %v2979_v49, %v7941_v32  ;;  %v3308_v54 = vmax.f32 %v2903_v4, 0.0 }
 0x3aa   :  { %v2981_v58 = vpop.f32.mrf.mxu0 }
 0x3ab   :  { %3325 = vst [vmem:[#allocation6 + $0x28] sm:$0xff] %v3297_v51  ;;  %v3309_v55 = vmax.f32 %v2905_v43, 0.0  ;;  %v3310_v57 = vmax.f32 %v2980_v36, 0.0  ;;  %3336 = vst [vmem:[#allocation6 + $0x80] sm:$0x3] %v3308_v54  ;;  %v2982_v42 = vadd.f32 %v2981_v58, %v7941_v32 }
 0x3ad   :  { %3337 = vst [vmem:[#allocation6 + $0x88] sm:$0x3] %v3309_v55  ;;  %3338 = vst [vmem:[#allocation6 + $0x90] sm:$0x3] %v3310_v57  ;;  %v3311_v59 = vmax.f32 %v2982_v42, 0.0 }
 0x3ae   :  { %v3348_v60 = vld [vmem:[#allocation6] ss:$8 sm:$0xf]  ;;  %v3353_v28 = vld [vmem:[#allocation6 + $0x1] ss:$8 sm:$0xf] }
 0x3af   :  { %3339 = vst [vmem:[#allocation6 + $0x98] sm:$0x3] %v3311_v59  ;;  %v3359_v25 = vld [vmem:[#allocation6 + $0x2] ss:$8 sm:$0xf] }
 0x3b0   :  { %v3365_v29 = vld [vmem:[#allocation6 + $0x3] ss:$8 sm:$0xf]  ;;  %v3371_v30 = vld [vmem:[#allocation6 + $0x4] ss:$8 sm:$0xf] }
 0x3b1   :  { %v3377_v8 = vld [vmem:[#allocation6 + $0x5] ss:$8 sm:$0xf]  ;;  %v3383_v33 = vld [vmem:[#allocation6 + $0x6] ss:$8 sm:$0xf] }
 0x3b2   :  { %v3389_v19 = vld [vmem:[#allocation6 + $0x7] ss:$8 sm:$0xf] }
 0x3b4   :  { %v3395_v4 = vld [vmem:[#allocation6 + $0x70] ss:$8 sm:$0xf]  ;;  %v3401_v50 = vld [vmem:[#allocation6 + $0x71] ss:$8 sm:$0xf] }
 0x3df   :  { %v3050_v61 = vpop.f32.mrf.mxu1 }
 0x3e0   :  { %v3051_v53 = vadd.f32 %v3050_v61, %v7933_v26 }
 0x3e1   :  { %v3052_v63 = vpop.f32.mrf.mxu1 }
 0x3e2   :  { %v3298_v52 = vmax.f32 %v3051_v53, 0.0  ;;  %v3053_v0 = vadd.f32 %v3052_v63, %v7933_v26 }
 0x3e3   :  { %v3127_v23 = vpop.f32.mrf.mxu0 }
 0x3e4   :  { %3326 = vst [vmem:[#allocation6 + $0x30] sm:$0xff] %v3298_v52  ;;  %v3299_v2 = vmax.f32 %v3053_v0, 0.0  ;;  %v3128_v3 = vadd.f32 %v3127_v23, %v7933_v26 }
 0x3e5   :  { %v3129_v6 = vpop.f32.mrf.mxu0  ;;  %v3056_v21 = vpop.f32.mrf.mxu1 }
 0x3e6   :  { %3327 = vst [vmem:[#allocation6 + $0x38] sm:$0xff] %v3299_v2  ;;  %v3300_v7 = vmax.f32 %v3128_v3, 0.0  ;;  %v3130_v9 = vadd.f32 %v3129_v6, %v7933_v26  ;;  %v3057_v10 = vadd.f32 %v3056_v21, %v7941_v32 }
 0x3e7   :  { %v3058_v5 = vpop.f32.mrf.mxu1  ;;  %v3133_v62 = vpop.f32.mrf.mxu0 }
 0x3e8   :  { %3328 = vst [vmem:[#allocation6 + $0x40] sm:$0xff] %v3300_v7  ;;  %v3301_v11 = vmax.f32 %v3130_v9, 0.0  ;;  %v3312_v12 = vmax.f32 %v3057_v10, 0.0  ;;  %v3059_v14 = vadd.f32 %v3058_v5, %v7941_v32  ;;  %v3134_v17 = vadd.f32 %v3133_v62, %v7941_v32 }
 0x3e9   :  { %v3135_v18 = vpop.f32.mrf.mxu0 }
 0x3ea   :  { %3329 = vst [vmem:[#allocation6 + $0x48] sm:$0xff] %v3301_v11  ;;  %3340 = vst [vmem:[#allocation6 + $0xa0] sm:$0x3] %v3312_v12  ;;  %v3313_v27 = vmax.f32 %v3059_v14, 0.0  ;;  %v3314_v22 = vmax.f32 %v3134_v17, 0.0  ;;  %v3136_v24 = vadd.f32 %v3135_v18, %v7941_v32 }
 0x3ec   :  { %3341 = vst [vmem:[#allocation6 + $0xa8] sm:$0x3] %v3313_v27  ;;  %3342 = vst [vmem:[#allocation6 + $0xb0] sm:$0x3] %v3314_v22  ;;  %v3315_v20 = vmax.f32 %v3136_v24, 0.0 }
 0x3ed   :  { %v3349_v31 = vld [vmem:[#allocation6] ss:$8 sm:$0xf0]  ;;  %v3354_v16 = vld [vmem:[#allocation6 + $0x1] ss:$8 sm:$0xf0] }
 0x3ee   :  { %v3350_v35 = vor.u32 %v3349_v31, %v3348_v60  ;;  %v3355_v1 = vor.u32 %v3354_v16, %v3353_v28  ;;  %v3360_v37 = vld [vmem:[#allocation6 + $0x2] ss:$8 sm:$0xf0]  ;;  %v3366_v40 = vld [vmem:[#allocation6 + $0x3] ss:$8 sm:$0xf0] }
 0x3ef   :  { %3343 = vst [vmem:[#allocation6 + $0xb8] sm:$0x3] %v3315_v20  ;;  %v3361_v38 = vor.u32 %v3360_v37, %v3359_v25  ;;  %v3367_v39 = vor.u32 %v3366_v40, %v3365_v29  ;;  %v3372_v41 = vld [vmem:[#allocation6 + $0x4] ss:$8 sm:$0xf0] }
 0x3f0   :  { %v3378_v34 = vld [vmem:[#allocation6 + $0x5] ss:$8 sm:$0xf0]  ;;  %3351 = vst.msk [vmem:[#allocation7] ss:$2 sm:$0x7f] %vm7172_vm0, %v3350_v35  ;;  %v3373_v56 = vor.u32 %v3372_v41, %v3371_v30 }
 0x3f1   :  { %3357 = vst.msk [vmem:[#allocation7 + $0xe] ss:$2 sm:$0x7f] %vm7172_vm0, %v3355_v1  ;;  %v3379_v44 = vor.u32 %v3378_v34, %v3377_v8  ;;  %v3384_v45 = vld [vmem:[#allocation6 + $0x6] ss:$8 sm:$0xf0] }
 0x3f2   :  { %v3390_v46 = vld [vmem:[#allocation6 + $0x7] ss:$8 sm:$0xf0]  ;;  %3363 = vst.msk [vmem:[#allocation7 + $0x1c] ss:$2 sm:$0x7f] %vm7172_vm0, %v3361_v38  ;;  %v3385_v47 = vor.u32 %v3384_v45, %v3383_v33 }
 0x3f3   :  { %3369 = vst.msk [vmem:[#allocation7 + $0x2a] ss:$2 sm:$0x7f] %vm7172_vm0, %v3367_v39  ;;  %v3391_v48 = vor.u32 %v3390_v46, %v3389_v19  ;;  %3375 = vst.msk [vmem:[#allocation7 + $0x38] ss:$2 sm:$0x7f] %vm7172_vm0, %v3373_v56 }
 0x3f4   :  { %3381 = vst.msk [vmem:[#allocation7 + $0x46] ss:$2 sm:$0x7f] %vm7172_vm0, %v3379_v44  ;;  %3387 = vst.msk [vmem:[#allocation7 + $0x54] ss:$2 sm:$0x7f] %vm7172_vm0, %v3385_v47 }
 0x3f5   :  { %3393 = vst.msk [vmem:[#allocation7 + $0x62] ss:$2 sm:$0x7f] %vm7172_vm0, %v3391_v48  ;;  %v3396_v49 = vld [vmem:[#allocation6 + $0x70] ss:$8 sm:$0xf0] }
 0x3f6   :  { %v3402_v51 = vld [vmem:[#allocation6 + $0x71] ss:$8 sm:$0xf0]  ;;  %v3397_v43 = vor.u32 %v3396_v49, %v3395_v4 }
 0x3f7   :  { %v3403_v36 = vor.u32 %v3402_v51, %v3401_v50 }
 0x3f8   :  { %3399 = vst.msk [vmem:[#allocation7 + $0x70] ss:$2 sm:$0x7f] %vm7172_vm0, %v3397_v43 }
 0x3f9   :  { %3405 = vst.msk [vmem:[#allocation7 + $0x7e] ss:$2 sm:$0x7f] %vm7172_vm0, %v3403_v36 }
 0x41f   :  { %v3204_v54 = vpop.f32.mrf.mxu1 }
 0x420   :  { %v3205_v55 = vadd.f32 %v3204_v54, %v7933_v26 }
 0x421   :  { %v3206_v57 = vpop.f32.mrf.mxu1 }
 0x422   :  { %v3302_v58 = vmax.f32 %v3205_v55, 0.0  ;;  %v3207_v42 = vadd.f32 %v3206_v57, %v7933_v26 }
 0x423   :  { %v3210_v59 = vpop.f32.mrf.mxu1  ;;  %v3281_v61 = vpop.f32.mrf.mxu0 }
 0x424   :  { %3330 = vst [vmem:[#allocation6 + $0x50] sm:$0xff] %v3302_v58  ;;  %v3303_v53 = vmax.f32 %v3207_v42, 0.0  ;;  %v3211_v63 = vadd.f32 %v3210_v59, %v7941_v32  ;;  %v3282_v52 = vadd.f32 %v3281_v61, %v7933_v26 }
 0x425   :  { %v3283_v0 = vpop.f32.mrf.mxu0  ;;  %v3212_v23 = vpop.f32.mrf.mxu1 }
 0x426   :  { %3331 = vst [vmem:[#allocation6 + $0x58] sm:$0xff] %v3303_v53  ;;  %v3316_v2 = vmax.f32 %v3211_v63, 0.0  ;;  %v3304_v3 = vmax.f32 %v3282_v52, 0.0  ;;  %v3284_v6 = vadd.f32 %v3283_v0, %v7933_v26  ;;  %v3213_v21 = vadd.f32 %v3212_v23, %v7941_v32 }
 0x427   :  { %v3287_v7 = vpop.f32.mrf.mxu0 }
 0x428   :  { %3344 = vst [vmem:[#allocation6 + $0xc0] sm:$0x3] %v3316_v2  ;;  %3332 = vst [vmem:[#allocation6 + $0x60] sm:$0xff] %v3304_v3  ;;  %v3305_v9 = vmax.f32 %v3284_v6, 0.0  ;;  %v3317_v10 = vmax.f32 %v3213_v21, 0.0  ;;  %v3288_v5 = vadd.f32 %v3287_v7, %v7941_v32 }
 0x429   :  { %v3289_v62 = vpop.f32.mrf.mxu0 }
 0x42a   :  { %3333 = vst [vmem:[#allocation6 + $0x68] sm:$0xff] %v3305_v9  ;;  %3345 = vst [vmem:[#allocation6 + $0xc8] sm:$0x3] %v3317_v10  ;;  %v3318_v11 = vmax.f32 %v3288_v5, 0.0  ;;  %v3290_v12 = vadd.f32 %v3289_v62, %v7941_v32 }
 0x42b   :  { %v3407_v14 = vld [vmem:[#allocation6 + $0x38] ss:$8 sm:$0xf]  ;;  %v3413_v17 = vld [vmem:[#allocation6 + $0x39] ss:$8 sm:$0xf] }
 0x42c   :  { %3346 = vst [vmem:[#allocation6 + $0xd0] sm:$0x3] %v3318_v11  ;;  %v3419_v18 = vld [vmem:[#allocation6 + $0x3a] ss:$8 sm:$0xf]  ;;  %v3319_v27 = vmax.f32 %v3290_v12, 0.0 }
 0x42d   :  { %v3425_v26 = vld [vmem:[#allocation6 + $0x3b] ss:$8 sm:$0xf]  ;;  %v3431_v22 = vld [vmem:[#allocation6 + $0x3c] ss:$8 sm:$0xf] }
 0x42e   :  { %v3437_v24 = vld [vmem:[#allocation6 + $0x3d] ss:$8 sm:$0xf]  ;;  %v3443_v25 = vld [vmem:[#allocation6 + $0x3e] ss:$8 sm:$0xf] }
 0x42f   :  { %v3449_v29 = vld [vmem:[#allocation6 + $0x3f] ss:$8 sm:$0xf]  ;;  %3347 = vst [vmem:[#allocation6 + $0xd8] sm:$0x3] %v3319_v27 }
 0x430   :  { %v3455_v41 = vld [vmem:[#allocation6 + $0xa8] ss:$8 sm:$0xf]  ;;  %v3461_v34 = vld [vmem:[#allocation6 + $0xa9] ss:$8 sm:$0xf] }
 0x431   :  { %v3408_v60 = vld [vmem:[#allocation6 + $0x38] ss:$8 sm:$0xf0]  ;;  %v3414_v28 = vld [vmem:[#allocation6 + $0x39] ss:$8 sm:$0xf0] }
 0x432   :  { %v3409_v20 = vor.u32 %v3408_v60, %v3407_v14  ;;  %v3415_v30 = vor.u32 %v3414_v28, %v3413_v17  ;;  %v3420_v8 = vld [vmem:[#allocation6 + $0x3a] ss:$8 sm:$0xf0]  ;;  %v3426_v31 = vld [vmem:[#allocation6 + $0x3b] ss:$8 sm:$0xf0] }
 0x433   :  { %v3421_v16 = vor.u32 %v3420_v8, %v3419_v18  ;;  %v3427_v33 = vor.u32 %v3426_v31, %v3425_v26  ;;  %v3432_v19 = vld [vmem:[#allocation6 + $0x3c] ss:$8 sm:$0xf0]  ;;  %v3438_v32 = vld [vmem:[#allocation6 + $0x3d] ss:$8 sm:$0xf0] }
 0x434   :  { %3411 = vst.msk [vmem:[#allocation7 + $0x1] ss:$2 sm:$0x7f] %vm7172_vm0, %v3409_v20  ;;  %3417 = vst.msk [vmem:[#allocation7 + $0xf] ss:$2 sm:$0x7f] %vm7172_vm0, %v3415_v30  ;;  %v3433_v35 = vor.u32 %v3432_v19, %v3431_v22  ;;  %v3439_v1 = vor.u32 %v3438_v32, %v3437_v24 }
 0x435   :  { %v3444_v37 = vld [vmem:[#allocation6 + $0x3e] ss:$8 sm:$0xf0]  ;;  %v3450_v40 = vld [vmem:[#allocation6 + $0x3f] ss:$8 sm:$0xf0] }
 0x436   :  { %3423 = vst.msk [vmem:[#allocation7 + $0x1d] ss:$2 sm:$0x7f] %vm7172_vm0, %v3421_v16  ;;  %3429 = vst.msk [vmem:[#allocation7 + $0x2b] ss:$2 sm:$0x7f] %vm7172_vm0, %v3427_v33  ;;  %v3445_v38 = vor.u32 %v3444_v37, %v3443_v25  ;;  %v3451_v39 = vor.u32 %v3450_v40, %v3449_v29 }
 0x437   :  { %3435 = vst.msk [vmem:[#allocation7 + $0x39] ss:$2 sm:$0x7f] %vm7172_vm0, %v3433_v35  ;;  %3441 = vst.msk [vmem:[#allocation7 + $0x47] ss:$2 sm:$0x7f] %vm7172_vm0, %v3439_v1 }
 0x438   :  { %3447 = vst.msk [vmem:[#allocation7 + $0x55] ss:$2 sm:$0x7f] %vm7172_vm0, %v3445_v38  ;;  %3453 = vst.msk [vmem:[#allocation7 + $0x63] ss:$2 sm:$0x7f] %vm7172_vm0, %v3451_v39 }
 0x439   :  { %v3456_v56 = vld [vmem:[#allocation6 + $0xa8] ss:$8 sm:$0xf0]  ;;  %v3462_v44 = vld [vmem:[#allocation6 + $0xa9] ss:$8 sm:$0xf0] }
 0x43a   :  { %v3457_v45 = vor.u32 %v3456_v56, %v3455_v41  ;;  %v3463_v46 = vor.u32 %v3462_v44, %v3461_v34 }
 0x43c   :  { %3459 = vst.msk [vmem:[#allocation7 + $0x71] ss:$2 sm:$0x7f] %vm7172_vm0, %v3457_v45  ;;  %3465 = vst.msk [vmem:[#allocation7 + $0x7f] ss:$2 sm:$0x7f] %vm7172_vm0, %v3463_v46 }
 0x43d   :  { %6664 = dma.done.wait [#allocation8], 17920 }
 0x43e   :  { %6665 = vsyncadd [#allocation8], 4294949376  ;;  %v6695_v47 = vmov 1983009808   ;;  %v3658_v4 = vshrl.u32 %v350_v13, 7  ;;  %v3489_v36 = vld [vmem:[#allocation2 + $0x3b0] sm:$0xff] }
 0x43f   :  { %v3655_v48 = vunpack.c.l.s4 %v6695_v47  ;;  %v3559_v51 = vld [vmem:[#allocation2 + $0x120] sm:$0x3]  ;;  %v3558_v43 = vld [vmem:[#allocation2 + $0x418] sm:$0x3]  ;;  %v3563_v15 = vld [vmem:[#allocation2 + $0x310] sm:$0x3] }
 0x440   :  { %4048 = vmatprep.subr.mxu1 %v3559_v51  ;;  %v3470_v54 = vld [vmem:[#allocation7] sm:$0xff]  ;;  %v3562_v58 = vld [vmem:[#allocation2 + $0x128] sm:$0x3]  ;;  %v3488_v42 = vld [vmem:[#allocation2 + $0x2b0] sm:$0xff]  ;;  %4188 = vmatprep.subr.mxu0 %v3563_v15  ;;  %vm6470_vm0 = vcmask 74752  }
 0x441   :  { %v3656_v50 = vunpack.c.0.s8 %v3655_v48  ;;  %4049 = vmatpush1.xpose.msra.mxu1 %v3558_v43  ;;  %v3653_v55 = vcombine.high %v3470_v54, %v3470_v54  ;;  %v3493_v59 = vld [vmem:[#allocation2 + $0x438] sm:$0xff]  ;;  %v3561_v13 = vld [vmem:[#allocation2 + $0x2a0] sm:$0x3]  ;;  %4189 = vmatpush1.xpose.msra.mxu0 %v3562_v58  ;;  %v3560_v3 = vld [vmem:[#allocation2 + $0x88] sm:$0x3] }
 0x442   :  { %4050 = vmatprep.subr.mxu1 %v3489_v36  ;;  %v3471_v63 = vld [vmem:[#allocation7 + $0x8] sm:$0xff]  ;;  %4190 = vmatprep.subr.mxu0 %v3493_v59  ;;  %v3472_v21 = vld [vmem:[#allocation7 + $0x10] sm:$0xff]  ;;  %v3567_v9 = vld [vmem:[#allocation2 + $0x2d8] sm:$0x3] }
 0x443   :  { %v8010_v49 = vsub.s32 %v3656_v50, %v3658_v4  ;;  %v3492_v52 = vld [vmem:[#allocation2 + $0x320] sm:$0xff]  ;;  %v3670_v2 = vcombine.high %v3471_v63, %v3471_v63  ;;  %v3491_v7 = vld [vmem:[#allocation2 + $0x448] sm:$0xff]  ;;  %v3473_v12 = vld [vmem:[#allocation7 + $0x18] sm:$0xff]  ;;  %v3687_v24 = vcombine.high %v3472_v21, %v3472_v21 }
 0x444   :  { %v3566_v5 = vld [vmem:[#allocation2 + $0x140] sm:$0x3]  ;;  %v3490_v14 = vld [vmem:[#allocation2 + $0x10] sm:$0xff]  ;;  %v3474_v8 = vld [vmem:[#allocation7 + $0x20] sm:$0xff]  ;;  %v3704_v1 = vcombine.high %v3473_v12, %v3473_v12 }
 0x445   :  { %v3660_v57 = vrot.slane %v3470_v54, %v8010_v49  ;;  %v3667_v53 = vrot.slane %v3653_v55, %v8010_v49  ;;  %v3677_v0 = vrot.slane %v3471_v63, %v8010_v49  ;;  %4051 = vmatpush1.xpose.msra.mxu1 %v3488_v42  ;;  %4191 = vmatpush1.xpose.msra.mxu0 %v3492_v52  ;;  %v3497_v17 = vld [vmem:[#allocation2 + $0x2f0] sm:$0xff]  ;;  %v3565_v18 = vld [vmem:[#allocation2 + $0x220] sm:$0x3]  ;;  %v3501_v16 = vld [vmem:[#allocation2 + $0x228] sm:$0xff] }
 0x446   :  { %4118 = vmatprep.subr.mxu1 %v3561_v13  ;;  %v3694_v10 = vrot.slane %v3472_v21, %v8010_v49  ;;  %v3684_v62 = vrot.slane %v3670_v2, %v8010_v49  ;;  %4328 = vmatprep.subr.mxu0 %v3567_v9  ;;  %v3711_v26 = vrot.slane %v3473_v12, %v8010_v49  ;;  %v3496_v27 = vld [vmem:[#allocation2 + $0x300] sm:$0xff]  ;;  %v3571_v25 = vld [vmem:[#allocation2 + $0x170] sm:$0x3]  ;;  %v3569_v33 = vld [vmem:[#allocation2 + $0xf8] sm:$0x3] }
 0x447   :  { %v3668_v61 = vcombine.high %v3660_v57, %v3660_v57  ;;  %v3669_v23 = vcombine.high %v3667_v53, %v3667_v53  ;;  %v3685_v6 = vcombine.high %v3677_v0, %v3677_v0  ;;  %v3564_v60 = vld [vmem:[#allocation2 + $0x260] sm:$0x3]  ;;  %v3570_v20 = vld [vmem:[#allocation2 + $0x3d0] sm:$0x3]  ;;  %v3701_v30 = vrot.slane %v3687_v24, %v8010_v49  ;;  %v3568_v37 = vld [vmem:[#allocation2 + $0xd8] sm:$0x3] }
 0x448   :  { %v3702_v11 = vcombine.high %v3694_v10, %v3694_v10  ;;  %v3686_v22 = vcombine.high %v3684_v62, %v3684_v62  ;;  %v3495_v28 = vld [vmem:[#allocation2 + $0x100] sm:$0xff]  ;;  %v3719_v29 = vcombine.high %v3711_v26, %v3711_v26  ;;  %v3494_v31 = vld [vmem:[#allocation2 + $0x370] sm:$0xff]  ;;  %v3728_v19 = vrot.slane %v3474_v8, %v8010_v49  ;;  %v3505_v45 = vld [vmem:[#allocation2 + $0x158] sm:$0xff] }
 0x449   :  { %4084 = vmatprep.mubr.f32.mxu1 %v3668_v61  ;;  %4224 = vmatprep.mubr.f32.mxu0 %v3685_v6  ;;  %v3500_v32 = vld [vmem:[#allocation2 + $0x50] sm:$0xff]  ;;  %v3703_v35 = vcombine.high %v3701_v30, %v3701_v30  ;;  %v3499_v40 = vld [vmem:[#allocation2 + $0x380] sm:$0xff]  ;;  %v3718_v34 = vrot.slane %v3704_v1, %v8010_v49  ;;  %v3573_v46 = vld [vmem:[#allocation2 + $0x148] sm:$0x3]  ;;  %v3721_v50 = vcombine.high %v3474_v8, %v3474_v8 }
 0x44a   :  { %4085 = vmatmul.mubr.f32.vlgmr.msra.gmra.mxu1 %v3660_v57  ;;  %4225 = vmatmul.mubr.f32.vlgmr.msra.gmra.mxu0 %v3677_v0  ;;  %v3575_v38 = vld [vmem:[#allocation2 + $0x340] sm:$0x3]  ;;  %v3736_v39 = vcombine.high %v3728_v19, %v3728_v19  ;;  %v3574_v41 = vld [vmem:[#allocation2 + $0x210] sm:$0x3]  ;;  %v3504_v48 = vld [vmem:[#allocation2 + $0x58] sm:$0xff] }
 0x44b   :  { %4119 = vmatpush1.xpose.msra.mxu1 %v3560_v3  ;;  %4154 = vmatprep.mubr.f32.mxu1 %v3669_v23  ;;  %v3475_v56 = vld [vmem:[#allocation7 + $0x28] sm:$0xff]  ;;  %v3498_v44 = vld [vmem:[#allocation2 + $0x290] sm:$0xff]  ;;  %v3720_v4 = vcombine.high %v3718_v34, %v3718_v34  ;;  %v3579_v36 = vld [vmem:[#allocation2 + $0x48] sm:$0x3]  ;;  %v3735_v57 = vrot.slane %v3721_v50, %v8010_v49 }
 0x44c   :  { %4120 = vmatprep.subr.mxu1 %v3491_v7  ;;  %4329 = vmatpush1.xpose.msra.mxu0 %v3566_v5  ;;  %v3745_v47 = vrot.slane %v3475_v56, %v8010_v49  ;;  %v3572_v51 = vld [vmem:[#allocation2 + $0x200] sm:$0x3]  ;;  %v3503_v43 = vld [vmem:[#allocation2 + $0xd0] sm:$0xff]  ;;  %v3476_v15 = vld [vmem:[#allocation7 + $0x30] sm:$0xff]  ;;  %v3738_v63 = vcombine.high %v3475_v56, %v3475_v56 }
 0x44d   :  { %4364 = vmatprep.mubr.f32.mxu0 %v3702_v11  ;;  %4330 = vmatprep.subr.mxu0 %v3497_v17  ;;  %v3578_v55 = vld [vmem:[#allocation2 + $0x2d0] sm:$0x3]  ;;  %v3502_v58 = vld [vmem:[#allocation2 + $0x40] sm:$0xff]  ;;  %v3577_v59 = vld [vmem:[#allocation2 + $0x8] sm:$0x3]  ;;  %v3762_v61 = vrot.slane %v3476_v15, %v8010_v49  ;;  %v3755_v12 = vcombine.high %v3476_v15, %v3476_v15 }
 0x44e   :  { %v3753_v54 = vcombine.high %v3745_v47, %v3745_v47  ;;  %v3509_v42 = vld [vmem:[#allocation2 + $0xf0] sm:$0xff]  ;;  %v3508_v13 = vld [vmem:[#allocation2 + $0x358] sm:$0xff]  ;;  %v3583_v23 = vld [vmem:[#allocation2 + $0x408] sm:$0x3]  ;;  %v3752_v6 = vrot.slane %v3738_v63, %v8010_v49 }
 0x44f   :  { %4121 = vmatpush1.xpose.msra.mxu1 %v3490_v14  ;;  %v3576_v52 = vld [vmem:[#allocation2 + $0x338] sm:$0x3]  ;;  %v3770_v2 = vcombine.high %v3762_v61, %v3762_v61  ;;  %v3477_v21 = vld [vmem:[#allocation7 + $0x38] sm:$0xff]  ;;  %v3513_v9 = vld [vmem:[#allocation2 + $0x428] sm:$0xff] }
 0x450   :  { %4258 = vmatprep.subr.mxu1 %v3565_v18  ;;  %4331 = vmatpush1.xpose.msra.mxu0 %v3496_v27  ;;  %v3507_v0 = vld [vmem:[#allocation2 + $0x98] sm:$0xff]  ;;  %v3779_v5 = vrot.slane %v3477_v21, %v8010_v49  ;;  %v3754_v11 = vcombine.high %v3752_v6, %v3752_v6  ;;  %v3511_v17 = vld [vmem:[#allocation2 + $0x3f0] sm:$0xff]  ;;  %v3772_v8 = vcombine.high %v3477_v21, %v3477_v21  ;;  %v3479_v1 = vld [vmem:[#allocation7 + $0x48] sm:$0xff] }
 0x451   :  { %4468 = vmatprep.subr.mxu0 %v3571_v25  ;;  %v3582_v3 = vld [vmem:[#allocation2 + $0x298] sm:$0x3]  ;;  %v3480_v50 = vld [vmem:[#allocation7 + $0x50] sm:$0xff]  ;;  %v3806_v15 = vcombine.high %v3479_v1, %v3479_v1  ;;  %v3481_v63 = vld [vmem:[#allocation7 + $0x58] sm:$0xff] }
 0x452   :  { %4155 = vmatmul.mubr.f32.vlgmr.msra.gmra.mxu1 %v3667_v53  ;;  %v3737_v53 = vcombine.high %v3735_v57, %v3735_v57  ;;  %v3506_v7 = vld [vmem:[#allocation2 + $0x218] sm:$0xff]  ;;  %v3823_v21 = vcombine.high %v3480_v50, %v3480_v50 }
 0x453   :  { %4259 = vmatpush1.xpose.msra.mxu1 %v3564_v60  ;;  %4294 = vmatprep.mubr.f32.mxu1 %v3686_v22  ;;  %v3580_v14 = vld [vmem:[#allocation2 + $0x2f8] sm:$0x3]  ;;  %v3769_v22 = vrot.slane %v3755_v12, %v8010_v49 }
 0x454   :  { %4260 = vmatprep.subr.mxu1 %v3495_v28  ;;  %4365 = vmatmul.mubr.f32.vlgmr.msra.gmra.mxu0 %v3694_v10  ;;  %v3581_v10 = vld [vmem:[#allocation2 + $0x230] sm:$0x3]  ;;  %v3587_v18 = vld [vmem:[#allocation2 + $0x3d8] sm:$0x3]  ;;  %v3517_v28 = vld [vmem:[#allocation2 + $0x248] sm:$0xff] }
 0x455   :  { %4469 = vmatpush1.xpose.msra.mxu0 %v3570_v20  ;;  %4504 = vmatprep.mubr.f32.mxu0 %v3719_v29  ;;  %v3586_v27 = vld [vmem:[#allocation2 + $0x38] sm:$0x3] }
 0x456   :  { %4470 = vmatprep.subr.mxu0 %v3501_v16  ;;  %v3478_v24 = vld [vmem:[#allocation7 + $0x40] sm:$0xff]  ;;  %v3515_v16 = vld [vmem:[#allocation2 + $0xa0] sm:$0xff] }
 0x457   :  { %4261 = vmatpush1.xpose.msra.mxu1 %v3494_v31  ;;  %v3510_v60 = vld [vmem:[#allocation2 + $0x378] sm:$0xff]  ;;  %v3796_v29 = vrot.slane %v3478_v24, %v8010_v49  ;;  %v3789_v56 = vcombine.high %v3478_v24, %v3478_v24  ;;  %v3840_v24 = vcombine.high %v3481_v63, %v3481_v63 }
 0x458   :  { %4398 = vmatprep.subr.mxu1 %v3569_v33  ;;  %v3585_v25 = vld [vmem:[#allocation2 + $0x3f8] sm:$0x3]  ;;  %v3591_v33 = vld [vmem:[#allocation2 + $0x3e0] sm:$0x3] }
 0x459   :  { %4471 = vmatpush1.xpose.msra.mxu0 %v3500_v32  ;;  %v3516_v20 = vld [vmem:[#allocation2 + $0x78] sm:$0xff]  ;;  %v3590_v32 = vld [vmem:[#allocation2 + $0x20] sm:$0x3] }
 0x45a   :  { %4295 = vmatmul.mubr.f32.vlgmr.msra.gmra.mxu1 %v3684_v62  ;;  %4608 = vmatprep.subr.mxu0 %v3575_v38  ;;  %v3512_v62 = vld [vmem:[#allocation2 + $0x1b8] sm:$0xff]  ;;  %v3589_v38 = vld [vmem:[#allocation2 + $0x110] sm:$0x3] }
 0x45b   :  { %4399 = vmatpush1.xpose.msra.mxu1 %v3568_v37  ;;  %4434 = vmatprep.mubr.f32.mxu1 %v3703_v35  ;;  %v3584_v31 = vld [vmem:[#allocation2 + $0x458] sm:$0x3]  ;;  %v3786_v35 = vrot.slane %v3772_v8, %v8010_v49  ;;  %v3514_v37 = vld [vmem:[#allocation2 + $0x3a0] sm:$0xff] }
 0x45c   :  { %4400 = vmatprep.subr.mxu1 %v3499_v40  ;;  %4505 = vmatmul.mubr.f32.vlgmr.msra.gmra.mxu0 %v3711_v26  ;;  %v3787_v26 = vcombine.high %v3779_v5, %v3779_v5  ;;  %v3521_v40 = vld [vmem:[#allocation2 + $0x270] sm:$0xff]  ;;  %v3482_v12 = vld [vmem:[#allocation7 + $0x60] sm:$0xff]  ;;  %v3483_v8 = vld [vmem:[#allocation7 + $0x68] sm:$0xff] }
 0x45d   :  { %4609 = vmatpush1.xpose.msra.mxu0 %v3574_v41  ;;  %4644 = vmatprep.mubr.f32.mxu0 %v3736_v39  ;;  %v3813_v39 = vrot.slane %v3479_v1, %v8010_v49  ;;  %v3520_v41 = vld [vmem:[#allocation2 + $0x60] sm:$0xff]  ;;  %v3857_v1 = vcombine.high %v3482_v12, %v3482_v12 }
 0x45e   :  { %4610 = vmatprep.subr.mxu0 %v3505_v45  ;;  %v3519_v45 = vld [vmem:[#allocation2 + $0x420] sm:$0xff] }
 0x45f   :  { %4401 = vmatpush1.xpose.msra.mxu1 %v3498_v44  ;;  %v3588_v44 = vld [vmem:[#allocation2 + $0xc0] sm:$0x3] }
 0x460   :  { %4538 = vmatprep.subr.mxu1 %v3573_v46  ;;  %v3595_v46 = vld [vmem:[#allocation2 + $0x3a8] sm:$0x3] }
 0x461   :  { %4611 = vmatpush1.xpose.msra.mxu0 %v3504_v48  ;;  %v3594_v48 = vld [vmem:[#allocation2 + $0x3c8] sm:$0x3] }
 0x462   :  { %4435 = vmatmul.mubr.f32.vlgmr.msra.gmra.mxu1 %v3701_v30  ;;  %4748 = vmatprep.subr.mxu0 %v3579_v36  ;;  %v3771_v30 = vcombine.high %v3769_v22, %v3769_v22  ;;  %v3593_v36 = vld [vmem:[#allocation2 + $0x70] sm:$0x3] }
 0x463   :  { %4539 = vmatpush1.xpose.msra.mxu1 %v3572_v51  ;;  %4574 = vmatprep.mubr.f32.mxu1 %v3720_v4  ;;  %v3803_v4 = vrot.slane %v3789_v56, %v8010_v49  ;;  %v3518_v51 = vld [vmem:[#allocation2 + $0x398] sm:$0xff]  ;;  %v3484_v56 = vld [vmem:[#allocation7 + $0x70] sm:$0xff] }
 0x464   :  { %4540 = vmatprep.subr.mxu1 %v3503_v43  ;;  %4645 = vmatmul.mubr.f32.vlgmr.msra.gmra.mxu0 %v3728_v19  ;;  %v3804_v19 = vcombine.high %v3796_v29, %v3796_v29  ;;  %v3525_v43 = vld [vmem:[#allocation2 + $0x318] sm:$0xff] }
 0x465   :  { %4749 = vmatpush1.xpose.msra.mxu0 %v3578_v55  ;;  %4784 = vmatprep.mubr.f32.mxu0 %v3753_v54  ;;  %v3830_v54 = vrot.slane %v3480_v50, %v8010_v49  ;;  %v3524_v55 = vld [vmem:[#allocation2 + $0x1a0] sm:$0xff]  ;;  %v3874_v50 = vcombine.high %v3483_v8, %v3483_v8 }
 0x466   :  { %4750 = vmatprep.subr.mxu0 %v3509_v42  ;;  %v3523_v42 = vld [vmem:[#allocation2 + $0x190] sm:$0xff] }
 0x467   :  { %4541 = vmatpush1.xpose.msra.mxu1 %v3502_v58  ;;  %v3592_v58 = vld [vmem:[#allocation2 + $0x388] sm:$0x3] }
 0x468   :  { %4678 = vmatprep.subr.mxu1 %v3577_v59  ;;  %v3599_v59 = vld [vmem:[#allocation2 + $0xe8] sm:$0x3] }
 0x469   :  { %4751 = vmatpush1.xpose.msra.mxu0 %v3508_v13  ;;  %v3598_v13 = vld [vmem:[#allocation2 + $0xe0] sm:$0x3] }
 0x46a   :  { %4575 = vmatmul.mubr.f32.vlgmr.msra.gmra.mxu1 %v3718_v34  ;;  %4888 = vmatprep.subr.mxu0 %v3583_v23  ;;  %v3788_v34 = vcombine.high %v3786_v35, %v3786_v35  ;;  %v3597_v23 = vld [vmem:[#allocation2 + $0xc8] sm:$0x3] }
 0x46b   :  { %4679 = vmatpush1.xpose.msra.mxu1 %v3576_v52  ;;  %4714 = vmatprep.mubr.f32.mxu1 %v3737_v53  ;;  %v3820_v53 = vrot.slane %v3806_v15, %v8010_v49  ;;  %v3522_v52 = vld [vmem:[#allocation2 + $0x168] sm:$0xff]  ;;  %v3485_v15 = vld [vmem:[#allocation7 + $0x78] sm:$0xff] }
 0x46c   :  { %4680 = vmatprep.subr.mxu1 %v3507_v0  ;;  %4785 = vmatmul.mubr.f32.vlgmr.msra.gmra.mxu0 %v3745_v47  ;;  %v3821_v47 = vcombine.high %v3813_v39, %v3813_v39  ;;  %v3529_v0 = vld [vmem:[#allocation2 + $0x3c0] sm:$0xff] }
 0x46d   :  { %4889 = vmatpush1.xpose.msra.mxu0 %v3582_v3  ;;  %4924 = vmatprep.mubr.f32.mxu0 %v3770_v2  ;;  %v3847_v2 = vrot.slane %v3481_v63, %v8010_v49  ;;  %v3528_v3 = vld [vmem:[#allocation2 + $0x2e8] sm:$0xff]  ;;  %v3891_v63 = vcombine.high %v3484_v56, %v3484_v56 }
 0x46e   :  { %4890 = vmatprep.subr.mxu0 %v3513_v9  ;;  %v3527_v9 = vld [vmem:[#allocation2 + $0x1f0] sm:$0xff] }
 0x46f   :  { %4681 = vmatpush1.xpose.msra.mxu1 %v3506_v7  ;;  %v3596_v7 = vld [vmem:[#allocation2 + $0x1c0] sm:$0x3] }
 0x470   :  { %4818 = vmatprep.subr.mxu1 %v3581_v10  ;;  %v3603_v10 = vld [vmem:[#allocation2 + $0x160] sm:$0x3] }
 0x471   :  { %4891 = vmatpush1.xpose.msra.mxu0 %v3512_v62  ;;  %v3602_v62 = vld [vmem:[#allocation2 + $0x350] sm:$0x3] }
 0x472   :  { %4715 = vmatmul.mubr.f32.vlgmr.msra.gmra.mxu1 %v3735_v57  ;;  %5028 = vmatprep.subr.mxu0 %v3587_v18  ;;  %v3805_v57 = vcombine.high %v3803_v4, %v3803_v4  ;;  %v3601_v18 = vld [vmem:[#allocation2 + $0x28] sm:$0x3] }
 0x473   :  { %4819 = vmatpush1.xpose.msra.mxu1 %v3580_v14  ;;  %4854 = vmatprep.mubr.f32.mxu1 %v3754_v11  ;;  %v3837_v11 = vrot.slane %v3823_v21, %v8010_v49  ;;  %v3526_v14 = vld [vmem:[#allocation2 + $0x1e0] sm:$0xff]  ;;  %v3486_v21 = vld [vmem:[#allocation7 + $0x80] sm:$0xff] }
 0x474   :  { %4820 = vmatprep.subr.mxu1 %v3511_v17  ;;  %4925 = vmatmul.mubr.f32.vlgmr.msra.gmra.mxu0 %v3762_v61  ;;  %v3838_v61 = vcombine.high %v3830_v54, %v3830_v54  ;;  %v3533_v17 = vld [vmem:[#allocation2 + $0x250] sm:$0xff] }
 0x475   :  { %5029 = vmatpush1.xpose.msra.mxu0 %v3586_v27  ;;  %5064 = vmatprep.mubr.f32.mxu0 %v3787_v26  ;;  %v3864_v26 = vrot.slane %v3482_v12, %v8010_v49  ;;  %v3532_v27 = vld [vmem:[#allocation2 + $0x1c8] sm:$0xff]  ;;  %v3908_v12 = vcombine.high %v3485_v15, %v3485_v15 }
 0x476   :  { %5030 = vmatprep.subr.mxu0 %v3517_v28  ;;  %v3531_v28 = vld [vmem:[#allocation2 + $0x360] sm:$0xff] }
 0x477   :  { %4821 = vmatpush1.xpose.msra.mxu1 %v3510_v60  ;;  %v3600_v60 = vld [vmem:[#allocation2 + $0x430] sm:$0x3] }
 0x478   :  { %4958 = vmatprep.subr.mxu1 %v3585_v25  ;;  %v3607_v25 = vld [vmem:[#allocation2 + $0x390] sm:$0x3] }
 0x479   :  { %5031 = vmatpush1.xpose.msra.mxu0 %v3516_v20  ;;  %v3606_v20 = vld [vmem:[#allocation2 + $0x258] sm:$0x3] }
 0x47a   :  { %4855 = vmatmul.mubr.f32.vlgmr.msra.gmra.mxu1 %v3752_v6  ;;  %5168 = vmatprep.subr.mxu0 %v3591_v33  ;;  %v3822_v6 = vcombine.high %v3820_v53, %v3820_v53  ;;  %v3605_v33 = vld [vmem:[#allocation2 + $0x80] sm:$0x3] }
 0x47b   :  { %4959 = vmatpush1.xpose.msra.mxu1 %v3584_v31  ;;  %4994 = vmatprep.mubr.f32.mxu1 %v3771_v30  ;;  %v3854_v30 = vrot.slane %v3840_v24, %v8010_v49  ;;  %v3530_v31 = vld [vmem:[#allocation2 + $0x440] sm:$0xff] }
 0x47c   :  { %4960 = vmatprep.subr.mxu1 %v3515_v16  ;;  %5065 = vmatmul.mubr.f32.vlgmr.msra.gmra.mxu0 %v3779_v5  ;;  %v3855_v5 = vcombine.high %v3847_v2, %v3847_v2  ;;  %v3537_v16 = vld [vmem:[#allocation2 + $0xb8] sm:$0xff]  ;;  %v3546_v24 = vld [vmem:[#allocation2 + $0x280] sm:$0xff] }
 0x47d   :  { %5169 = vmatpush1.xpose.msra.mxu0 %v3590_v32  ;;  %5204 = vmatprep.mubr.f32.mxu0 %v3804_v19  ;;  %v3881_v19 = vrot.slane %v3483_v8, %v8010_v49  ;;  %v3536_v32 = vld [vmem:[#allocation2 + $0x2b8] sm:$0xff]  ;;  %v3620_v8 = vld [vmem:[#allocation2] sm:$0x3] }
 0x47e   :  { %5170 = vmatprep.subr.mxu0 %v3521_v40  ;;  %v3535_v40 = vld [vmem:[#allocation2 + $0x400] sm:$0xff] }
 0x47f   :  { %4961 = vmatpush1.xpose.msra.mxu1 %v3514_v37  ;;  %v3604_v37 = vld [vmem:[#allocation2 + $0x450] sm:$0x3] }
 0x480   :  { %5098 = vmatprep.subr.mxu1 %v3589_v38  ;;  %v3611_v38 = vld [vmem:[#allocation2 + $0xb0] sm:$0x3] }
 0x481   :  { %5171 = vmatpush1.xpose.msra.mxu0 %v3520_v41  ;;  %v3610_v41 = vld [vmem:[#allocation2 + $0x208] sm:$0x3] }
 0x482   :  { %4995 = vmatmul.mubr.f32.vlgmr.msra.gmra.mxu1 %v3769_v22  ;;  %5308 = vmatprep.subr.mxu0 %v3595_v46  ;;  %v3839_v22 = vcombine.high %v3837_v11, %v3837_v11  ;;  %v3609_v46 = vld [vmem:[#allocation2 + $0x1e8] sm:$0x3] }
 0x483   :  { %5099 = vmatpush1.xpose.msra.mxu1 %v3588_v44  ;;  %5134 = vmatprep.mubr.f32.mxu1 %v3788_v34  ;;  %v3871_v34 = vrot.slane %v3857_v1, %v8010_v49  ;;  %v3534_v44 = vld [vmem:[#allocation2 + $0x348] sm:$0xff] }
 0x484   :  { %5100 = vmatprep.subr.mxu1 %v3519_v45  ;;  %5205 = vmatmul.mubr.f32.vlgmr.msra.gmra.mxu0 %v3796_v29  ;;  %v3872_v29 = vcombine.high %v3864_v26, %v3864_v26  ;;  %v3541_v45 = vld [vmem:[#allocation2 + $0x328] sm:$0xff] }
 0x485   :  { %5309 = vmatpush1.xpose.msra.mxu0 %v3594_v48  ;;  %5344 = vmatprep.mubr.f32.mxu0 %v3821_v47  ;;  %v3898_v47 = vrot.slane %v3484_v56, %v8010_v49  ;;  %v3540_v48 = vld [vmem:[#allocation2 + $0x240] sm:$0xff]  ;;  %v3557_v1 = vld [vmem:[#allocation2 + $0xa8] sm:$0xff] }
 0x486   :  { %5310 = vmatprep.subr.mxu0 %v3525_v43  ;;  %v3539_v43 = vld [vmem:[#allocation2 + $0x330] sm:$0xff] }
 0x487   :  { %5101 = vmatpush1.xpose.msra.mxu1 %v3518_v51  ;;  %v3608_v51 = vld [vmem:[#allocation2 + $0x130] sm:$0x3] }
 0x488   :  { %5238 = vmatprep.subr.mxu1 %v3593_v36  ;;  %v3615_v36 = vld [vmem:[#allocation2 + $0x1d0] sm:$0x3] }
 0x489   :  { %5311 = vmatpush1.xpose.msra.mxu0 %v3524_v55  ;;  %v3614_v55 = vld [vmem:[#allocation2 + $0x180] sm:$0x3] }
 0x48a   :  { %5135 = vmatmul.mubr.f32.vlgmr.msra.gmra.mxu1 %v3786_v35  ;;  %5448 = vmatprep.subr.mxu0 %v3599_v59  ;;  %v3856_v35 = vcombine.high %v3854_v30, %v3854_v30  ;;  %v3613_v59 = vld [vmem:[#allocation2 + $0x18] sm:$0x3] }
 0x48b   :  { %5239 = vmatpush1.xpose.msra.mxu1 %v3592_v58  ;;  %5274 = vmatprep.mubr.f32.mxu1 %v3805_v57  ;;  %v3888_v57 = vrot.slane %v3874_v50, %v8010_v49  ;;  %v3538_v58 = vld [vmem:[#allocation2 + $0x3e8] sm:$0xff] }
 0x48c   :  { %5240 = vmatprep.subr.mxu1 %v3523_v42  ;;  %5345 = vmatmul.mubr.f32.vlgmr.msra.gmra.mxu0 %v3813_v39  ;;  %v3889_v39 = vcombine.high %v3881_v19, %v3881_v19  ;;  %v3545_v42 = vld [vmem:[#allocation2 + $0x278] sm:$0xff] }
 0x48d   :  { %5449 = vmatpush1.xpose.msra.mxu0 %v3598_v13  ;;  %5484 = vmatprep.mubr.f32.mxu0 %v3838_v61  ;;  %v3915_v61 = vrot.slane %v3485_v15, %v8010_v49  ;;  %v3544_v13 = vld [vmem:[#allocation2 + $0x308] sm:$0xff] }
 0x48e   :  { %5450 = vmatprep.subr.mxu0 %v3529_v0  ;;  %v3543_v0 = vld [vmem:[#allocation2 + $0x1b0] sm:$0xff] }
 0x48f   :  { %5241 = vmatpush1.xpose.msra.mxu1 %v3522_v52  ;;  %v3612_v52 = vld [vmem:[#allocation2 + $0x68] sm:$0x3] }
 0x490   :  { %5378 = vmatprep.subr.mxu1 %v3597_v23  ;;  %v3619_v23 = vld [vmem:[#allocation2 + $0x1a8] sm:$0x3] }
 0x491   :  { %5451 = vmatpush1.xpose.msra.mxu0 %v3528_v3  ;;  %v3618_v3 = vld [vmem:[#allocation2 + $0x108] sm:$0x3] }
 0x492   :  { %5275 = vmatmul.mubr.f32.vlgmr.msra.gmra.mxu1 %v3803_v4  ;;  %5588 = vmatprep.subr.mxu0 %v3603_v10  ;;  %v3873_v4 = vcombine.high %v3871_v34, %v3871_v34  ;;  %v3617_v10 = vld [vmem:[#allocation2 + $0x288] sm:$0x3] }
 0x493   :  { %5379 = vmatpush1.xpose.msra.mxu1 %v3596_v7  ;;  %5414 = vmatprep.mubr.f32.mxu1 %v3822_v6  ;;  %v3905_v6 = vrot.slane %v3891_v63, %v8010_v49  ;;  %v3542_v7 = vld [vmem:[#allocation2 + $0x90] sm:$0xff] }
 0x494   :  { %5380 = vmatprep.subr.mxu1 %v3527_v9  ;;  %5485 = vmatmul.mubr.f32.vlgmr.msra.gmra.mxu0 %v3830_v54  ;;  %v3906_v54 = vcombine.high %v3898_v47, %v3898_v47  ;;  %v3549_v9 = vld [vmem:[#allocation2 + $0x2c0] sm:$0xff] }
 0x495   :  { %5589 = vmatpush1.xpose.msra.mxu0 %v3602_v62  ;;  %5624 = vmatprep.mubr.f32.mxu0 %v3855_v5  ;;  %v3932_v5 = vrot.slane %v3486_v21, %v8010_v49  ;;  %v3548_v62 = vld [vmem:[#allocation2 + $0x118] sm:$0xff] }
 0x496   :  { %5590 = vmatprep.subr.mxu0 %v3533_v17  ;;  %v3547_v17 = vld [vmem:[#allocation2 + $0x2e0] sm:$0xff] }
 0x497   :  { %5381 = vmatpush1.xpose.msra.mxu1 %v3526_v14  ;;  %v3616_v14 = vld [vmem:[#allocation2 + $0x1d8] sm:$0x3] }
 0x498   :  { %5518 = vmatprep.subr.mxu1 %v3601_v18  ;;  %v3623_v18 = vld [vmem:[#allocation2 + $0x2c8] sm:$0x3] }
 0x499   :  { %5591 = vmatpush1.xpose.msra.mxu0 %v3532_v27  ;;  %v3622_v27 = vld [vmem:[#allocation2 + $0x238] sm:$0x3] }
 0x49a   :  { %5415 = vmatmul.mubr.f32.vlgmr.msra.gmra.mxu1 %v3820_v53  ;;  %5728 = vmatprep.subr.mxu0 %v3607_v25  ;;  %v3890_v53 = vcombine.high %v3888_v57, %v3888_v57  ;;  %v3552_v25 = vld [vmem:[#allocation2 + $0x368] sm:$0xff] }
 0x49b   :  { %5519 = vmatpush1.xpose.msra.mxu1 %v3600_v60  ;;  %5554 = vmatprep.mubr.f32.mxu1 %v3839_v22  ;;  %v3922_v22 = vrot.slane %v3908_v12, %v8010_v49  ;;  %v3553_v60 = vld [vmem:[#allocation2 + $0x268] sm:$0xff] }
 0x49c   :  { %5520 = vmatprep.subr.mxu1 %v3531_v28  ;;  %5625 = vmatmul.mubr.f32.vlgmr.msra.gmra.mxu0 %v3847_v2  ;;  %v3923_v2 = vcombine.high %v3915_v61, %v3915_v61  ;;  %v3621_v28 = vld [vmem:[#allocation2 + $0x178] sm:$0x3] }
 0x49d   :  { %5729 = vmatpush1.xpose.msra.mxu0 %v3606_v20  ;;  %5764 = vmatprep.mubr.f32.mxu0 %v3872_v29  ;;  %v3924_v29 = vcombine.high %v3922_v22, %v3922_v22  ;;  %v3925_v20 = vcombine.high %v3486_v21, %v3486_v21 }
 0x49e   :  { %5730 = vmatprep.subr.mxu0 %v3537_v16  ;;  %v3627_v16 = vld [vmem:[#allocation2 + $0x30] sm:$0x3] }
 0x49f   :  { %5521 = vmatpush1.xpose.msra.mxu1 %v3530_v31  ;;  %v3551_v31 = vld [vmem:[#allocation2 + $0x410] sm:$0xff] }
 0x4a0   :  { %5658 = vmatprep.subr.mxu1 %v3605_v33 }
 0x4a1   :  { %5731 = vmatpush1.xpose.msra.mxu0 %v3536_v32  ;;  %v3939_v32 = vrot.slane %v3925_v20, %v8010_v49  ;;  %v3554_v49 = vld [vmem:[#allocation2 + $0x1f8] sm:$0xff] }
 0x4a2   :  { %5555 = vmatmul.mubr.f32.vlgmr.msra.gmra.mxu1 %v3837_v11  ;;  %5868 = vmatprep.subr.mxu0 %v3611_v38  ;;  %v3907_v11 = vcombine.high %v3905_v6, %v3905_v6 }
 0x4a3   :  { %5659 = vmatpush1.xpose.msra.mxu1 %v3604_v37  ;;  %5694 = vmatprep.mubr.f32.mxu1 %v3856_v35  ;;  %v3550_v35 = vld [vmem:[#allocation2 + $0x3b8] sm:$0xff]  ;;  %v3625_v37 = vld [vmem:[#allocation2 + $0x150] sm:$0x3]  ;;  %v3941_v38 = vcombine.high %v3939_v32, %v3939_v32 }
 0x4a4   :  { %5660 = vmatprep.subr.mxu1 %v3535_v40  ;;  %5765 = vmatmul.mubr.f32.vlgmr.msra.gmra.mxu0 %v3864_v26  ;;  %v3940_v26 = vcombine.high %v3932_v5, %v3932_v5  ;;  %v3556_v40 = vld [vmem:[#allocation2 + $0x138] sm:$0xff] }
 0x4a5   :  { %5869 = vmatpush1.xpose.msra.mxu0 %v3610_v41  ;;  %5904 = vmatprep.mubr.f32.mxu0 %v3889_v39  ;;  %v3624_v39 = vld [vmem:[#allocation2 + $0x2a8] sm:$0x3]  ;;  %v3555_v41 = vld [vmem:[#allocation2 + $0x198] sm:$0xff] }
 0x4a6   :  { %5870 = vmatprep.subr.mxu0 %v3541_v45  ;;  %v6571_v45 = vld [vmem:[%s8060_s5] ss:$0 sm:$0xff]  ;;  %s6696_s5 = smov [#allocation9]  }
 0x4a7   :  { %5661 = vmatpush1.xpose.msra.mxu1 %v3534_v44  ;;  %s6498_s20 = sshll.u32 %s6696_s5, 4  ;;  %s6499_s20 = int_to_ptr.vmem [resolvable:$true] %s6498_s20 }
 0x4a8   :  { %5798 = vmatprep.subr.mxu1 %v3609_v46  ;;  %s6644_s21 = scalar_lea.vmem %s6499_s20, 32  ;;  %p6649_p1 = scmp.lt.s32.totalorder %s6499_s20, %s6499_s20 }
 0x4a9   :  { %5871 = vmatpush1.xpose.msra.mxu0 %v3540_v48  ;;  %p6645_p0 = scmp.ne.s32.totalorder %s6499_s20, %s6644_s21  ;;  %p6650_p2 = scmp.lt.s32.totalorder %s6644_s21, %s6644_s21 }
 0x4aa   :  { %5695 = vmatmul.mubr.f32.vlgmr.msra.gmra.mxu1 %v3854_v30  ;;  %6008 = vmatprep.subr.mxu0 %v3615_v36  ;;  %v6572_v30 = vld.sshfl [vmem:[#allocation7 + $0x88] sm:$0x33 pattern:$0x76325410] }
 0x4ab   :  { %5799 = vmatpush1.xpose.msra.mxu1 %v3608_v51  ;;  %5834 = vmatprep.mubr.f32.mxu1 %v3873_v4  ;;  %v3949_v33 = vcombine.high %v6572_v30, %v6572_v30  ;;  %p6651_p3 = por %p6650_p2, %p6649_p1 }
 0x4ac   :  { %5800 = vmatprep.subr.mxu1 %v3539_v43  ;;  %5905 = vmatmul.mubr.f32.vlgmr.msra.gmra.mxu0 %v3881_v19  ;;  %v3626_v19 = vld [vmem:[#allocation2 + $0x188] sm:$0x3] }
 0x4ad   :  { %6009 = vmatpush1.xpose.msra.mxu0 %v3614_v55  ;;  %6044 = vmatprep.mubr.f32.mxu0 %v3906_v54  ;;  %p6652_p4 = pnand %p6651_p3, %p6645_p0 }
 0x4ae   :  { %6010 = vmatprep.subr.mxu0 %v3545_v42 }
 0x4af   :  { %5801 = vmatpush1.xpose.msra.mxu1 %v3538_v58 }
 0x4b0   :  { %5938 = vmatprep.subr.mxu1 %v3613_v59 }
 0x4b1   :  { %6011 = vmatpush1.xpose.msra.mxu0 %v3544_v13 }
 0x4b2   :  { %5835 = vmatmul.mubr.f32.vlgmr.msra.gmra.mxu1 %v3871_v34  ;;  %6148 = vmatprep.subr.mxu0 %v3619_v23 }
 0x4b3   :  { %5939 = vmatpush1.xpose.msra.mxu1 %v3612_v52  ;;  %5974 = vmatprep.mubr.f32.mxu1 %v3890_v53 }
 0x4b4   :  { %5940 = vmatprep.subr.mxu1 %v3543_v0  ;;  %6045 = vmatmul.mubr.f32.vlgmr.msra.gmra.mxu0 %v3898_v47 }
 0x4b5   :  { %6149 = vmatpush1.xpose.msra.mxu0 %v3618_v3  ;;  %6184 = vmatprep.mubr.f32.mxu0 %v3923_v2 }
 0x4b6   :  { %6150 = vmatprep.subr.mxu0 %v3549_v9 }
 0x4b7   :  { %5941 = vmatpush1.xpose.msra.mxu1 %v3542_v7 }
 0x4b8   :  { %6078 = vmatprep.subr.mxu1 %v3617_v10 }
 0x4b9   :  { %6151 = vmatpush1.xpose.msra.mxu0 %v3548_v62 }
 0x4ba   :  { %5975 = vmatmul.mubr.f32.vlgmr.msra.gmra.mxu1 %v3888_v57  ;;  %6288 = vmatprep.subr.mxu0 %v3623_v18 }
 0x4bb   :  { %6079 = vmatpush1.xpose.msra.mxu1 %v3616_v14  ;;  %6114 = vmatprep.mubr.f32.mxu1 %v3907_v11 }
 0x4bc   :  { %6080 = vmatprep.subr.mxu1 %v3547_v17  ;;  %6185 = vmatmul.mubr.f32.vlgmr.msra.gmra.mxu0 %v3915_v61 }
 0x4bd   :  { %6289 = vmatpush1.xpose.msra.mxu0 %v3622_v27  ;;  %6324 = vmatprep.mubr.f32.mxu0 %v3940_v26 }
 0x4be   :  { %6290 = vmatprep.subr.mxu0 %v3553_v60 }
 0x4bf   :  { %6081 = vmatpush1.xpose.msra.mxu1 %v3546_v24 }
 0x4c0   :  { %6218 = vmatprep.subr.mxu1 %v3621_v28 }
 0x4c1   :  { %6291 = vmatpush1.xpose.msra.mxu0 %v3552_v25 }
 0x4c2   :  { %6115 = vmatmul.mubr.f32.vlgmr.msra.gmra.mxu1 %v3905_v6  ;;  %6428 = vmatprep.subr.mxu0 %v3627_v16 }
 0x4c3   :  { %6219 = vmatpush1.xpose.msra.mxu1 %v3620_v8  ;;  %6254 = vmatprep.mubr.f32.mxu1 %v3924_v29 }
 0x4c4   :  { %6220 = vmatprep.subr.mxu1 %v3551_v31  ;;  %6325 = vmatmul.mubr.f32.vlgmr.msra.gmra.mxu0 %v3932_v5 }
 0x4c5   :  { %6429 = vmatpush1.xpose.msra.mxu0 %v3626_v19  ;;  %6464 = vmatprep.mubr.f32.mxu0 %v3949_v33 }
 0x4c6   :  { %6430 = vmatprep.subr.mxu0 %v3557_v1 }
 0x4c7   :  { %6221 = vmatpush1.xpose.msra.mxu1 %v3550_v35 }
 0x4c8   :  { %6358 = vmatprep.subr.mxu1 %v3625_v37 }
 0x4c9   :  { %6431 = vmatpush1.xpose.msra.mxu0 %v3556_v40 }
 0x4ca   :  { %6255 = vmatmul.mubr.f32.vlgmr.msra.gmra.mxu1 %v3922_v22 }
 0x4cb   :  { %6359 = vmatpush1.xpose.msra.mxu1 %v3624_v39  ;;  %6394 = vmatprep.mubr.f32.mxu1 %v3941_v38 }
 0x4cc   :  { %6360 = vmatprep.subr.mxu1 %v3555_v41  ;;  %6465 = vmatmul.mubr.f32.vlgmr.msra.gmra.mxu0 %v6572_v30 }
 0x4cf   :  { %6361 = vmatpush1.xpose.msra.mxu1 %v3554_v49 }
 0x4d2   :  { %6395 = vmatmul.mubr.f32.vlgmr.msra.gmra.mxu1 %v3939_v32 }
 0x50a   :  { %v4086_v34 = vpop.f32.mrf.mxu1  ;;  %v4226_v44 = vpop.f32.mrf.mxu0 }
 0x50b   :  { %v4087_v47 = vadd.f32 %v6571_v45, %v4086_v34 }
 0x50c   :  { %v4088_v56 = vpop.f32.mrf.mxu1  ;;  %v4228_v46 = vpop.f32.mrf.mxu0 }
 0x512   :  { %v4156_v48 = vpop.f32.mrf.mxu1 }
 0x513   :  { %v4157_v4 = vadd.f32 %v4156_v48, %v4087_v47 }
 0x514   :  { %v4158_v50 = vpop.f32.mrf.mxu1  ;;  %v4366_v43 = vpop.f32.mrf.mxu0 }
 0x515   :  { %v4227_v51 = vadd.f32 %v4226_v44, %v4157_v4 }
 0x516   :  { %v4368_v36 = vpop.f32.mrf.mxu0 }
 0x51a   :  { %v4296_v54 = vpop.f32.mrf.mxu1 }
 0x51b   :  { %v4297_v55 = vadd.f32 %v4296_v54, %v4227_v51 }
 0x51c   :  { %v4298_v57 = vpop.f32.mrf.mxu1  ;;  %v4506_v58 = vpop.f32.mrf.mxu0 }
 0x51d   :  { %v4367_v15 = vadd.f32 %v4366_v43, %v4297_v55 }
 0x51e   :  { %v4508_v42 = vpop.f32.mrf.mxu0 }
 0x522   :  { %v4436_v59 = vpop.f32.mrf.mxu1 }
 0x523   :  { %v4437_v5 = vadd.f32 %v4436_v59, %v4367_v15 }
 0x524   :  { %v4438_v61 = vpop.f32.mrf.mxu1  ;;  %v4646_v13 = vpop.f32.mrf.mxu0 }
 0x525   :  { %v4507_v12 = vadd.f32 %v4506_v58, %v4437_v5 }
 0x526   :  { %v4648_v53 = vpop.f32.mrf.mxu0 }
 0x52a   :  { %v4576_v63 = vpop.f32.mrf.mxu1 }
 0x52b   :  { %v4577_v17 = vadd.f32 %v4576_v63, %v4507_v12 }
 0x52c   :  { %v4578_v52 = vpop.f32.mrf.mxu1  ;;  %v4786_v0 = vpop.f32.mrf.mxu0 }
 0x52d   :  { %v4647_v27 = vadd.f32 %v4646_v13, %v4577_v17 }
 0x52e   :  { %v4788_v23 = vpop.f32.mrf.mxu0 }
 0x532   :  { %v4716_v2 = vpop.f32.mrf.mxu1 }
 0x533   :  { %v4717_v24 = vadd.f32 %v4716_v2, %v4647_v27 }
 0x534   :  { %v4718_v3 = vpop.f32.mrf.mxu1  ;;  %v4926_v6 = vpop.f32.mrf.mxu0 }
 0x535   :  { %v4787_v25 = vadd.f32 %v4786_v0, %v4717_v24 }
 0x536   :  { %v4928_v21 = vpop.f32.mrf.mxu0 }
 0x53a   :  { %v4856_v7 = vpop.f32.mrf.mxu1 }
 0x53b   :  { %v4857_v20 = vadd.f32 %v4856_v7, %v4787_v25 }
 0x53c   :  { %v4858_v9 = vpop.f32.mrf.mxu1  ;;  %v5066_v10 = vpop.f32.mrf.mxu0 }
 0x53d   :  { %v4927_v31 = vadd.f32 %v4926_v6, %v4857_v20 }
 0x53e   :  { %v5068_v62 = vpop.f32.mrf.mxu0 }
 0x542   :  { %v4996_v11 = vpop.f32.mrf.mxu1 }
 0x543   :  { %v4997_v33 = vadd.f32 %v4996_v11, %v4927_v31 }
 0x544   :  { %v4998_v14 = vpop.f32.mrf.mxu1  ;;  %v5206_v18 = vpop.f32.mrf.mxu0 }
 0x545   :  { %v5067_v35 = vadd.f32 %v5066_v10, %v4997_v33 }
 0x546   :  { %v5208_v26 = vpop.f32.mrf.mxu0 }
 0x54a   :  { %v5136_v22 = vpop.f32.mrf.mxu1 }
 0x54b   :  { %v5137_v37 = vadd.f32 %v5136_v22, %v5067_v35 }
 0x54c   :  { %v5138_v60 = vpop.f32.mrf.mxu1  ;;  %v5346_v28 = vpop.f32.mrf.mxu0 }
 0x54d   :  { %v5207_v39 = vadd.f32 %v5206_v18, %v5137_v37 }
 0x54e   :  { %v5348_v29 = vpop.f32.mrf.mxu0 }
 0x552   :  { %v5276_v30 = vpop.f32.mrf.mxu1 }
 0x553   :  { %v5277_v49 = vadd.f32 %v5276_v30, %v5207_v39 }
 0x554   :  { %v5278_v8 = vpop.f32.mrf.mxu1  ;;  %v5486_v16 = vpop.f32.mrf.mxu0 }
 0x555   :  { %v5347_v44 = vadd.f32 %v5346_v28, %v5277_v49 }
 0x556   :  { %v5488_v19 = vpop.f32.mrf.mxu0 }
 0x55a   :  { %v5416_v32 = vpop.f32.mrf.mxu1 }
 0x55b   :  { %v5417_v46 = vadd.f32 %v5416_v32, %v5347_v44 }
 0x55c   :  { %v5418_v1 = vpop.f32.mrf.mxu1  ;;  %v5626_v40 = vpop.f32.mrf.mxu0 }
 0x55d   :  { %v5487_v4 = vadd.f32 %v5486_v16, %v5417_v46 }
 0x55e   :  { %v5628_v38 = vpop.f32.mrf.mxu0 }
 0x562   :  { %v5556_v41 = vpop.f32.mrf.mxu1 }
 0x563   :  { %v5557_v51 = vadd.f32 %v5556_v41, %v5487_v4 }
 0x564   :  { %v5558_v34 = vpop.f32.mrf.mxu1  ;;  %v5766_v56 = vpop.f32.mrf.mxu0 }
 0x565   :  { %v5627_v54 = vadd.f32 %v5626_v40, %v5557_v51 }
 0x566   :  { %v5768_v45 = vpop.f32.mrf.mxu0 }
 0x56a   :  { %v5696_v47 = vpop.f32.mrf.mxu1 }
 0x56b   :  { %v5697_v57 = vadd.f32 %v5696_v47, %v5627_v54 }
 0x56c   :  { %v5698_v48 = vpop.f32.mrf.mxu1  ;;  %v5906_v50 = vpop.f32.mrf.mxu0 }
 0x56d   :  { %v5767_v42 = vadd.f32 %v5766_v56, %v5697_v57 }
 0x56e   :  { %v5908_v43 = vpop.f32.mrf.mxu0 }
 0x572   :  { %v5836_v36 = vpop.f32.mrf.mxu1 }
 0x573   :  { %v5837_v61 = vadd.f32 %v5836_v36, %v5767_v42 }
 0x574   :  { %v5838_v55 = vpop.f32.mrf.mxu1  ;;  %v6046_v15 = vpop.f32.mrf.mxu0 }
 0x575   :  { %v5907_v63 = vadd.f32 %v5906_v50, %v5837_v61 }
 0x576   :  { %v6048_v58 = vpop.f32.mrf.mxu0 }
 0x57a   :  { %v5976_v59 = vpop.f32.mrf.mxu1 }
 0x57b   :  { %v5977_v0 = vadd.f32 %v5976_v59, %v5907_v63 }
 0x57c   :  { %v5978_v13 = vpop.f32.mrf.mxu1  ;;  %v6186_v53 = vpop.f32.mrf.mxu0 }
 0x57d   :  { %v6047_v3 = vadd.f32 %v6046_v15, %v5977_v0 }
 0x57e   :  { %v6188_v52 = vpop.f32.mrf.mxu0 }
 0x582   :  { %v6116_v23 = vpop.f32.mrf.mxu1 }
 0x583   :  { %v6117_v21 = vadd.f32 %v6116_v23, %v6047_v3 }
 0x584   :  { %v6118_v2 = vpop.f32.mrf.mxu1  ;;  %v6326_v6 = vpop.f32.mrf.mxu0 }
 0x585   :  { %v6187_v10 = vadd.f32 %v6186_v53, %v6117_v21 }
 0x586   :  { %v6328_v7 = vpop.f32.mrf.mxu0 }
 0x58a   :  { %v6256_v9 = vpop.f32.mrf.mxu1 }
 0x58b   :  { %v6257_v62 = vadd.f32 %v6256_v9, %v6187_v10 }
 0x58c   :  { %v6258_v5 = vpop.f32.mrf.mxu1  ;;  %v6466_v11 = vpop.f32.mrf.mxu0 }
 0x58d   :  { %v6327_v14 = vadd.f32 %v6326_v6, %v6257_v62 }
 0x58e   :  { %v6468_v12 = vpop.f32.mrf.mxu0 }
 0x592   :  { %v6396_v17 = vpop.f32.mrf.mxu1 }
 0x593   :  { %v6397_v18 = vadd.f32 %v6396_v17, %v6327_v14 }
 0x594   :  { %v6398_v26 = vpop.f32.mrf.mxu1 }
 0x595   :  { %v6467_v27 = vadd.f32 %v6466_v11, %v6397_v18 }
 0x597   :  { %v6471_v22 = vsel %vm6470_vm0, %v6467_v27, -inf }
 0x598   :  { %v6472_v24 = vrot.slane %v6471_v22, 4 }
 0x59a   :  { %v6473_v60 = vmax.f32 %v6471_v22, %v6472_v24 }
 0x59c   :  { %v6474_v28 = vrot.slane %v6473_v60, 2 }
 0x59e   :  { %v6475_v25 = vmax.f32 %v6473_v60, %v6474_v28 }
 0x5a0   :  { %v6476_v29 = vrot.slane %v6475_v25, 1 }
 0x5a2   :  { %v6477_v20 = vmax.f32 %v6475_v25, %v6476_v29 }
 0x5a4   :  { %v6478_v30 = vsub.f32 %v6467_v27, %v6477_v20 }
 0x5a6   :  { %v6479_v8 = vmul.f32 1.442695, %v6478_v30 }
 0x5a8   :  { %6640 = vpow2.f32 %v6479_v8 }
 0x5b5   :  { %v6641_v31 = vpop.eup %6640 }
 0x5b6   :  { %v6481_v16 = vsel %vm6470_vm0, %v6641_v31, 0.0 }
 0x5b7   :  { %v6482_v33 = vrot.slane %v6481_v16, 4 }
 0x5b9   :  { %v6483_v19 = vadd.f32 %v6482_v33, %v6481_v16 }
 0x5bb   :  { %v6484_v32 = vrot.slane %v6483_v19, 2 }
 0x5bd   :  { %v6485_v35 = vadd.f32 %v6484_v32, %v6483_v19 }
 0x5bf   :  { %v6486_v1 = vrot.slane %v6485_v35, 1 }
 0x5c1   :  { %v6487_v37 = vadd.f32 %v6486_v1, %v6485_v35 }
 0x5c3   :  { %6642 = vlog2.f32 %v6487_v37 }
 0x5d0   :  { %v6643_v40 = vpop.eup %6642 }
 0x5d1   :  { %v6489_v38 = vmul.f32 0.6931472, %v6643_v40 }
 0x5d3   :  { %v6490_v39 = vsub.f32 %v6478_v30, %v6489_v38 }
 0x5d5   :  { %6491 = vst.msk [vmem:[#allocation9] sm:$0x3] %vm6470_vm0, %v6490_v39 }
 0x5d6   :  { %6655 = shalt.err (!%p6652_p4)
}
 0x5d7   :  { %6501 = dma.vmem_to_hbm [thread:$0]  %s6499_s20, 32, %s8062_s7, [#allocation10]  }
 0x5d8   :  { %6666 = dma.done.wait [#allocation10], 32  }
 0x5d9   :  { %6667 = vsyncadd [#allocation10], 4294967264 }
 0x5da   :  { %6505 = vsyncpa [#allocation10], 1 }
 0x5db   :  { %6506 = vsyncmov [#allocation8] }
 0x5de   :  { %s6507_s24 = vpop.sfrf %6506 }
 0x5df   :  { %p6573_p5 = scmp.ne.s32.totalorder %s6507_s24, 0 }
 0x5e1   :  { %6511 = shalt.err (%p6573_p5)  }

</bundles_post_ra>
